<compile_context>
chip_gen: v6e
topology: v6e:2x2x1
jax: 0.10.0
libtpu: 0.0.40
codegen_flags: <defaults>
</compile_context>

<pallas_src>
import functools

import jax
import jax.numpy as jnp
from jax.experimental import pallas as pl
from jax.experimental.pallas import tpu as pltpu


# ----------------------------------------------------------------------------
# Fused encoder + greedy-decoder kernel (single pallas_call, no grid).
# ----------------------------------------------------------------------------
def fused_gru_inference(fused, src, trg, trg_max_len):
    S = src.shape[0]
    V_src, threeH = fused["enc_xtab"].shape
    H = threeH // 3
    V = fused["fc_b"].shape[-1]
    T = trg_max_len - 1
    H2, H3 = 2 * H, 3 * H

    def kernel(trg_ref, src_ref,
               enc_xtab_ref, enc_whh_ref, enc_bhh_ref,
               ecomb_ref, wic_ref, dwhh_ref, dbih_ref, dbhh_ref,
               wfh_ref, wfc_ref, bf_ref,
               logits_ref, nkept_ref):
        # ---------------- Encoder ----------------
        # enc_xtab = enc_emb @ W_ih^T + b_ih (pre-folded); one matmul does the input
        # projection for ALL source steps AND replaces the XLA embedding gather.
        src_ids = src_ref[...]                                           # (S, 1) int32
        lane = jax.lax.broadcasted_iota(jnp.int32, (S, V_src), 1)
        onehot_src = (lane == src_ids).astype(jnp.float32)               # (S, V_src)
        xp = jnp.dot(onehot_src, enc_xtab_ref[...],
                     preferred_element_type=jnp.float32)                 # (S, 3H)
        e_whh = enc_whh_ref[...]
        e_bhh = enc_bhh_ref[...]
        h = jnp.zeros((1, H), jnp.float32)
        for t in range(S):                                               # unrolled recurrence
            gi = xp[t:t + 1, :]                                          # (1, 3H), bih folded
            gh = jnp.dot(h, e_whh, preferred_element_type=jnp.float32) + e_bhh
            rz = jax.nn.sigmoid(gi[:, :H2] + gh[:, :H2])                 # fused r|z sigmoid
            r, z = rz[:, :H], rz[:, H:H2]
            n = jnp.tanh(gi[:, H2:H3] + r * gh[:, H2:H3])
            h = (1.0 - z) * n + z * h
        ctx = h                                                          # (1, H), stays in vregs

        # ------------- Decoder setup (context-dependent terms hoisted once) -------------
        start_tok = trg_ref[0, 0]                                        # SMEM scalars
        eos_tok = trg_ref[1, 0]
        b_gate = jnp.dot(ctx, wic_ref[...],
                         preferred_element_type=jnp.float32) + dbih_ref[...]   # (1, 3H)
        b_out = jnp.dot(ctx, wfc_ref[...],
                        preferred_element_type=jnp.float32) + bf_ref[...]      # (1, V)
        ecomb = ecomb_ref[...]                                           # (V, 3H+V)
        d_whh = dwhh_ref[...]                                            # (H, 3H)
        d_bhh = dbhh_ref[...]                                            # (1, 3H)
        w_fh = wfh_ref[...]                                              # (H, V)

        iota_v = jax.lax.broadcasted_iota(jnp.int32, (1, V), 1)
        eos_vec = (iota_v == eos_tok).astype(jnp.float32)                # (1, V)
        onehot = (iota_v == start_tok).astype(jnp.float32)               # (1, V)

        hdec = ctx
        done = jnp.zeros((1, 1), jnp.int32)
        t_final = jnp.zeros((1, 1), jnp.int32)

        for i in range(T):                                               # unrolled greedy decode
            # Embedding folded into the weights: ONE matmul gives the GRU input
            # projection (first 3H lanes) and the fc_out embedding term (last V lanes).
            comb = jnp.dot(onehot, ecomb, preferred_element_type=jnp.float32)  # (1, 3H+V)
            gi = comb[:, :H3] + b_gate
            fce = comb[:, H3:]
            gh = jnp.dot(hdec, d_whh, preferred_element_type=jnp.float32) + d_bhh
            rz = jax.nn.sigmoid(gi[:, :H2] + gh[:, :H2])                 # fused r|z sigmoid
            r, z = rz[:, :H], rz[:, H:H2]
            n = jnp.tanh(gi[:, H2:H3] + r * gh[:, H2:H3])
            h_new = (1.0 - z) * n + z * hdec

            # fc_out: ctx@W_fc + b already folded into b_out; single accumulation expr.
            pred = (jnp.dot(h_new, w_fh, preferred_element_type=jnp.float32)
                    + fce + b_out)                                       # (1, V)
            logits_ref[i:i + 1, :] = pred

            # Greedy argmax: single lane reduction (exact f32 ties ~never occur).
            mx = jnp.max(pred, axis=1, keepdims=True)
            onehot = (pred == mx).astype(jnp.float32)

            # EOS bookkeeping — off the serial recurrence chain; post-EOS steps run
            # ungated and their logits are sliced away on the host.
            eos_hit = (jnp.sum(onehot * eos_vec, axis=1, keepdims=True)
                       > 0.5).astype(jnp.int32)                          # (1, 1)
            not_done = done == 0
            t_final = jnp.where(not_done, i + 1, t_final)                # PyTorch loop var t
            done = jnp.maximum(done, eos_hit)

            hdec = h_new

        nkept_ref[...] = t_final - 1                                     # len(outputs[1:t])

    return pl.pallas_call(
        kernel,
        out_shape=(jax.ShapeDtypeStruct((T, V), jnp.float32),
                   jax.ShapeDtypeStruct((1, 1), jnp.int32)),
        in_specs=([pl.BlockSpec(memory_space=pltpu.MemorySpace.SMEM)]
                  + [pl.BlockSpec(memory_space=pltpu.MemorySpace.VMEM)] * 12),
        out_specs=(pl.BlockSpec(memory_space=pltpu.MemorySpace.VMEM),
                   pl.BlockSpec(memory_space=pltpu.MemorySpace.VMEM)),
    )(trg, src,
      fused["enc_xtab"], fused["enc_whh"], fused["enc_bhh"],
      fused["dec_ecomb"], fused["dec_wic"], fused["dec_whh"],
      fused["dec_bih"], fused["dec_bhh"],
      fused["fc_wh"], fused["fc_wc"], fused["fc_b"])


# ----------------------------------------------------------------------------
# Parameters: raw PyTorch-layout params (for the reference) + one-time fusion
# into the layouts the kernel consumes.
# ----------------------------------------------------------------------------
def make_params(key, input_dim, output_dim, enc_emb_dim, dec_emb_dim, hid_dim):
    ks = list(jax.random.split(key, 12))
    u = lambda k, shp, b: jax.random.uniform(k, shp, jnp.float32, -b, b)
    kH = float(hid_dim) ** -0.5
    dec_in = dec_emb_dim + hid_dim
    fc_in = dec_emb_dim + 2 * hid_dim
    kF = float(fc_in) ** -0.5
    return {
        "enc_emb": jax.random.normal(ks[0], (input_dim, enc_emb_dim), jnp.float32),
        "dec_emb": jax.random.normal(ks[1], (output_dim, dec_emb_dim), jnp.float32),
        # PyTorch nn.GRU layouts: weight_ih (3H, in), weight_hh (3H, H); gate order r,z,n
        "enc_wih": u(ks[2], (3 * hid_dim, enc_emb_dim), kH),
        "enc_whh": u(ks[3], (3 * hid_dim, hid_dim), kH),
        "enc_bih": u(ks[4], (3 * hid_dim,), kH),
        "enc_bhh": u(ks[5], (3 * hid_dim,), kH),
        "dec_wih": u(ks[6], (3 * hid_dim, dec_in), kH),
        "dec_whh": u(ks[7], (3 * hid_dim, hid_dim), kH),
        "dec_bih": u(ks[8], (3 * hid_dim,), kH),
        "dec_bhh": u(ks[9], (3 * hid_dim,), kH),
        # fc_out: Linear(dec_emb + 2*hid -> output_dim), input order [emb, hidden, context]
        "fc_w": u(ks[10], (output_dim, fc_in), kF),
        "fc_b": u(ks[11], (output_dim,), kF),
    }


def fuse_params(p):
    """One-time host-side fold into kernel layouts (no per-call cost)."""
    H = p["enc_whh"].shape[1]
    E = p["dec_emb"].shape[1]
    w_ie = p["dec_wih"][:, :E].T          # (E, 3H)
    w_ic = p["dec_wih"][:, E:].T          # (H, 3H)
    w_fe = p["fc_w"][:, :E].T             # (E, V)
    w_fh = p["fc_w"][:, E:E + H].T        # (H, V)
    w_fc = p["fc_w"][:, E + H:].T         # (H, V)
    return {
        # encoder: embedding + input projection + bih folded into one table
        "enc_xtab": p["enc_emb"] @ p["enc_wih"].T + p["enc_bih"][None, :],   # (V_src, 3H)
        "enc_whh": p["enc_whh"].T,                                           # (H, 3H)
        "enc_bhh": p["enc_bhh"].reshape(1, -1),
        # decoder: embedding folded into [GRU input proj | fc_out emb term]
        "dec_ecomb": p["dec_emb"] @ jnp.concatenate([w_ie, w_fe], axis=1),   # (V, 3H+V)
        "dec_wic": w_ic,
        "dec_whh": p["dec_whh"].T,
        "dec_bih": p["dec_bih"].reshape(1, -1),
        "dec_bhh": p["dec_bhh"].reshape(1, -1),
        "fc_wh": w_fh,
        "fc_wc": w_fc,
        "fc_b": p["fc_b"].reshape(1, -1),
    }


# ----------------------------------------------------------------------------
# Jitted device path (exactly one pallas_call) + host wrapper.  The only host
# sync is the final data-dependent slice (outputs[1:t] after the EOS break).
# ----------------------------------------------------------------------------
@functools.partial(jax.jit, static_argnames=("trg_max_len",))
def _device_forward(fused, src, trg, trg_max_len):
    return fused_gru_inference(fused, src, trg, trg_max_len)


def gru_inference_forward(fused, src, trg, trg_max_len=30):
    S, B = src.shape
    assert B == 1, "eos-break semantics of the reference module require batch == 1"
    assert trg_max_len >= 2
    logits, n_kept = _device_forward(fused, src.astype(jnp.int32),
                                     trg.astype(jnp.int32), trg_max_len=trg_max_len)
    V = logits.shape[-1]
    n = int(n_kept[0, 0])                 # single host sync for the dynamic length
    n = max(0, min(n, logits.shape[0]))
    return logits[:n].reshape(n, B, V)    # == PyTorch outputs[1:t]


# ----------------------------------------------------------------------------
# Pure-JAX (eager) mirror of the PyTorch reference, for a self-check.
# ----------------------------------------------------------------------------
def _reference_forward(p, src, trg, trg_max_len):
    H = p["enc_whh"].shape[1]
    V = p["fc_w"].shape[0]

    def gru_cell(x, h, wih, whh, bih, bhh):
        gi = x @ wih.T + bih
        gh = h @ whh.T + bhh
        r = jax.nn.sigmoid(gi[:, :H] + gh[:, :H])
        z = jax.nn.sigmoid(gi[:, H:2 * H] + gh[:, H:2 * H])
        n = jnp.tanh(gi[:, 2 * H:] + r * gh[:, 2 * H:])
        return (1.0 - z) * n + z * h

    h = jnp.zeros((1, H), jnp.float32)
    for t in range(src.shape[0]):
        x = p["enc_emb"][src[t, 0]][None, :]
        h = gru_cell(x, h, p["enc_wih"], p["enc_whh"], p["enc_bih"], p["enc_bhh"])
    context = h
    hidden = context

    eos = int(trg[1, 0])
    inp = int(trg[0, 0])
    preds, t_last = [], 1
    for t in range(1, trg_max_len):
        e = p["dec_emb"][inp][None, :]
        x = jnp.concatenate([e, context], axis=1)
        hidden = gru_cell(x, hidden, p["dec_wih"], p["dec_whh"], p["dec_bih"], p["dec_bhh"])
        pred = jnp.concatenate([e, hidden, context], axis=1) @ p["fc_w"].T + p["fc_b"]
        preds.append(pred)
        top1 = int(jnp.argmax(pred, axis=1)[0])
        inp = top1
        t_last = t
        if top1 == eos:
            break
    kept = preds[:t_last - 1]
    if not kept:
        return jnp.zeros((0, 1, V), jnp.float32)
    return jnp.stack(kept, axis=0)


if __name__ == "__main__":
    key = jax.random.PRNGKey(0)

    input_dim = 30      # len(SRC.vocab)
    output_dim = 25     # len(TRG.vocab)
    enc_emb_dim = 32
    dec_emb_dim = 32
    hid_dim = 32
    src_len = 8
    batch = 1
    trg_max_len = 10

    pkey, skey, tkey = jax.random.split(key, 3)
    params = make_params(pkey, input_dim, output_dim, enc_emb_dim, dec_emb_dim, hid_dim)
    fused = fuse_params(params)

    src = jax.random.randint(skey, (src_len, batch), 0, input_dim, dtype=jnp.int32)
    trg = jax.random.randint(tkey, (2, batch), 0, output_dim, dtype=jnp.int32)

    out = gru_inference_forward(fused, src, trg, trg_max_len=trg_max_len)
    out = jax.block_until_ready(out)
    assert out.ndim == 3 and out.shape[1] == batch and out.shape[2] == output_dim

    # Self-check against the pure-JAX mirror of the PyTorch module.
    ref = _reference_forward(params, src, trg, trg_max_len)
    assert out.shape == ref.shape, (out.shape, ref.shape)
    if out.shape[0] > 0:
        assert jnp.allclose(out, ref, atol=1e-3, rtol=1e-3), \
            float(jnp.max(jnp.abs(out - ref)))

    print("KERNEL_OK")
</pallas_src>

<mosaic_0001>
module attributes {stable_mosaic.version = 11 : i64} {
  func.func @kernel(%arg0: memref<2x1xi32, #tpu.memory_space<smem>>, %arg1: memref<8x1xi32, #tpu.memory_space<vmem>>, %arg2: memref<30x96xf32, #tpu.memory_space<vmem>>, %arg3: memref<32x96xf32, #tpu.memory_space<vmem>>, %arg4: memref<1x96xf32, #tpu.memory_space<vmem>>, %arg5: memref<25x121xf32, #tpu.memory_space<vmem>>, %arg6: memref<32x96xf32, #tpu.memory_space<vmem>>, %arg7: memref<32x96xf32, #tpu.memory_space<vmem>>, %arg8: memref<1x96xf32, #tpu.memory_space<vmem>>, %arg9: memref<1x96xf32, #tpu.memory_space<vmem>>, %arg10: memref<32x25xf32, #tpu.memory_space<vmem>>, %arg11: memref<32x25xf32, #tpu.memory_space<vmem>>, %arg12: memref<1x25xf32, #tpu.memory_space<vmem>>, %arg13: memref<9x25xf32, #tpu.memory_space<vmem>>, %arg14: memref<1x1xi32, #tpu.memory_space<vmem>>) attributes {dimension_semantics = [], scalar_prefetch = 0 : i64, scratch_operands = 0 : i64, tpu.core_type = #tpu.core_type<tc>} {
    %c0 = arith.constant 0 : index
    %c0_0 = arith.constant 0 : index
    %0 = vector.load %arg1[%c0, %c0_0] : memref<8x1xi32, #tpu.memory_space<vmem>>, vector<8x1xi32>
    %1 = tpu.iota {dimensions = array<i32: 1>} : vector<8x30xi32>
    %2 = vector.broadcast %0 : vector<8x1xi32> to vector<8x30xi32>
    %3 = arith.cmpi eq, %1, %2 : vector<8x30xi32>
    %4 = arith.extui %3 : vector<8x30xi1> to vector<8x30xi32>
    %5 = arith.sitofp %4 : vector<8x30xi32> to vector<8x30xf32>
    %c0_1 = arith.constant 0 : index
    %c0_2 = arith.constant 0 : index
    %6 = vector.load %arg2[%c0_1, %c0_2] : memref<30x96xf32, #tpu.memory_space<vmem>>, vector<30x96xf32>
    %cst = arith.constant dense<0.000000e+00> : vector<8x96xf32>
    %7 = tpu.matmul %5, %6, %cst {dimension_numbers = #tpu.dot_dimension_numbers<[1], [0], [0], [1], [0, 0, 1, 1], [], []>} : vector<8x30xf32>, vector<30x96xf32>, vector<8x96xf32> -> vector<8x96xf32>
    %c0_3 = arith.constant 0 : index
    %c0_4 = arith.constant 0 : index
    %8 = vector.load %arg3[%c0_3, %c0_4] : memref<32x96xf32, #tpu.memory_space<vmem>>, vector<32x96xf32>
    %c0_5 = arith.constant 0 : index
    %c0_6 = arith.constant 0 : index
    %9 = vector.load %arg4[%c0_5, %c0_6] : memref<1x96xf32, #tpu.memory_space<vmem>>, vector<1x96xf32>
    %cst_7 = arith.constant 0.000000e+00 : f32
    %10 = vector.broadcast %cst_7 : f32 to vector<1x32xf32>
    %11 = vector.extract_strided_slice %7 {offsets = [0, 0], sizes = [1, 96], strides = [1, 1]} : vector<8x96xf32> to vector<1x96xf32>
    %cst_8 = arith.constant dense<0.000000e+00> : vector<1x96xf32>
    %12 = tpu.matmul %10, %8, %cst_8 {dimension_numbers = #tpu.dot_dimension_numbers<[1], [0], [0], [1], [0, 0, 1, 1], [], []>} : vector<1x32xf32>, vector<32x96xf32>, vector<1x96xf32> -> vector<1x96xf32>
    %13 = arith.addf %12, %9 : vector<1x96xf32>
    %14 = vector.extract_strided_slice %11 {offsets = [0, 0], sizes = [1, 64], strides = [1, 1]} : vector<1x96xf32> to vector<1x64xf32>
    %15 = vector.extract_strided_slice %13 {offsets = [0, 0], sizes = [1, 64], strides = [1, 1]} : vector<1x96xf32> to vector<1x64xf32>
    %16 = arith.addf %14, %15 : vector<1x64xf32>
    %17 = arith.negf %16 : vector<1x64xf32>
    %18 = math.exp %17 : vector<1x64xf32>
    %cst_9 = arith.constant 1.000000e+00 : f32
    %19 = vector.broadcast %cst_9 : f32 to vector<1x64xf32>
    %20 = arith.addf %19, %18 : vector<1x64xf32>
    %21 = arith.divf %19, %20 : vector<1x64xf32>
    %22 = vector.extract_strided_slice %21 {offsets = [0, 0], sizes = [1, 32], strides = [1, 1]} : vector<1x64xf32> to vector<1x32xf32>
    %23 = vector.extract_strided_slice %21 {offsets = [0, 32], sizes = [1, 32], strides = [1, 1]} : vector<1x64xf32> to vector<1x32xf32>
    %24 = vector.extract_strided_slice %11 {offsets = [0, 64], sizes = [1, 32], strides = [1, 1]} : vector<1x96xf32> to vector<1x32xf32>
    %25 = vector.extract_strided_slice %13 {offsets = [0, 64], sizes = [1, 32], strides = [1, 1]} : vector<1x96xf32> to vector<1x32xf32>
    %26 = arith.mulf %22, %25 : vector<1x32xf32>
    %27 = arith.addf %24, %26 : vector<1x32xf32>
    %28 = math.tanh %27 : vector<1x32xf32>
    %cst_10 = arith.constant 1.000000e+00 : f32
    %29 = vector.broadcast %cst_10 : f32 to vector<1x32xf32>
    %30 = arith.subf %29, %23 : vector<1x32xf32>
    %31 = arith.mulf %30, %28 : vector<1x32xf32>
    %32 = arith.mulf %23, %10 : vector<1x32xf32>
    %33 = arith.addf %31, %32 : vector<1x32xf32>
    %34 = vector.extract_strided_slice %7 {offsets = [1, 0], sizes = [1, 96], strides = [1, 1]} : vector<8x96xf32> to vector<1x96xf32>
    %cst_11 = arith.constant dense<0.000000e+00> : vector<1x96xf32>
    %35 = tpu.matmul %33, %8, %cst_11 {dimension_numbers = #tpu.dot_dimension_numbers<[1], [0], [0], [1], [0, 0, 1, 1], [], []>} : vector<1x32xf32>, vector<32x96xf32>, vector<1x96xf32> -> vector<1x96xf32>
    %36 = arith.addf %35, %9 : vector<1x96xf32>
    %37 = vector.extract_strided_slice %34 {offsets = [0, 0], sizes = [1, 64], strides = [1, 1]} : vector<1x96xf32> to vector<1x64xf32>
    %38 = vector.extract_strided_slice %36 {offsets = [0, 0], sizes = [1, 64], strides = [1, 1]} : vector<1x96xf32> to vector<1x64xf32>
    %39 = arith.addf %37, %38 : vector<1x64xf32>
    %40 = arith.negf %39 : vector<1x64xf32>
    %41 = math.exp %40 : vector<1x64xf32>
    %cst_12 = arith.constant 1.000000e+00 : f32
    %42 = vector.broadcast %cst_12 : f32 to vector<1x64xf32>
    %43 = arith.addf %42, %41 : vector<1x64xf32>
    %44 = arith.divf %42, %43 : vector<1x64xf32>
    %45 = vector.extract_strided_slice %44 {offsets = [0, 0], sizes = [1, 32], strides = [1, 1]} : vector<1x64xf32> to vector<1x32xf32>
    %46 = vector.extract_strided_slice %44 {offsets = [0, 32], sizes = [1, 32], strides = [1, 1]} : vector<1x64xf32> to vector<1x32xf32>
    %47 = vector.extract_strided_slice %34 {offsets = [0, 64], sizes = [1, 32], strides = [1, 1]} : vector<1x96xf32> to vector<1x32xf32>
    %48 = vector.extract_strided_slice %36 {offsets = [0, 64], sizes = [1, 32], strides = [1, 1]} : vector<1x96xf32> to vector<1x32xf32>
    %49 = arith.mulf %45, %48 : vector<1x32xf32>
    %50 = arith.addf %47, %49 : vector<1x32xf32>
    %51 = math.tanh %50 : vector<1x32xf32>
    %cst_13 = arith.constant 1.000000e+00 : f32
    %52 = vector.broadcast %cst_13 : f32 to vector<1x32xf32>
    %53 = arith.subf %52, %46 : vector<1x32xf32>
    %54 = arith.mulf %53, %51 : vector<1x32xf32>
    %55 = arith.mulf %46, %33 : vector<1x32xf32>
    %56 = arith.addf %54, %55 : vector<1x32xf32>
    %57 = vector.extract_strided_slice %7 {offsets = [2, 0], sizes = [1, 96], strides = [1, 1]} : vector<8x96xf32> to vector<1x96xf32>
    %cst_14 = arith.constant dense<0.000000e+00> : vector<1x96xf32>
    %58 = tpu.matmul %56, %8, %cst_14 {dimension_numbers = #tpu.dot_dimension_numbers<[1], [0], [0], [1], [0, 0, 1, 1], [], []>} : vector<1x32xf32>, vector<32x96xf32>, vector<1x96xf32> -> vector<1x96xf32>
    %59 = arith.addf %58, %9 : vector<1x96xf32>
    %60 = vector.extract_strided_slice %57 {offsets = [0, 0], sizes = [1, 64], strides = [1, 1]} : vector<1x96xf32> to vector<1x64xf32>
    %61 = vector.extract_strided_slice %59 {offsets = [0, 0], sizes = [1, 64], strides = [1, 1]} : vector<1x96xf32> to vector<1x64xf32>
    %62 = arith.addf %60, %61 : vector<1x64xf32>
    %63 = arith.negf %62 : vector<1x64xf32>
    %64 = math.exp %63 : vector<1x64xf32>
    %cst_15 = arith.constant 1.000000e+00 : f32
    %65 = vector.broadcast %cst_15 : f32 to vector<1x64xf32>
    %66 = arith.addf %65, %64 : vector<1x64xf32>
    %67 = arith.divf %65, %66 : vector<1x64xf32>
    %68 = vector.extract_strided_slice %67 {offsets = [0, 0], sizes = [1, 32], strides = [1, 1]} : vector<1x64xf32> to vector<1x32xf32>
    %69 = vector.extract_strided_slice %67 {offsets = [0, 32], sizes = [1, 32], strides = [1, 1]} : vector<1x64xf32> to vector<1x32xf32>
    %70 = vector.extract_strided_slice %57 {offsets = [0, 64], sizes = [1, 32], strides = [1, 1]} : vector<1x96xf32> to vector<1x32xf32>
    %71 = vector.extract_strided_slice %59 {offsets = [0, 64], sizes = [1, 32], strides = [1, 1]} : vector<1x96xf32> to vector<1x32xf32>
    %72 = arith.mulf %68, %71 : vector<1x32xf32>
    %73 = arith.addf %70, %72 : vector<1x32xf32>
    %74 = math.tanh %73 : vector<1x32xf32>
    %cst_16 = arith.constant 1.000000e+00 : f32
    %75 = vector.broadcast %cst_16 : f32 to vector<1x32xf32>
    %76 = arith.subf %75, %69 : vector<1x32xf32>
    %77 = arith.mulf %76, %74 : vector<1x32xf32>
    %78 = arith.mulf %69, %56 : vector<1x32xf32>
    %79 = arith.addf %77, %78 : vector<1x32xf32>
    %80 = vector.extract_strided_slice %7 {offsets = [3, 0], sizes = [1, 96], strides = [1, 1]} : vector<8x96xf32> to vector<1x96xf32>
    %cst_17 = arith.constant dense<0.000000e+00> : vector<1x96xf32>
    %81 = tpu.matmul %79, %8, %cst_17 {dimension_numbers = #tpu.dot_dimension_numbers<[1], [0], [0], [1], [0, 0, 1, 1], [], []>} : vector<1x32xf32>, vector<32x96xf32>, vector<1x96xf32> -> vector<1x96xf32>
    %82 = arith.addf %81, %9 : vector<1x96xf32>
    %83 = vector.extract_strided_slice %80 {offsets = [0, 0], sizes = [1, 64], strides = [1, 1]} : vector<1x96xf32> to vector<1x64xf32>
    %84 = vector.extract_strided_slice %82 {offsets = [0, 0], sizes = [1, 64], strides = [1, 1]} : vector<1x96xf32> to vector<1x64xf32>
    %85 = arith.addf %83, %84 : vector<1x64xf32>
    %86 = arith.negf %85 : vector<1x64xf32>
    %87 = math.exp %86 : vector<1x64xf32>
    %cst_18 = arith.constant 1.000000e+00 : f32
    %88 = vector.broadcast %cst_18 : f32 to vector<1x64xf32>
    %89 = arith.addf %88, %87 : vector<1x64xf32>
    %90 = arith.divf %88, %89 : vector<1x64xf32>
    %91 = vector.extract_strided_slice %90 {offsets = [0, 0], sizes = [1, 32], strides = [1, 1]} : vector<1x64xf32> to vector<1x32xf32>
    %92 = vector.extract_strided_slice %90 {offsets = [0, 32], sizes = [1, 32], strides = [1, 1]} : vector<1x64xf32> to vector<1x32xf32>
    %93 = vector.extract_strided_slice %80 {offsets = [0, 64], sizes = [1, 32], strides = [1, 1]} : vector<1x96xf32> to vector<1x32xf32>
    %94 = vector.extract_strided_slice %82 {offsets = [0, 64], sizes = [1, 32], strides = [1, 1]} : vector<1x96xf32> to vector<1x32xf32>
    %95 = arith.mulf %91, %94 : vector<1x32xf32>
    %96 = arith.addf %93, %95 : vector<1x32xf32>
    %97 = math.tanh %96 : vector<1x32xf32>
    %cst_19 = arith.constant 1.000000e+00 : f32
    %98 = vector.broadcast %cst_19 : f32 to vector<1x32xf32>
    %99 = arith.subf %98, %92 : vector<1x32xf32>
    %100 = arith.mulf %99, %97 : vector<1x32xf32>
    %101 = arith.mulf %92, %79 : vector<1x32xf32>
    %102 = arith.addf %100, %101 : vector<1x32xf32>
    %103 = vector.extract_strided_slice %7 {offsets = [4, 0], sizes = [1, 96], strides = [1, 1]} : vector<8x96xf32> to vector<1x96xf32>
    %cst_20 = arith.constant dense<0.000000e+00> : vector<1x96xf32>
    %104 = tpu.matmul %102, %8, %cst_20 {dimension_numbers = #tpu.dot_dimension_numbers<[1], [0], [0], [1], [0, 0, 1, 1], [], []>} : vector<1x32xf32>, vector<32x96xf32>, vector<1x96xf32> -> vector<1x96xf32>
    %105 = arith.addf %104, %9 : vector<1x96xf32>
    %106 = vector.extract_strided_slice %103 {offsets = [0, 0], sizes = [1, 64], strides = [1, 1]} : vector<1x96xf32> to vector<1x64xf32>
    %107 = vector.extract_strided_slice %105 {offsets = [0, 0], sizes = [1, 64], strides = [1, 1]} : vector<1x96xf32> to vector<1x64xf32>
    %108 = arith.addf %106, %107 : vector<1x64xf32>
    %109 = arith.negf %108 : vector<1x64xf32>
    %110 = math.exp %109 : vector<1x64xf32>
    %cst_21 = arith.constant 1.000000e+00 : f32
    %111 = vector.broadcast %cst_21 : f32 to vector<1x64xf32>
    %112 = arith.addf %111, %110 : vector<1x64xf32>
    %113 = arith.divf %111, %112 : vector<1x64xf32>
    %114 = vector.extract_strided_slice %113 {offsets = [0, 0], sizes = [1, 32], strides = [1, 1]} : vector<1x64xf32> to vector<1x32xf32>
    %115 = vector.extract_strided_slice %113 {offsets = [0, 32], sizes = [1, 32], strides = [1, 1]} : vector<1x64xf32> to vector<1x32xf32>
    %116 = vector.extract_strided_slice %103 {offsets = [0, 64], sizes = [1, 32], strides = [1, 1]} : vector<1x96xf32> to vector<1x32xf32>
    %117 = vector.extract_strided_slice %105 {offsets = [0, 64], sizes = [1, 32], strides = [1, 1]} : vector<1x96xf32> to vector<1x32xf32>
    %118 = arith.mulf %114, %117 : vector<1x32xf32>
    %119 = arith.addf %116, %118 : vector<1x32xf32>
    %120 = math.tanh %119 : vector<1x32xf32>
    %cst_22 = arith.constant 1.000000e+00 : f32
    %121 = vector.broadcast %cst_22 : f32 to vector<1x32xf32>
    %122 = arith.subf %121, %115 : vector<1x32xf32>
    %123 = arith.mulf %122, %120 : vector<1x32xf32>
    %124 = arith.mulf %115, %102 : vector<1x32xf32>
    %125 = arith.addf %123, %124 : vector<1x32xf32>
    %126 = vector.extract_strided_slice %7 {offsets = [5, 0], sizes = [1, 96], strides = [1, 1]} : vector<8x96xf32> to vector<1x96xf32>
    %cst_23 = arith.constant dense<0.000000e+00> : vector<1x96xf32>
    %127 = tpu.matmul %125, %8, %cst_23 {dimension_numbers = #tpu.dot_dimension_numbers<[1], [0], [0], [1], [0, 0, 1, 1], [], []>} : vector<1x32xf32>, vector<32x96xf32>, vector<1x96xf32> -> vector<1x96xf32>
    %128 = arith.addf %127, %9 : vector<1x96xf32>
    %129 = vector.extract_strided_slice %126 {offsets = [0, 0], sizes = [1, 64], strides = [1, 1]} : vector<1x96xf32> to vector<1x64xf32>
    %130 = vector.extract_strided_slice %128 {offsets = [0, 0], sizes = [1, 64], strides = [1, 1]} : vector<1x96xf32> to vector<1x64xf32>
    %131 = arith.addf %129, %130 : vector<1x64xf32>
    %132 = arith.negf %131 : vector<1x64xf32>
    %133 = math.exp %132 : vector<1x64xf32>
    %cst_24 = arith.constant 1.000000e+00 : f32
    %134 = vector.broadcast %cst_24 : f32 to vector<1x64xf32>
    %135 = arith.addf %134, %133 : vector<1x64xf32>
    %136 = arith.divf %134, %135 : vector<1x64xf32>
    %137 = vector.extract_strided_slice %136 {offsets = [0, 0], sizes = [1, 32], strides = [1, 1]} : vector<1x64xf32> to vector<1x32xf32>
    %138 = vector.extract_strided_slice %136 {offsets = [0, 32], sizes = [1, 32], strides = [1, 1]} : vector<1x64xf32> to vector<1x32xf32>
    %139 = vector.extract_strided_slice %126 {offsets = [0, 64], sizes = [1, 32], strides = [1, 1]} : vector<1x96xf32> to vector<1x32xf32>
    %140 = vector.extract_strided_slice %128 {offsets = [0, 64], sizes = [1, 32], strides = [1, 1]} : vector<1x96xf32> to vector<1x32xf32>
    %141 = arith.mulf %137, %140 : vector<1x32xf32>
    %142 = arith.addf %139, %141 : vector<1x32xf32>
    %143 = math.tanh %142 : vector<1x32xf32>
    %cst_25 = arith.constant 1.000000e+00 : f32
    %144 = vector.broadcast %cst_25 : f32 to vector<1x32xf32>
    %145 = arith.subf %144, %138 : vector<1x32xf32>
    %146 = arith.mulf %145, %143 : vector<1x32xf32>
    %147 = arith.mulf %138, %125 : vector<1x32xf32>
    %148 = arith.addf %146, %147 : vector<1x32xf32>
    %149 = vector.extract_strided_slice %7 {offsets = [6, 0], sizes = [1, 96], strides = [1, 1]} : vector<8x96xf32> to vector<1x96xf32>
    %cst_26 = arith.constant dense<0.000000e+00> : vector<1x96xf32>
    %150 = tpu.matmul %148, %8, %cst_26 {dimension_numbers = #tpu.dot_dimension_numbers<[1], [0], [0], [1], [0, 0, 1, 1], [], []>} : vector<1x32xf32>, vector<32x96xf32>, vector<1x96xf32> -> vector<1x96xf32>
    %151 = arith.addf %150, %9 : vector<1x96xf32>
    %152 = vector.extract_strided_slice %149 {offsets = [0, 0], sizes = [1, 64], strides = [1, 1]} : vector<1x96xf32> to vector<1x64xf32>
    %153 = vector.extract_strided_slice %151 {offsets = [0, 0], sizes = [1, 64], strides = [1, 1]} : vector<1x96xf32> to vector<1x64xf32>
    %154 = arith.addf %152, %153 : vector<1x64xf32>
    %155 = arith.negf %154 : vector<1x64xf32>
    %156 = math.exp %155 : vector<1x64xf32>
    %cst_27 = arith.constant 1.000000e+00 : f32
    %157 = vector.broadcast %cst_27 : f32 to vector<1x64xf32>
    %158 = arith.addf %157, %156 : vector<1x64xf32>
    %159 = arith.divf %157, %158 : vector<1x64xf32>
    %160 = vector.extract_strided_slice %159 {offsets = [0, 0], sizes = [1, 32], strides = [1, 1]} : vector<1x64xf32> to vector<1x32xf32>
    %161 = vector.extract_strided_slice %159 {offsets = [0, 32], sizes = [1, 32], strides = [1, 1]} : vector<1x64xf32> to vector<1x32xf32>
    %162 = vector.extract_strided_slice %149 {offsets = [0, 64], sizes = [1, 32], strides = [1, 1]} : vector<1x96xf32> to vector<1x32xf32>
    %163 = vector.extract_strided_slice %151 {offsets = [0, 64], sizes = [1, 32], strides = [1, 1]} : vector<1x96xf32> to vector<1x32xf32>
    %164 = arith.mulf %160, %163 : vector<1x32xf32>
    %165 = arith.addf %162, %164 : vector<1x32xf32>
    %166 = math.tanh %165 : vector<1x32xf32>
    %cst_28 = arith.constant 1.000000e+00 : f32
    %167 = vector.broadcast %cst_28 : f32 to vector<1x32xf32>
    %168 = arith.subf %167, %161 : vector<1x32xf32>
    %169 = arith.mulf %168, %166 : vector<1x32xf32>
    %170 = arith.mulf %161, %148 : vector<1x32xf32>
    %171 = arith.addf %169, %170 : vector<1x32xf32>
    %172 = vector.extract_strided_slice %7 {offsets = [7, 0], sizes = [1, 96], strides = [1, 1]} : vector<8x96xf32> to vector<1x96xf32>
    %cst_29 = arith.constant dense<0.000000e+00> : vector<1x96xf32>
    %173 = tpu.matmul %171, %8, %cst_29 {dimension_numbers = #tpu.dot_dimension_numbers<[1], [0], [0], [1], [0, 0, 1, 1], [], []>} : vector<1x32xf32>, vector<32x96xf32>, vector<1x96xf32> -> vector<1x96xf32>
    %174 = arith.addf %173, %9 : vector<1x96xf32>
    %175 = vector.extract_strided_slice %172 {offsets = [0, 0], sizes = [1, 64], strides = [1, 1]} : vector<1x96xf32> to vector<1x64xf32>
    %176 = vector.extract_strided_slice %174 {offsets = [0, 0], sizes = [1, 64], strides = [1, 1]} : vector<1x96xf32> to vector<1x64xf32>
    %177 = arith.addf %175, %176 : vector<1x64xf32>
    %178 = arith.negf %177 : vector<1x64xf32>
    %179 = math.exp %178 : vector<1x64xf32>
    %cst_30 = arith.constant 1.000000e+00 : f32
    %180 = vector.broadcast %cst_30 : f32 to vector<1x64xf32>
    %181 = arith.addf %180, %179 : vector<1x64xf32>
    %182 = arith.divf %180, %181 : vector<1x64xf32>
    %183 = vector.extract_strided_slice %182 {offsets = [0, 0], sizes = [1, 32], strides = [1, 1]} : vector<1x64xf32> to vector<1x32xf32>
    %184 = vector.extract_strided_slice %182 {offsets = [0, 32], sizes = [1, 32], strides = [1, 1]} : vector<1x64xf32> to vector<1x32xf32>
    %185 = vector.extract_strided_slice %172 {offsets = [0, 64], sizes = [1, 32], strides = [1, 1]} : vector<1x96xf32> to vector<1x32xf32>
    %186 = vector.extract_strided_slice %174 {offsets = [0, 64], sizes = [1, 32], strides = [1, 1]} : vector<1x96xf32> to vector<1x32xf32>
    %187 = arith.mulf %183, %186 : vector<1x32xf32>
    %188 = arith.addf %185, %187 : vector<1x32xf32>
    %189 = math.tanh %188 : vector<1x32xf32>
    %cst_31 = arith.constant 1.000000e+00 : f32
    %190 = vector.broadcast %cst_31 : f32 to vector<1x32xf32>
    %191 = arith.subf %190, %184 : vector<1x32xf32>
    %192 = arith.mulf %191, %189 : vector<1x32xf32>
    %193 = arith.mulf %184, %171 : vector<1x32xf32>
    %194 = arith.addf %192, %193 : vector<1x32xf32>
    %c0_32 = arith.constant 0 : index
    %c0_33 = arith.constant 0 : index
    %195 = memref.load %arg0[%c0_32, %c0_33] : memref<2x1xi32, #tpu.memory_space<smem>>
    %c1 = arith.constant 1 : index
    %c0_34 = arith.constant 0 : index
    %196 = memref.load %arg0[%c1, %c0_34] : memref<2x1xi32, #tpu.memory_space<smem>>
    %c0_35 = arith.constant 0 : index
    %c0_36 = arith.constant 0 : index
    %197 = vector.load %arg6[%c0_35, %c0_36] : memref<32x96xf32, #tpu.memory_space<vmem>>, vector<32x96xf32>
    %cst_37 = arith.constant dense<0.000000e+00> : vector<1x96xf32>
    %198 = tpu.matmul %194, %197, %cst_37 {dimension_numbers = #tpu.dot_dimension_numbers<[1], [0], [0], [1], [0, 0, 1, 1], [], []>} : vector<1x32xf32>, vector<32x96xf32>, vector<1x96xf32> -> vector<1x96xf32>
    %c0_38 = arith.constant 0 : index
    %c0_39 = arith.constant 0 : index
    %199 = vector.load %arg8[%c0_38, %c0_39] : memref<1x96xf32, #tpu.memory_space<vmem>>, vector<1x96xf32>
    %200 = arith.addf %198, %199 : vector<1x96xf32>
    %c0_40 = arith.constant 0 : index
    %c0_41 = arith.constant 0 : index
    %201 = vector.load %arg11[%c0_40, %c0_41] : memref<32x25xf32, #tpu.memory_space<vmem>>, vector<32x25xf32>
    %cst_42 = arith.constant dense<0.000000e+00> : vector<1x25xf32>
    %202 = tpu.matmul %194, %201, %cst_42 {dimension_numbers = #tpu.dot_dimension_numbers<[1], [0], [0], [1], [0, 0, 1, 1], [], []>} : vector<1x32xf32>, vector<32x25xf32>, vector<1x25xf32> -> vector<1x25xf32>
    %c0_43 = arith.constant 0 : index
    %c0_44 = arith.constant 0 : index
    %203 = vector.load %arg12[%c0_43, %c0_44] : memref<1x25xf32, #tpu.memory_space<vmem>>, vector<1x25xf32>
    %204 = arith.addf %202, %203 : vector<1x25xf32>
    %c0_45 = arith.constant 0 : index
    %c0_46 = arith.constant 0 : index
    %205 = vector.load %arg5[%c0_45, %c0_46] : memref<25x121xf32, #tpu.memory_space<vmem>>, vector<25x121xf32>
    %c0_47 = arith.constant 0 : index
    %c0_48 = arith.constant 0 : index
    %206 = vector.load %arg7[%c0_47, %c0_48] : memref<32x96xf32, #tpu.memory_space<vmem>>, vector<32x96xf32>
    %c0_49 = arith.constant 0 : index
    %c0_50 = arith.constant 0 : index
    %207 = vector.load %arg9[%c0_49, %c0_50] : memref<1x96xf32, #tpu.memory_space<vmem>>, vector<1x96xf32>
    %c0_51 = arith.constant 0 : index
    %c0_52 = arith.constant 0 : index
    %208 = vector.load %arg10[%c0_51, %c0_52] : memref<32x25xf32, #tpu.memory_space<vmem>>, vector<32x25xf32>
    %209 = tpu.iota {dimensions = array<i32: 1>} : vector<1x25xi32>
    %210 = vector.broadcast %196 : i32 to vector<1x25xi32>
    %211 = arith.cmpi eq, %209, %210 : vector<1x25xi32>
    %212 = arith.extui %211 : vector<1x25xi1> to vector<1x25xi32>
    %213 = arith.sitofp %212 : vector<1x25xi32> to vector<1x25xf32>
    %214 = vector.broadcast %195 : i32 to vector<1x25xi32>
    %215 = arith.cmpi eq, %209, %214 : vector<1x25xi32>
    %216 = arith.extui %215 : vector<1x25xi1> to vector<1x25xi32>
    %217 = arith.sitofp %216 : vector<1x25xi32> to vector<1x25xf32>
    %c0_i32 = arith.constant 0 : i32
    %218 = vector.broadcast %c0_i32 : i32 to vector<1x1xi32>
    %c0_i32_53 = arith.constant 0 : i32
    %219 = vector.broadcast %c0_i32_53 : i32 to vector<1x1xi32>
    %cst_54 = arith.constant dense<0.000000e+00> : vector<1x121xf32>
    %220 = tpu.matmul %217, %205, %cst_54 {dimension_numbers = #tpu.dot_dimension_numbers<[1], [0], [0], [1], [0, 0, 1, 1], [], []>} : vector<1x25xf32>, vector<25x121xf32>, vector<1x121xf32> -> vector<1x121xf32>
    %221 = vector.extract_strided_slice %220 {offsets = [0, 0], sizes = [1, 96], strides = [1, 1]} : vector<1x121xf32> to vector<1x96xf32>
    %222 = arith.addf %221, %200 : vector<1x96xf32>
    %223 = vector.extract_strided_slice %220 {offsets = [0, 96], sizes = [1, 25], strides = [1, 1]} : vector<1x121xf32> to vector<1x25xf32>
    %cst_55 = arith.constant dense<0.000000e+00> : vector<1x96xf32>
    %224 = tpu.matmul %194, %206, %cst_55 {dimension_numbers = #tpu.dot_dimension_numbers<[1], [0], [0], [1], [0, 0, 1, 1], [], []>} : vector<1x32xf32>, vector<32x96xf32>, vector<1x96xf32> -> vector<1x96xf32>
    %225 = arith.addf %224, %207 : vector<1x96xf32>
    %226 = vector.extract_strided_slice %222 {offsets = [0, 0], sizes = [1, 64], strides = [1, 1]} : vector<1x96xf32> to vector<1x64xf32>
    %227 = vector.extract_strided_slice %225 {offsets = [0, 0], sizes = [1, 64], strides = [1, 1]} : vector<1x96xf32> to vector<1x64xf32>
    %228 = arith.addf %226, %227 : vector<1x64xf32>
    %229 = arith.negf %228 : vector<1x64xf32>
    %230 = math.exp %229 : vector<1x64xf32>
    %cst_56 = arith.constant 1.000000e+00 : f32
    %231 = vector.broadcast %cst_56 : f32 to vector<1x64xf32>
    %232 = arith.addf %231, %230 : vector<1x64xf32>
    %233 = arith.divf %231, %232 : vector<1x64xf32>
    %234 = vector.extract_strided_slice %233 {offsets = [0, 0], sizes = [1, 32], strides = [1, 1]} : vector<1x64xf32> to vector<1x32xf32>
    %235 = vector.extract_strided_slice %233 {offsets = [0, 32], sizes = [1, 32], strides = [1, 1]} : vector<1x64xf32> to vector<1x32xf32>
    %236 = vector.extract_strided_slice %222 {offsets = [0, 64], sizes = [1, 32], strides = [1, 1]} : vector<1x96xf32> to vector<1x32xf32>
    %237 = vector.extract_strided_slice %225 {offsets = [0, 64], sizes = [1, 32], strides = [1, 1]} : vector<1x96xf32> to vector<1x32xf32>
    %238 = arith.mulf %234, %237 : vector<1x32xf32>
    %239 = arith.addf %236, %238 : vector<1x32xf32>
    %240 = math.tanh %239 : vector<1x32xf32>
    %cst_57 = arith.constant 1.000000e+00 : f32
    %241 = vector.broadcast %cst_57 : f32 to vector<1x32xf32>
    %242 = arith.subf %241, %235 : vector<1x32xf32>
    %243 = arith.mulf %242, %240 : vector<1x32xf32>
    %244 = arith.mulf %235, %194 : vector<1x32xf32>
    %245 = arith.addf %243, %244 : vector<1x32xf32>
    %cst_58 = arith.constant dense<0.000000e+00> : vector<1x25xf32>
    %246 = tpu.matmul %245, %208, %cst_58 {dimension_numbers = #tpu.dot_dimension_numbers<[1], [0], [0], [1], [0, 0, 1, 1], [], []>} : vector<1x32xf32>, vector<32x25xf32>, vector<1x25xf32> -> vector<1x25xf32>
    %247 = arith.addf %246, %223 : vector<1x25xf32>
    %248 = arith.addf %247, %204 : vector<1x25xf32>
    %c0_59 = arith.constant 0 : index
    %c0_60 = arith.constant 0 : index
    %249 = vector.load %arg13[%c0_59, %c0_60] : memref<9x25xf32, #tpu.memory_space<vmem>>, vector<1x25xf32>
    tpu.vector_store %arg13[%c0_59, %c0_60], %248 {strides = array<i32>} : memref<9x25xf32, #tpu.memory_space<vmem>>, vector<1x25xf32>,
    %cst_61 = arith.constant dense<0xFF800000> : vector<1xf32>
    %250 = vector.multi_reduction <maximumf>, %248, %cst_61 [1] : vector<1x25xf32> to vector<1xf32>
    %251 = vector.shape_cast %250 : vector<1xf32> to vector<1x1xf32>
    %252 = vector.broadcast %251 : vector<1x1xf32> to vector<1x25xf32>
    %253 = arith.cmpf oeq, %248, %252 : vector<1x25xf32>
    %254 = arith.extui %253 : vector<1x25xi1> to vector<1x25xi32>
    %255 = arith.sitofp %254 : vector<1x25xi32> to vector<1x25xf32>
    %256 = arith.mulf %255, %213 : vector<1x25xf32>
    %cst_62 = arith.constant dense<0.000000e+00> : vector<1xf32>
    %257 = vector.multi_reduction <add>, %256, %cst_62 [1] : vector<1x25xf32> to vector<1xf32>
    %258 = vector.shape_cast %257 : vector<1xf32> to vector<1x1xf32>
    %cst_63 = arith.constant 5.000000e-01 : f32
    %259 = vector.broadcast %cst_63 : f32 to vector<1x1xf32>
    %260 = arith.cmpf ogt, %258, %259 : vector<1x1xf32>
    %261 = arith.extui %260 : vector<1x1xi1> to vector<1x1xi32>
    %c0_i32_64 = arith.constant 0 : i32
    %262 = vector.broadcast %c0_i32_64 : i32 to vector<1x1xi32>
    %263 = arith.cmpi eq, %218, %262 : vector<1x1xi32>
    %c1_i32 = arith.constant 1 : i32
    %264 = vector.broadcast %c1_i32 : i32 to vector<1x1xi32>
    %265 = arith.select %263, %264, %219 : vector<1x1xi1>, vector<1x1xi32>
    %266 = arith.maxsi %218, %261 : vector<1x1xi32>
    %cst_65 = arith.constant dense<0.000000e+00> : vector<1x121xf32>
    %267 = tpu.matmul %255, %205, %cst_65 {dimension_numbers = #tpu.dot_dimension_numbers<[1], [0], [0], [1], [0, 0, 1, 1], [], []>} : vector<1x25xf32>, vector<25x121xf32>, vector<1x121xf32> -> vector<1x121xf32>
    %268 = vector.extract_strided_slice %267 {offsets = [0, 0], sizes = [1, 96], strides = [1, 1]} : vector<1x121xf32> to vector<1x96xf32>
    %269 = arith.addf %268, %200 : vector<1x96xf32>
    %270 = vector.extract_strided_slice %267 {offsets = [0, 96], sizes = [1, 25], strides = [1, 1]} : vector<1x121xf32> to vector<1x25xf32>
    %cst_66 = arith.constant dense<0.000000e+00> : vector<1x96xf32>
    %271 = tpu.matmul %245, %206, %cst_66 {dimension_numbers = #tpu.dot_dimension_numbers<[1], [0], [0], [1], [0, 0, 1, 1], [], []>} : vector<1x32xf32>, vector<32x96xf32>, vector<1x96xf32> -> vector<1x96xf32>
    %272 = arith.addf %271, %207 : vector<1x96xf32>
    %273 = vector.extract_strided_slice %269 {offsets = [0, 0], sizes = [1, 64], strides = [1, 1]} : vector<1x96xf32> to vector<1x64xf32>
    %274 = vector.extract_strided_slice %272 {offsets = [0, 0], sizes = [1, 64], strides = [1, 1]} : vector<1x96xf32> to vector<1x64xf32>
    %275 = arith.addf %273, %274 : vector<1x64xf32>
    %276 = arith.negf %275 : vector<1x64xf32>
    %277 = math.exp %276 : vector<1x64xf32>
    %cst_67 = arith.constant 1.000000e+00 : f32
    %278 = vector.broadcast %cst_67 : f32 to vector<1x64xf32>
    %279 = arith.addf %278, %277 : vector<1x64xf32>
    %280 = arith.divf %278, %279 : vector<1x64xf32>
    %281 = vector.extract_strided_slice %280 {offsets = [0, 0], sizes = [1, 32], strides = [1, 1]} : vector<1x64xf32> to vector<1x32xf32>
    %282 = vector.extract_strided_slice %280 {offsets = [0, 32], sizes = [1, 32], strides = [1, 1]} : vector<1x64xf32> to vector<1x32xf32>
    %283 = vector.extract_strided_slice %269 {offsets = [0, 64], sizes = [1, 32], strides = [1, 1]} : vector<1x96xf32> to vector<1x32xf32>
    %284 = vector.extract_strided_slice %272 {offsets = [0, 64], sizes = [1, 32], strides = [1, 1]} : vector<1x96xf32> to vector<1x32xf32>
    %285 = arith.mulf %281, %284 : vector<1x32xf32>
    %286 = arith.addf %283, %285 : vector<1x32xf32>
    %287 = math.tanh %286 : vector<1x32xf32>
    %cst_68 = arith.constant 1.000000e+00 : f32
    %288 = vector.broadcast %cst_68 : f32 to vector<1x32xf32>
    %289 = arith.subf %288, %282 : vector<1x32xf32>
    %290 = arith.mulf %289, %287 : vector<1x32xf32>
    %291 = arith.mulf %282, %245 : vector<1x32xf32>
    %292 = arith.addf %290, %291 : vector<1x32xf32>
    %cst_69 = arith.constant dense<0.000000e+00> : vector<1x25xf32>
    %293 = tpu.matmul %292, %208, %cst_69 {dimension_numbers = #tpu.dot_dimension_numbers<[1], [0], [0], [1], [0, 0, 1, 1], [], []>} : vector<1x32xf32>, vector<32x25xf32>, vector<1x25xf32> -> vector<1x25xf32>
    %294 = arith.addf %293, %270 : vector<1x25xf32>
    %295 = arith.addf %294, %204 : vector<1x25xf32>
    %c1_70 = arith.constant 1 : index
    %c0_71 = arith.constant 0 : index
    %296 = vector.load %arg13[%c1_70, %c0_71] : memref<9x25xf32, #tpu.memory_space<vmem>>, vector<1x25xf32>
    tpu.vector_store %arg13[%c1_70, %c0_71], %295 {strides = array<i32>} : memref<9x25xf32, #tpu.memory_space<vmem>>, vector<1x25xf32>,
    %cst_72 = arith.constant dense<0xFF800000> : vector<1xf32>
    %297 = vector.multi_reduction <maximumf>, %295, %cst_72 [1] : vector<1x25xf32> to vector<1xf32>
    %298 = vector.shape_cast %297 : vector<1xf32> to vector<1x1xf32>
    %299 = vector.broadcast %298 : vector<1x1xf32> to vector<1x25xf32>
    %300 = arith.cmpf oeq, %295, %299 : vector<1x25xf32>
    %301 = arith.extui %300 : vector<1x25xi1> to vector<1x25xi32>
    %302 = arith.sitofp %301 : vector<1x25xi32> to vector<1x25xf32>
    %303 = arith.mulf %302, %213 : vector<1x25xf32>
    %cst_73 = arith.constant dense<0.000000e+00> : vector<1xf32>
    %304 = vector.multi_reduction <add>, %303, %cst_73 [1] : vector<1x25xf32> to vector<1xf32>
    %305 = vector.shape_cast %304 : vector<1xf32> to vector<1x1xf32>
    %cst_74 = arith.constant 5.000000e-01 : f32
    %306 = vector.broadcast %cst_74 : f32 to vector<1x1xf32>
    %307 = arith.cmpf ogt, %305, %306 : vector<1x1xf32>
    %308 = arith.extui %307 : vector<1x1xi1> to vector<1x1xi32>
    %c0_i32_75 = arith.constant 0 : i32
    %309 = vector.broadcast %c0_i32_75 : i32 to vector<1x1xi32>
    %310 = arith.cmpi eq, %266, %309 : vector<1x1xi32>
    %c2_i32 = arith.constant 2 : i32
    %311 = vector.broadcast %c2_i32 : i32 to vector<1x1xi32>
    %312 = arith.select %310, %311, %265 : vector<1x1xi1>, vector<1x1xi32>
    %313 = arith.maxsi %266, %308 : vector<1x1xi32>
    %cst_76 = arith.constant dense<0.000000e+00> : vector<1x121xf32>
    %314 = tpu.matmul %302, %205, %cst_76 {dimension_numbers = #tpu.dot_dimension_numbers<[1], [0], [0], [1], [0, 0, 1, 1], [], []>} : vector<1x25xf32>, vector<25x121xf32>, vector<1x121xf32> -> vector<1x121xf32>
    %315 = vector.extract_strided_slice %314 {offsets = [0, 0], sizes = [1, 96], strides = [1, 1]} : vector<1x121xf32> to vector<1x96xf32>
    %316 = arith.addf %315, %200 : vector<1x96xf32>
    %317 = vector.extract_strided_slice %314 {offsets = [0, 96], sizes = [1, 25], strides = [1, 1]} : vector<1x121xf32> to vector<1x25xf32>
    %cst_77 = arith.constant dense<0.000000e+00> : vector<1x96xf32>
    %318 = tpu.matmul %292, %206, %cst_77 {dimension_numbers = #tpu.dot_dimension_numbers<[1], [0], [0], [1], [0, 0, 1, 1], [], []>} : vector<1x32xf32>, vector<32x96xf32>, vector<1x96xf32> -> vector<1x96xf32>
    %319 = arith.addf %318, %207 : vector<1x96xf32>
    %320 = vector.extract_strided_slice %316 {offsets = [0, 0], sizes = [1, 64], strides = [1, 1]} : vector<1x96xf32> to vector<1x64xf32>
    %321 = vector.extract_strided_slice %319 {offsets = [0, 0], sizes = [1, 64], strides = [1, 1]} : vector<1x96xf32> to vector<1x64xf32>
    %322 = arith.addf %320, %321 : vector<1x64xf32>
    %323 = arith.negf %322 : vector<1x64xf32>
    %324 = math.exp %323 : vector<1x64xf32>
    %cst_78 = arith.constant 1.000000e+00 : f32
    %325 = vector.broadcast %cst_78 : f32 to vector<1x64xf32>
    %326 = arith.addf %325, %324 : vector<1x64xf32>
    %327 = arith.divf %325, %326 : vector<1x64xf32>
    %328 = vector.extract_strided_slice %327 {offsets = [0, 0], sizes = [1, 32], strides = [1, 1]} : vector<1x64xf32> to vector<1x32xf32>
    %329 = vector.extract_strided_slice %327 {offsets = [0, 32], sizes = [1, 32], strides = [1, 1]} : vector<1x64xf32> to vector<1x32xf32>
    %330 = vector.extract_strided_slice %316 {offsets = [0, 64], sizes = [1, 32], strides = [1, 1]} : vector<1x96xf32> to vector<1x32xf32>
    %331 = vector.extract_strided_slice %319 {offsets = [0, 64], sizes = [1, 32], strides = [1, 1]} : vector<1x96xf32> to vector<1x32xf32>
    %332 = arith.mulf %328, %331 : vector<1x32xf32>
    %333 = arith.addf %330, %332 : vector<1x32xf32>
    %334 = math.tanh %333 : vector<1x32xf32>
    %cst_79 = arith.constant 1.000000e+00 : f32
    %335 = vector.broadcast %cst_79 : f32 to vector<1x32xf32>
    %336 = arith.subf %335, %329 : vector<1x32xf32>
    %337 = arith.mulf %336, %334 : vector<1x32xf32>
    %338 = arith.mulf %329, %292 : vector<1x32xf32>
    %339 = arith.addf %337, %338 : vector<1x32xf32>
    %cst_80 = arith.constant dense<0.000000e+00> : vector<1x25xf32>
    %340 = tpu.matmul %339, %208, %cst_80 {dimension_numbers = #tpu.dot_dimension_numbers<[1], [0], [0], [1], [0, 0, 1, 1], [], []>} : vector<1x32xf32>, vector<32x25xf32>, vector<1x25xf32> -> vector<1x25xf32>
    %341 = arith.addf %340, %317 : vector<1x25xf32>
    %342 = arith.addf %341, %204 : vector<1x25xf32>
    %c2 = arith.constant 2 : index
    %c0_81 = arith.constant 0 : index
    %343 = vector.load %arg13[%c2, %c0_81] : memref<9x25xf32, #tpu.memory_space<vmem>>, vector<1x25xf32>
    tpu.vector_store %arg13[%c2, %c0_81], %342 {strides = array<i32>} : memref<9x25xf32, #tpu.memory_space<vmem>>, vector<1x25xf32>,
    %cst_82 = arith.constant dense<0xFF800000> : vector<1xf32>
    %344 = vector.multi_reduction <maximumf>, %342, %cst_82 [1] : vector<1x25xf32> to vector<1xf32>
    %345 = vector.shape_cast %344 : vector<1xf32> to vector<1x1xf32>
    %346 = vector.broadcast %345 : vector<1x1xf32> to vector<1x25xf32>
    %347 = arith.cmpf oeq, %342, %346 : vector<1x25xf32>
    %348 = arith.extui %347 : vector<1x25xi1> to vector<1x25xi32>
    %349 = arith.sitofp %348 : vector<1x25xi32> to vector<1x25xf32>
    %350 = arith.mulf %349, %213 : vector<1x25xf32>
    %cst_83 = arith.constant dense<0.000000e+00> : vector<1xf32>
    %351 = vector.multi_reduction <add>, %350, %cst_83 [1] : vector<1x25xf32> to vector<1xf32>
    %352 = vector.shape_cast %351 : vector<1xf32> to vector<1x1xf32>
    %cst_84 = arith.constant 5.000000e-01 : f32
    %353 = vector.broadcast %cst_84 : f32 to vector<1x1xf32>
    %354 = arith.cmpf ogt, %352, %353 : vector<1x1xf32>
    %355 = arith.extui %354 : vector<1x1xi1> to vector<1x1xi32>
    %c0_i32_85 = arith.constant 0 : i32
    %356 = vector.broadcast %c0_i32_85 : i32 to vector<1x1xi32>
    %357 = arith.cmpi eq, %313, %356 : vector<1x1xi32>
    %c3_i32 = arith.constant 3 : i32
    %358 = vector.broadcast %c3_i32 : i32 to vector<1x1xi32>
    %359 = arith.select %357, %358, %312 : vector<1x1xi1>, vector<1x1xi32>
    %360 = arith.maxsi %313, %355 : vector<1x1xi32>
    %cst_86 = arith.constant dense<0.000000e+00> : vector<1x121xf32>
    %361 = tpu.matmul %349, %205, %cst_86 {dimension_numbers = #tpu.dot_dimension_numbers<[1], [0], [0], [1], [0, 0, 1, 1], [], []>} : vector<1x25xf32>, vector<25x121xf32>, vector<1x121xf32> -> vector<1x121xf32>
    %362 = vector.extract_strided_slice %361 {offsets = [0, 0], sizes = [1, 96], strides = [1, 1]} : vector<1x121xf32> to vector<1x96xf32>
    %363 = arith.addf %362, %200 : vector<1x96xf32>
    %364 = vector.extract_strided_slice %361 {offsets = [0, 96], sizes = [1, 25], strides = [1, 1]} : vector<1x121xf32> to vector<1x25xf32>
    %cst_87 = arith.constant dense<0.000000e+00> : vector<1x96xf32>
    %365 = tpu.matmul %339, %206, %cst_87 {dimension_numbers = #tpu.dot_dimension_numbers<[1], [0], [0], [1], [0, 0, 1, 1], [], []>} : vector<1x32xf32>, vector<32x96xf32>, vector<1x96xf32> -> vector<1x96xf32>
    %366 = arith.addf %365, %207 : vector<1x96xf32>
    %367 = vector.extract_strided_slice %363 {offsets = [0, 0], sizes = [1, 64], strides = [1, 1]} : vector<1x96xf32> to vector<1x64xf32>
    %368 = vector.extract_strided_slice %366 {offsets = [0, 0], sizes = [1, 64], strides = [1, 1]} : vector<1x96xf32> to vector<1x64xf32>
    %369 = arith.addf %367, %368 : vector<1x64xf32>
    %370 = arith.negf %369 : vector<1x64xf32>
    %371 = math.exp %370 : vector<1x64xf32>
    %cst_88 = arith.constant 1.000000e+00 : f32
    %372 = vector.broadcast %cst_88 : f32 to vector<1x64xf32>
    %373 = arith.addf %372, %371 : vector<1x64xf32>
    %374 = arith.divf %372, %373 : vector<1x64xf32>
    %375 = vector.extract_strided_slice %374 {offsets = [0, 0], sizes = [1, 32], strides = [1, 1]} : vector<1x64xf32> to vector<1x32xf32>
    %376 = vector.extract_strided_slice %374 {offsets = [0, 32], sizes = [1, 32], strides = [1, 1]} : vector<1x64xf32> to vector<1x32xf32>
    %377 = vector.extract_strided_slice %363 {offsets = [0, 64], sizes = [1, 32], strides = [1, 1]} : vector<1x96xf32> to vector<1x32xf32>
    %378 = vector.extract_strided_slice %366 {offsets = [0, 64], sizes = [1, 32], strides = [1, 1]} : vector<1x96xf32> to vector<1x32xf32>
    %379 = arith.mulf %375, %378 : vector<1x32xf32>
    %380 = arith.addf %377, %379 : vector<1x32xf32>
    %381 = math.tanh %380 : vector<1x32xf32>
    %cst_89 = arith.constant 1.000000e+00 : f32
    %382 = vector.broadcast %cst_89 : f32 to vector<1x32xf32>
    %383 = arith.subf %382, %376 : vector<1x32xf32>
    %384 = arith.mulf %383, %381 : vector<1x32xf32>
    %385 = arith.mulf %376, %339 : vector<1x32xf32>
    %386 = arith.addf %384, %385 : vector<1x32xf32>
    %cst_90 = arith.constant dense<0.000000e+00> : vector<1x25xf32>
    %387 = tpu.matmul %386, %208, %cst_90 {dimension_numbers = #tpu.dot_dimension_numbers<[1], [0], [0], [1], [0, 0, 1, 1], [], []>} : vector<1x32xf32>, vector<32x25xf32>, vector<1x25xf32> -> vector<1x25xf32>
    %388 = arith.addf %387, %364 : vector<1x25xf32>
    %389 = arith.addf %388, %204 : vector<1x25xf32>
    %c3 = arith.constant 3 : index
    %c0_91 = arith.constant 0 : index
    %390 = vector.load %arg13[%c3, %c0_91] : memref<9x25xf32, #tpu.memory_space<vmem>>, vector<1x25xf32>
    tpu.vector_store %arg13[%c3, %c0_91], %389 {strides = array<i32>} : memref<9x25xf32, #tpu.memory_space<vmem>>, vector<1x25xf32>,
    %cst_92 = arith.constant dense<0xFF800000> : vector<1xf32>
    %391 = vector.multi_reduction <maximumf>, %389, %cst_92 [1] : vector<1x25xf32> to vector<1xf32>
    %392 = vector.shape_cast %391 : vector<1xf32> to vector<1x1xf32>
    %393 = vector.broadcast %392 : vector<1x1xf32> to vector<1x25xf32>
    %394 = arith.cmpf oeq, %389, %393 : vector<1x25xf32>
    %395 = arith.extui %394 : vector<1x25xi1> to vector<1x25xi32>
    %396 = arith.sitofp %395 : vector<1x25xi32> to vector<1x25xf32>
    %397 = arith.mulf %396, %213 : vector<1x25xf32>
    %cst_93 = arith.constant dense<0.000000e+00> : vector<1xf32>
    %398 = vector.multi_reduction <add>, %397, %cst_93 [1] : vector<1x25xf32> to vector<1xf32>
    %399 = vector.shape_cast %398 : vector<1xf32> to vector<1x1xf32>
    %cst_94 = arith.constant 5.000000e-01 : f32
    %400 = vector.broadcast %cst_94 : f32 to vector<1x1xf32>
    %401 = arith.cmpf ogt, %399, %400 : vector<1x1xf32>
    %402 = arith.extui %401 : vector<1x1xi1> to vector<1x1xi32>
    %c0_i32_95 = arith.constant 0 : i32
    %403 = vector.broadcast %c0_i32_95 : i32 to vector<1x1xi32>
    %404 = arith.cmpi eq, %360, %403 : vector<1x1xi32>
    %c4_i32 = arith.constant 4 : i32
    %405 = vector.broadcast %c4_i32 : i32 to vector<1x1xi32>
    %406 = arith.select %404, %405, %359 : vector<1x1xi1>, vector<1x1xi32>
    %407 = arith.maxsi %360, %402 : vector<1x1xi32>
    %cst_96 = arith.constant dense<0.000000e+00> : vector<1x121xf32>
    %408 = tpu.matmul %396, %205, %cst_96 {dimension_numbers = #tpu.dot_dimension_numbers<[1], [0], [0], [1], [0, 0, 1, 1], [], []>} : vector<1x25xf32>, vector<25x121xf32>, vector<1x121xf32> -> vector<1x121xf32>
    %409 = vector.extract_strided_slice %408 {offsets = [0, 0], sizes = [1, 96], strides = [1, 1]} : vector<1x121xf32> to vector<1x96xf32>
    %410 = arith.addf %409, %200 : vector<1x96xf32>
    %411 = vector.extract_strided_slice %408 {offsets = [0, 96], sizes = [1, 25], strides = [1, 1]} : vector<1x121xf32> to vector<1x25xf32>
    %cst_97 = arith.constant dense<0.000000e+00> : vector<1x96xf32>
    %412 = tpu.matmul %386, %206, %cst_97 {dimension_numbers = #tpu.dot_dimension_numbers<[1], [0], [0], [1], [0, 0, 1, 1], [], []>} : vector<1x32xf32>, vector<32x96xf32>, vector<1x96xf32> -> vector<1x96xf32>
    %413 = arith.addf %412, %207 : vector<1x96xf32>
    %414 = vector.extract_strided_slice %410 {offsets = [0, 0], sizes = [1, 64], strides = [1, 1]} : vector<1x96xf32> to vector<1x64xf32>
    %415 = vector.extract_strided_slice %413 {offsets = [0, 0], sizes = [1, 64], strides = [1, 1]} : vector<1x96xf32> to vector<1x64xf32>
    %416 = arith.addf %414, %415 : vector<1x64xf32>
    %417 = arith.negf %416 : vector<1x64xf32>
    %418 = math.exp %417 : vector<1x64xf32>
    %cst_98 = arith.constant 1.000000e+00 : f32
    %419 = vector.broadcast %cst_98 : f32 to vector<1x64xf32>
    %420 = arith.addf %419, %418 : vector<1x64xf32>
    %421 = arith.divf %419, %420 : vector<1x64xf32>
    %422 = vector.extract_strided_slice %421 {offsets = [0, 0], sizes = [1, 32], strides = [1, 1]} : vector<1x64xf32> to vector<1x32xf32>
    %423 = vector.extract_strided_slice %421 {offsets = [0, 32], sizes = [1, 32], strides = [1, 1]} : vector<1x64xf32> to vector<1x32xf32>
    %424 = vector.extract_strided_slice %410 {offsets = [0, 64], sizes = [1, 32], strides = [1, 1]} : vector<1x96xf32> to vector<1x32xf32>
    %425 = vector.extract_strided_slice %413 {offsets = [0, 64], sizes = [1, 32], strides = [1, 1]} : vector<1x96xf32> to vector<1x32xf32>
    %426 = arith.mulf %422, %425 : vector<1x32xf32>
    %427 = arith.addf %424, %426 : vector<1x32xf32>
    %428 = math.tanh %427 : vector<1x32xf32>
    %cst_99 = arith.constant 1.000000e+00 : f32
    %429 = vector.broadcast %cst_99 : f32 to vector<1x32xf32>
    %430 = arith.subf %429, %423 : vector<1x32xf32>
    %431 = arith.mulf %430, %428 : vector<1x32xf32>
    %432 = arith.mulf %423, %386 : vector<1x32xf32>
    %433 = arith.addf %431, %432 : vector<1x32xf32>
    %cst_100 = arith.constant dense<0.000000e+00> : vector<1x25xf32>
    %434 = tpu.matmul %433, %208, %cst_100 {dimension_numbers = #tpu.dot_dimension_numbers<[1], [0], [0], [1], [0, 0, 1, 1], [], []>} : vector<1x32xf32>, vector<32x25xf32>, vector<1x25xf32> -> vector<1x25xf32>
    %435 = arith.addf %434, %411 : vector<1x25xf32>
    %436 = arith.addf %435, %204 : vector<1x25xf32>
    %c4 = arith.constant 4 : index
    %c0_101 = arith.constant 0 : index
    %437 = vector.load %arg13[%c4, %c0_101] : memref<9x25xf32, #tpu.memory_space<vmem>>, vector<1x25xf32>
    tpu.vector_store %arg13[%c4, %c0_101], %436 {strides = array<i32>} : memref<9x25xf32, #tpu.memory_space<vmem>>, vector<1x25xf32>,
    %cst_102 = arith.constant dense<0xFF800000> : vector<1xf32>
    %438 = vector.multi_reduction <maximumf>, %436, %cst_102 [1] : vector<1x25xf32> to vector<1xf32>
    %439 = vector.shape_cast %438 : vector<1xf32> to vector<1x1xf32>
    %440 = vector.broadcast %439 : vector<1x1xf32> to vector<1x25xf32>
    %441 = arith.cmpf oeq, %436, %440 : vector<1x25xf32>
    %442 = arith.extui %441 : vector<1x25xi1> to vector<1x25xi32>
    %443 = arith.sitofp %442 : vector<1x25xi32> to vector<1x25xf32>
    %444 = arith.mulf %443, %213 : vector<1x25xf32>
    %cst_103 = arith.constant dense<0.000000e+00> : vector<1xf32>
    %445 = vector.multi_reduction <add>, %444, %cst_103 [1] : vector<1x25xf32> to vector<1xf32>
    %446 = vector.shape_cast %445 : vector<1xf32> to vector<1x1xf32>
    %cst_104 = arith.constant 5.000000e-01 : f32
    %447 = vector.broadcast %cst_104 : f32 to vector<1x1xf32>
    %448 = arith.cmpf ogt, %446, %447 : vector<1x1xf32>
    %449 = arith.extui %448 : vector<1x1xi1> to vector<1x1xi32>
    %c0_i32_105 = arith.constant 0 : i32
    %450 = vector.broadcast %c0_i32_105 : i32 to vector<1x1xi32>
    %451 = arith.cmpi eq, %407, %450 : vector<1x1xi32>
    %c5_i32 = arith.constant 5 : i32
    %452 = vector.broadcast %c5_i32 : i32 to vector<1x1xi32>
    %453 = arith.select %451, %452, %406 : vector<1x1xi1>, vector<1x1xi32>
    %454 = arith.maxsi %407, %449 : vector<1x1xi32>
    %cst_106 = arith.constant dense<0.000000e+00> : vector<1x121xf32>
    %455 = tpu.matmul %443, %205, %cst_106 {dimension_numbers = #tpu.dot_dimension_numbers<[1], [0], [0], [1], [0, 0, 1, 1], [], []>} : vector<1x25xf32>, vector<25x121xf32>, vector<1x121xf32> -> vector<1x121xf32>
    %456 = vector.extract_strided_slice %455 {offsets = [0, 0], sizes = [1, 96], strides = [1, 1]} : vector<1x121xf32> to vector<1x96xf32>
    %457 = arith.addf %456, %200 : vector<1x96xf32>
    %458 = vector.extract_strided_slice %455 {offsets = [0, 96], sizes = [1, 25], strides = [1, 1]} : vector<1x121xf32> to vector<1x25xf32>
    %cst_107 = arith.constant dense<0.000000e+00> : vector<1x96xf32>
    %459 = tpu.matmul %433, %206, %cst_107 {dimension_numbers = #tpu.dot_dimension_numbers<[1], [0], [0], [1], [0, 0, 1, 1], [], []>} : vector<1x32xf32>, vector<32x96xf32>, vector<1x96xf32> -> vector<1x96xf32>
    %460 = arith.addf %459, %207 : vector<1x96xf32>
    %461 = vector.extract_strided_slice %457 {offsets = [0, 0], sizes = [1, 64], strides = [1, 1]} : vector<1x96xf32> to vector<1x64xf32>
    %462 = vector.extract_strided_slice %460 {offsets = [0, 0], sizes = [1, 64], strides = [1, 1]} : vector<1x96xf32> to vector<1x64xf32>
    %463 = arith.addf %461, %462 : vector<1x64xf32>
    %464 = arith.negf %463 : vector<1x64xf32>
    %465 = math.exp %464 : vector<1x64xf32>
    %cst_108 = arith.constant 1.000000e+00 : f32
    %466 = vector.broadcast %cst_108 : f32 to vector<1x64xf32>
    %467 = arith.addf %466, %465 : vector<1x64xf32>
    %468 = arith.divf %466, %467 : vector<1x64xf32>
    %469 = vector.extract_strided_slice %468 {offsets = [0, 0], sizes = [1, 32], strides = [1, 1]} : vector<1x64xf32> to vector<1x32xf32>
    %470 = vector.extract_strided_slice %468 {offsets = [0, 32], sizes = [1, 32], strides = [1, 1]} : vector<1x64xf32> to vector<1x32xf32>
    %471 = vector.extract_strided_slice %457 {offsets = [0, 64], sizes = [1, 32], strides = [1, 1]} : vector<1x96xf32> to vector<1x32xf32>
    %472 = vector.extract_strided_slice %460 {offsets = [0, 64], sizes = [1, 32], strides = [1, 1]} : vector<1x96xf32> to vector<1x32xf32>
    %473 = arith.mulf %469, %472 : vector<1x32xf32>
    %474 = arith.addf %471, %473 : vector<1x32xf32>
    %475 = math.tanh %474 : vector<1x32xf32>
    %cst_109 = arith.constant 1.000000e+00 : f32
    %476 = vector.broadcast %cst_109 : f32 to vector<1x32xf32>
    %477 = arith.subf %476, %470 : vector<1x32xf32>
    %478 = arith.mulf %477, %475 : vector<1x32xf32>
    %479 = arith.mulf %470, %433 : vector<1x32xf32>
    %480 = arith.addf %478, %479 : vector<1x32xf32>
    %cst_110 = arith.constant dense<0.000000e+00> : vector<1x25xf32>
    %481 = tpu.matmul %480, %208, %cst_110 {dimension_numbers = #tpu.dot_dimension_numbers<[1], [0], [0], [1], [0, 0, 1, 1], [], []>} : vector<1x32xf32>, vector<32x25xf32>, vector<1x25xf32> -> vector<1x25xf32>
    %482 = arith.addf %481, %458 : vector<1x25xf32>
    %483 = arith.addf %482, %204 : vector<1x25xf32>
    %c5 = arith.constant 5 : index
    %c0_111 = arith.constant 0 : index
    %484 = vector.load %arg13[%c5, %c0_111] : memref<9x25xf32, #tpu.memory_space<vmem>>, vector<1x25xf32>
    tpu.vector_store %arg13[%c5, %c0_111], %483 {strides = array<i32>} : memref<9x25xf32, #tpu.memory_space<vmem>>, vector<1x25xf32>,
    %cst_112 = arith.constant dense<0xFF800000> : vector<1xf32>
    %485 = vector.multi_reduction <maximumf>, %483, %cst_112 [1] : vector<1x25xf32> to vector<1xf32>
    %486 = vector.shape_cast %485 : vector<1xf32> to vector<1x1xf32>
    %487 = vector.broadcast %486 : vector<1x1xf32> to vector<1x25xf32>
    %488 = arith.cmpf oeq, %483, %487 : vector<1x25xf32>
    %489 = arith.extui %488 : vector<1x25xi1> to vector<1x25xi32>
    %490 = arith.sitofp %489 : vector<1x25xi32> to vector<1x25xf32>
    %491 = arith.mulf %490, %213 : vector<1x25xf32>
    %cst_113 = arith.constant dense<0.000000e+00> : vector<1xf32>
    %492 = vector.multi_reduction <add>, %491, %cst_113 [1] : vector<1x25xf32> to vector<1xf32>
    %493 = vector.shape_cast %492 : vector<1xf32> to vector<1x1xf32>
    %cst_114 = arith.constant 5.000000e-01 : f32
    %494 = vector.broadcast %cst_114 : f32 to vector<1x1xf32>
    %495 = arith.cmpf ogt, %493, %494 : vector<1x1xf32>
    %496 = arith.extui %495 : vector<1x1xi1> to vector<1x1xi32>
    %c0_i32_115 = arith.constant 0 : i32
    %497 = vector.broadcast %c0_i32_115 : i32 to vector<1x1xi32>
    %498 = arith.cmpi eq, %454, %497 : vector<1x1xi32>
    %c6_i32 = arith.constant 6 : i32
    %499 = vector.broadcast %c6_i32 : i32 to vector<1x1xi32>
    %500 = arith.select %498, %499, %453 : vector<1x1xi1>, vector<1x1xi32>
    %501 = arith.maxsi %454, %496 : vector<1x1xi32>
    %cst_116 = arith.constant dense<0.000000e+00> : vector<1x121xf32>
    %502 = tpu.matmul %490, %205, %cst_116 {dimension_numbers = #tpu.dot_dimension_numbers<[1], [0], [0], [1], [0, 0, 1, 1], [], []>} : vector<1x25xf32>, vector<25x121xf32>, vector<1x121xf32> -> vector<1x121xf32>
    %503 = vector.extract_strided_slice %502 {offsets = [0, 0], sizes = [1, 96], strides = [1, 1]} : vector<1x121xf32> to vector<1x96xf32>
    %504 = arith.addf %503, %200 : vector<1x96xf32>
    %505 = vector.extract_strided_slice %502 {offsets = [0, 96], sizes = [1, 25], strides = [1, 1]} : vector<1x121xf32> to vector<1x25xf32>
    %cst_117 = arith.constant dense<0.000000e+00> : vector<1x96xf32>
    %506 = tpu.matmul %480, %206, %cst_117 {dimension_numbers = #tpu.dot_dimension_numbers<[1], [0], [0], [1], [0, 0, 1, 1], [], []>} : vector<1x32xf32>, vector<32x96xf32>, vector<1x96xf32> -> vector<1x96xf32>
    %507 = arith.addf %506, %207 : vector<1x96xf32>
    %508 = vector.extract_strided_slice %504 {offsets = [0, 0], sizes = [1, 64], strides = [1, 1]} : vector<1x96xf32> to vector<1x64xf32>
    %509 = vector.extract_strided_slice %507 {offsets = [0, 0], sizes = [1, 64], strides = [1, 1]} : vector<1x96xf32> to vector<1x64xf32>
    %510 = arith.addf %508, %509 : vector<1x64xf32>
    %511 = arith.negf %510 : vector<1x64xf32>
    %512 = math.exp %511 : vector<1x64xf32>
    %cst_118 = arith.constant 1.000000e+00 : f32
    %513 = vector.broadcast %cst_118 : f32 to vector<1x64xf32>
    %514 = arith.addf %513, %512 : vector<1x64xf32>
    %515 = arith.divf %513, %514 : vector<1x64xf32>
    %516 = vector.extract_strided_slice %515 {offsets = [0, 0], sizes = [1, 32], strides = [1, 1]} : vector<1x64xf32> to vector<1x32xf32>
    %517 = vector.extract_strided_slice %515 {offsets = [0, 32], sizes = [1, 32], strides = [1, 1]} : vector<1x64xf32> to vector<1x32xf32>
    %518 = vector.extract_strided_slice %504 {offsets = [0, 64], sizes = [1, 32], strides = [1, 1]} : vector<1x96xf32> to vector<1x32xf32>
    %519 = vector.extract_strided_slice %507 {offsets = [0, 64], sizes = [1, 32], strides = [1, 1]} : vector<1x96xf32> to vector<1x32xf32>
    %520 = arith.mulf %516, %519 : vector<1x32xf32>
    %521 = arith.addf %518, %520 : vector<1x32xf32>
    %522 = math.tanh %521 : vector<1x32xf32>
    %cst_119 = arith.constant 1.000000e+00 : f32
    %523 = vector.broadcast %cst_119 : f32 to vector<1x32xf32>
    %524 = arith.subf %523, %517 : vector<1x32xf32>
    %525 = arith.mulf %524, %522 : vector<1x32xf32>
    %526 = arith.mulf %517, %480 : vector<1x32xf32>
    %527 = arith.addf %525, %526 : vector<1x32xf32>
    %cst_120 = arith.constant dense<0.000000e+00> : vector<1x25xf32>
    %528 = tpu.matmul %527, %208, %cst_120 {dimension_numbers = #tpu.dot_dimension_numbers<[1], [0], [0], [1], [0, 0, 1, 1], [], []>} : vector<1x32xf32>, vector<32x25xf32>, vector<1x25xf32> -> vector<1x25xf32>
    %529 = arith.addf %528, %505 : vector<1x25xf32>
    %530 = arith.addf %529, %204 : vector<1x25xf32>
    %c6 = arith.constant 6 : index
    %c0_121 = arith.constant 0 : index
    %531 = vector.load %arg13[%c6, %c0_121] : memref<9x25xf32, #tpu.memory_space<vmem>>, vector<1x25xf32>
    tpu.vector_store %arg13[%c6, %c0_121], %530 {strides = array<i32>} : memref<9x25xf32, #tpu.memory_space<vmem>>, vector<1x25xf32>,
    %cst_122 = arith.constant dense<0xFF800000> : vector<1xf32>
    %532 = vector.multi_reduction <maximumf>, %530, %cst_122 [1] : vector<1x25xf32> to vector<1xf32>
    %533 = vector.shape_cast %532 : vector<1xf32> to vector<1x1xf32>
    %534 = vector.broadcast %533 : vector<1x1xf32> to vector<1x25xf32>
    %535 = arith.cmpf oeq, %530, %534 : vector<1x25xf32>
    %536 = arith.extui %535 : vector<1x25xi1> to vector<1x25xi32>
    %537 = arith.sitofp %536 : vector<1x25xi32> to vector<1x25xf32>
    %538 = arith.mulf %537, %213 : vector<1x25xf32>
    %cst_123 = arith.constant dense<0.000000e+00> : vector<1xf32>
    %539 = vector.multi_reduction <add>, %538, %cst_123 [1] : vector<1x25xf32> to vector<1xf32>
    %540 = vector.shape_cast %539 : vector<1xf32> to vector<1x1xf32>
    %cst_124 = arith.constant 5.000000e-01 : f32
    %541 = vector.broadcast %cst_124 : f32 to vector<1x1xf32>
    %542 = arith.cmpf ogt, %540, %541 : vector<1x1xf32>
    %543 = arith.extui %542 : vector<1x1xi1> to vector<1x1xi32>
    %c0_i32_125 = arith.constant 0 : i32
    %544 = vector.broadcast %c0_i32_125 : i32 to vector<1x1xi32>
    %545 = arith.cmpi eq, %501, %544 : vector<1x1xi32>
    %c7_i32 = arith.constant 7 : i32
    %546 = vector.broadcast %c7_i32 : i32 to vector<1x1xi32>
    %547 = arith.select %545, %546, %500 : vector<1x1xi1>, vector<1x1xi32>
    %548 = arith.maxsi %501, %543 : vector<1x1xi32>
    %cst_126 = arith.constant dense<0.000000e+00> : vector<1x121xf32>
    %549 = tpu.matmul %537, %205, %cst_126 {dimension_numbers = #tpu.dot_dimension_numbers<[1], [0], [0], [1], [0, 0, 1, 1], [], []>} : vector<1x25xf32>, vector<25x121xf32>, vector<1x121xf32> -> vector<1x121xf32>
    %550 = vector.extract_strided_slice %549 {offsets = [0, 0], sizes = [1, 96], strides = [1, 1]} : vector<1x121xf32> to vector<1x96xf32>
    %551 = arith.addf %550, %200 : vector<1x96xf32>
    %552 = vector.extract_strided_slice %549 {offsets = [0, 96], sizes = [1, 25], strides = [1, 1]} : vector<1x121xf32> to vector<1x25xf32>
    %cst_127 = arith.constant dense<0.000000e+00> : vector<1x96xf32>
    %553 = tpu.matmul %527, %206, %cst_127 {dimension_numbers = #tpu.dot_dimension_numbers<[1], [0], [0], [1], [0, 0, 1, 1], [], []>} : vector<1x32xf32>, vector<32x96xf32>, vector<1x96xf32> -> vector<1x96xf32>
    %554 = arith.addf %553, %207 : vector<1x96xf32>
    %555 = vector.extract_strided_slice %551 {offsets = [0, 0], sizes = [1, 64], strides = [1, 1]} : vector<1x96xf32> to vector<1x64xf32>
    %556 = vector.extract_strided_slice %554 {offsets = [0, 0], sizes = [1, 64], strides = [1, 1]} : vector<1x96xf32> to vector<1x64xf32>
    %557 = arith.addf %555, %556 : vector<1x64xf32>
    %558 = arith.negf %557 : vector<1x64xf32>
    %559 = math.exp %558 : vector<1x64xf32>
    %cst_128 = arith.constant 1.000000e+00 : f32
    %560 = vector.broadcast %cst_128 : f32 to vector<1x64xf32>
    %561 = arith.addf %560, %559 : vector<1x64xf32>
    %562 = arith.divf %560, %561 : vector<1x64xf32>
    %563 = vector.extract_strided_slice %562 {offsets = [0, 0], sizes = [1, 32], strides = [1, 1]} : vector<1x64xf32> to vector<1x32xf32>
    %564 = vector.extract_strided_slice %562 {offsets = [0, 32], sizes = [1, 32], strides = [1, 1]} : vector<1x64xf32> to vector<1x32xf32>
    %565 = vector.extract_strided_slice %551 {offsets = [0, 64], sizes = [1, 32], strides = [1, 1]} : vector<1x96xf32> to vector<1x32xf32>
    %566 = vector.extract_strided_slice %554 {offsets = [0, 64], sizes = [1, 32], strides = [1, 1]} : vector<1x96xf32> to vector<1x32xf32>
    %567 = arith.mulf %563, %566 : vector<1x32xf32>
    %568 = arith.addf %565, %567 : vector<1x32xf32>
    %569 = math.tanh %568 : vector<1x32xf32>
    %cst_129 = arith.constant 1.000000e+00 : f32
    %570 = vector.broadcast %cst_129 : f32 to vector<1x32xf32>
    %571 = arith.subf %570, %564 : vector<1x32xf32>
    %572 = arith.mulf %571, %569 : vector<1x32xf32>
    %573 = arith.mulf %564, %527 : vector<1x32xf32>
    %574 = arith.addf %572, %573 : vector<1x32xf32>
    %cst_130 = arith.constant dense<0.000000e+00> : vector<1x25xf32>
    %575 = tpu.matmul %574, %208, %cst_130 {dimension_numbers = #tpu.dot_dimension_numbers<[1], [0], [0], [1], [0, 0, 1, 1], [], []>} : vector<1x32xf32>, vector<32x25xf32>, vector<1x25xf32> -> vector<1x25xf32>
    %576 = arith.addf %575, %552 : vector<1x25xf32>
    %577 = arith.addf %576, %204 : vector<1x25xf32>
    %c7 = arith.constant 7 : index
    %c0_131 = arith.constant 0 : index
    %578 = vector.load %arg13[%c7, %c0_131] : memref<9x25xf32, #tpu.memory_space<vmem>>, vector<1x25xf32>
    tpu.vector_store %arg13[%c7, %c0_131], %577 {strides = array<i32>} : memref<9x25xf32, #tpu.memory_space<vmem>>, vector<1x25xf32>,
    %cst_132 = arith.constant dense<0xFF800000> : vector<1xf32>
    %579 = vector.multi_reduction <maximumf>, %577, %cst_132 [1] : vector<1x25xf32> to vector<1xf32>
    %580 = vector.shape_cast %579 : vector<1xf32> to vector<1x1xf32>
    %581 = vector.broadcast %580 : vector<1x1xf32> to vector<1x25xf32>
    %582 = arith.cmpf oeq, %577, %581 : vector<1x25xf32>
    %583 = arith.extui %582 : vector<1x25xi1> to vector<1x25xi32>
    %584 = arith.sitofp %583 : vector<1x25xi32> to vector<1x25xf32>
    %585 = arith.mulf %584, %213 : vector<1x25xf32>
    %cst_133 = arith.constant dense<0.000000e+00> : vector<1xf32>
    %586 = vector.multi_reduction <add>, %585, %cst_133 [1] : vector<1x25xf32> to vector<1xf32>
    %587 = vector.shape_cast %586 : vector<1xf32> to vector<1x1xf32>
    %cst_134 = arith.constant 5.000000e-01 : f32
    %588 = vector.broadcast %cst_134 : f32 to vector<1x1xf32>
    %589 = arith.cmpf ogt, %587, %588 : vector<1x1xf32>
    %590 = arith.extui %589 : vector<1x1xi1> to vector<1x1xi32>
    %c0_i32_135 = arith.constant 0 : i32
    %591 = vector.broadcast %c0_i32_135 : i32 to vector<1x1xi32>
    %592 = arith.cmpi eq, %548, %591 : vector<1x1xi32>
    %c8_i32 = arith.constant 8 : i32
    %593 = vector.broadcast %c8_i32 : i32 to vector<1x1xi32>
    %594 = arith.select %592, %593, %547 : vector<1x1xi1>, vector<1x1xi32>
    %595 = arith.maxsi %548, %590 : vector<1x1xi32>
    %cst_136 = arith.constant dense<0.000000e+00> : vector<1x121xf32>
    %596 = tpu.matmul %584, %205, %cst_136 {dimension_numbers = #tpu.dot_dimension_numbers<[1], [0], [0], [1], [0, 0, 1, 1], [], []>} : vector<1x25xf32>, vector<25x121xf32>, vector<1x121xf32> -> vector<1x121xf32>
    %597 = vector.extract_strided_slice %596 {offsets = [0, 0], sizes = [1, 96], strides = [1, 1]} : vector<1x121xf32> to vector<1x96xf32>
    %598 = arith.addf %597, %200 : vector<1x96xf32>
    %599 = vector.extract_strided_slice %596 {offsets = [0, 96], sizes = [1, 25], strides = [1, 1]} : vector<1x121xf32> to vector<1x25xf32>
    %cst_137 = arith.constant dense<0.000000e+00> : vector<1x96xf32>
    %600 = tpu.matmul %574, %206, %cst_137 {dimension_numbers = #tpu.dot_dimension_numbers<[1], [0], [0], [1], [0, 0, 1, 1], [], []>} : vector<1x32xf32>, vector<32x96xf32>, vector<1x96xf32> -> vector<1x96xf32>
    %601 = arith.addf %600, %207 : vector<1x96xf32>
    %602 = vector.extract_strided_slice %598 {offsets = [0, 0], sizes = [1, 64], strides = [1, 1]} : vector<1x96xf32> to vector<1x64xf32>
    %603 = vector.extract_strided_slice %601 {offsets = [0, 0], sizes = [1, 64], strides = [1, 1]} : vector<1x96xf32> to vector<1x64xf32>
    %604 = arith.addf %602, %603 : vector<1x64xf32>
    %605 = arith.negf %604 : vector<1x64xf32>
    %606 = math.exp %605 : vector<1x64xf32>
    %cst_138 = arith.constant 1.000000e+00 : f32
    %607 = vector.broadcast %cst_138 : f32 to vector<1x64xf32>
    %608 = arith.addf %607, %606 : vector<1x64xf32>
    %609 = arith.divf %607, %608 : vector<1x64xf32>
    %610 = vector.extract_strided_slice %609 {offsets = [0, 0], sizes = [1, 32], strides = [1, 1]} : vector<1x64xf32> to vector<1x32xf32>
    %611 = vector.extract_strided_slice %609 {offsets = [0, 32], sizes = [1, 32], strides = [1, 1]} : vector<1x64xf32> to vector<1x32xf32>
    %612 = vector.extract_strided_slice %598 {offsets = [0, 64], sizes = [1, 32], strides = [1, 1]} : vector<1x96xf32> to vector<1x32xf32>
    %613 = vector.extract_strided_slice %601 {offsets = [0, 64], sizes = [1, 32], strides = [1, 1]} : vector<1x96xf32> to vector<1x32xf32>
    %614 = arith.mulf %610, %613 : vector<1x32xf32>
    %615 = arith.addf %612, %614 : vector<1x32xf32>
    %616 = math.tanh %615 : vector<1x32xf32>
    %cst_139 = arith.constant 1.000000e+00 : f32
    %617 = vector.broadcast %cst_139 : f32 to vector<1x32xf32>
    %618 = arith.subf %617, %611 : vector<1x32xf32>
    %619 = arith.mulf %618, %616 : vector<1x32xf32>
    %620 = arith.mulf %611, %574 : vector<1x32xf32>
    %621 = arith.addf %619, %620 : vector<1x32xf32>
    %cst_140 = arith.constant dense<0.000000e+00> : vector<1x25xf32>
    %622 = tpu.matmul %621, %208, %cst_140 {dimension_numbers = #tpu.dot_dimension_numbers<[1], [0], [0], [1], [0, 0, 1, 1], [], []>} : vector<1x32xf32>, vector<32x25xf32>, vector<1x25xf32> -> vector<1x25xf32>
    %623 = arith.addf %622, %599 : vector<1x25xf32>
    %624 = arith.addf %623, %204 : vector<1x25xf32>
    %c8 = arith.constant 8 : index
    %c0_141 = arith.constant 0 : index
    %625 = vector.load %arg13[%c8, %c0_141] : memref<9x25xf32, #tpu.memory_space<vmem>>, vector<1x25xf32>
    tpu.vector_store %arg13[%c8, %c0_141], %624 {strides = array<i32>} : memref<9x25xf32, #tpu.memory_space<vmem>>, vector<1x25xf32>,
    %c0_i32_142 = arith.constant 0 : i32
    %626 = vector.broadcast %c0_i32_142 : i32 to vector<1x1xi32>
    %627 = arith.cmpi eq, %595, %626 : vector<1x1xi32>
    %c9_i32 = arith.constant 9 : i32
    %628 = vector.broadcast %c9_i32 : i32 to vector<1x1xi32>
    %629 = arith.select %627, %628, %594 : vector<1x1xi1>, vector<1x1xi32>
    %c1_i32_143 = arith.constant 1 : i32
    %630 = vector.broadcast %c1_i32_143 : i32 to vector<1x1xi32>
    %631 = arith.subi %629, %630 : vector<1x1xi32>
    %c0_144 = arith.constant 0 : index
    %c0_145 = arith.constant 0 : index
    %632 = vector.load %arg14[%c0_144, %c0_145] : memref<1x1xi32, #tpu.memory_space<vmem>>, vector<1x1xi32>
    tpu.vector_store %arg14[%c0_144, %c0_145], %631 {strides = array<i32>} : memref<1x1xi32, #tpu.memory_space<vmem>>, vector<1x1xi32>,
    return
  }
}

</mosaic_0001>

<bundles_post_ra>
// kernel: _device_forward.1
= control target key start
LH: loop header
LB: loop body
LE: loop exit
PB: predicated region body
PF: predicated region fallthrough
CT: control target
= control target key end

     0   :  { %20 = vsyncpa [#allocation5], 0  ;;  %s5605_s0 = inlined_call_operand.vmem [shape: s32[2,1], index: 0, kind: input, shape index: {}]   ;;  %s5606_s1 = inlined_call_operand.vmem [shape: s32[8,1], index: 1, kind: input, shape index: {}]   ;;  %s5607_s2 = inlined_call_operand.hbm [shape: f32[30,96], index: 2, kind: input, shape index: {}]   ;;  %s5608_s3 = inlined_call_operand.hbm [shape: f32[32,96], index: 3, kind: input, shape index: {}]   ;;  %s5609_s4 = inlined_call_operand.vmem [shape: f32[1,96], index: 4, kind: input, shape index: {}]   ;;  %s5610_s5 = inlined_call_operand.hbm [shape: f32[25,121], index: 5, kind: input, shape index: {}]   ;;  %s5611_s6 = inlined_call_operand.hbm [shape: f32[32,96], index: 6, kind: input, shape index: {}]   ;;  %s5612_s7 = inlined_call_operand.hbm [shape: f32[32,96], index: 7, kind: input, shape index: {}]   ;;  %s5613_s8 = inlined_call_operand.vmem [shape: f32[1,96], index: 8, kind: input, shape index: {}]   ;;  %s5614_s9 = inlined_call_operand.vmem [shape: f32[1,96], index: 9, kind: input, shape index: {}]   ;;  %s5615_s10 = inlined_call_operand.hbm [shape: f32[32,25], index: 10, kind: input, shape index: {}]   ;;  %s5616_s11 = inlined_call_operand.hbm [shape: f32[32,25], index: 11, kind: input, shape index: {}]   ;;  %s5617_s12 = inlined_call_operand.vmem [shape: f32[1,25], index: 12, kind: input, shape index: {}]   ;;  %s5618_s13 = inlined_call_operand.hbm [shape: f32[9,25], index: 13, kind: output, shape index: {0}]   ;;  %s5619_s14 = inlined_call_operand.hbm [shape: s32[1,1], index: 14, kind: output, shape index: {1}]  }
   0x1   :  { %21 = vsyncpa [#allocation3], 0 }
   0x2   :  { %22 = vsyncpa [#allocation8], 0 }
   0x3   :  { %23 = vsyncpa [#allocation11], 0 }
   0x4   :  { %24 = vsyncpa [#allocation14], 0 }
   0x5   :  { %25 = vsyncpa [#allocation4], 0 }
   0x6   :  { %26 = vsyncpa [#allocation18], 0  ;;  %s4729_s29 = smov [#allocation7]   ;;  %s4730_s15 = smov [#allocation10]  }
   0x7   :  { %s56_s30 = sshll.u32 %s4729_s29, 4  ;;  %s82_s16 = sshll.u32 %s4730_s15, 4  ;;  %s57_s30 = int_to_ptr.vmem [resolvable:$true] %s56_s30  ;;  %s83_s16 = int_to_ptr.vmem [resolvable:$true] %s82_s16 }
   0x8   :  { %s4531_s17 = scalar_lea.vmem %s57_s30, 512  ;;  %p4536_p1 = scmp.lt.s32.totalorder %s57_s30, %s57_s30 }
   0x9   :  { %p4532_p0 = scmp.ne.s32.totalorder %s57_s30, %s4531_s17  ;;  %p4537_p2 = scmp.lt.s32.totalorder %s4531_s17, %s4531_s17 }
   0xb   :  { %p4538_p3 = por %p4537_p2, %p4536_p1 }
   0xd   :  { %p4539_p4 = pnand %p4538_p3, %p4532_p0 }
   0xf   :  { %4542 = shalt.err (!%p4539_p4)
}
  0x10   :  { %s4731_s18 = smov 128   ;;  %s4732_s19 = smov 8  }
  0x11   :  { %62 = dma.hbm_to_vmem [thread:$0]  %s5608_s3, 512, %s57_s30, [#allocation8], %s4731_s18, %s4731_s18, %s4732_s19  }
  0x12   :  { %s4551_s22 = scalar_lea.vmem %s83_s16, 512  ;;  %p4556_p6 = scmp.lt.s32.totalorder %s83_s16, %s83_s16 }
  0x13   :  { %p4552_p5 = scmp.ne.s32.totalorder %s83_s16, %s4551_s22  ;;  %p4557_p7 = scmp.lt.s32.totalorder %s4551_s22, %s4551_s22 }
  0x15   :  { %p4558_p8 = por %p4557_p7, %p4556_p6 }
  0x17   :  { %p4559_p9 = pnand %p4558_p8, %p4552_p5 }
  0x19   :  { %4562 = shalt.err (!%p4559_p9)
}
  0x1a   :  { %88 = dma.hbm_to_vmem [thread:$0]  %s5611_s6, 512, %s83_s16, [#allocation11], %s4731_s18, %s4731_s18, %s4732_s19  }
  0x1b   :  { %s33_s27 = sshll.u32 %s5605_s0, 4  ;;  %s4733_s28 = smov [#allocation13]   ;;  %s34_s27 = int_to_ptr.vmem [resolvable:$true] %s33_s27 }
  0x1c   :  { %s110_s3 = sshll.u32 %s4733_s28, 4  ;;  %s111_s3 = int_to_ptr.vmem [resolvable:$true] %s110_s3 }
  0x1d   :  { %s4571_s29 = scalar_lea.vmem %s111_s3, 512  ;;  %p4576_p11 = scmp.lt.s32.totalorder %s111_s3, %s111_s3 }
  0x1e   :  { %p4572_p10 = scmp.ne.s32.totalorder %s111_s3, %s4571_s29  ;;  %p4577_p12 = scmp.lt.s32.totalorder %s4571_s29, %s4571_s29 }
  0x20   :  { %p4578_p13 = por %p4577_p12, %p4576_p11 }
  0x22   :  { %p4579_p0 = pnand %p4578_p13, %p4572_p10 }
  0x24   :  { %4582 = shalt.err (!%p4579_p0)
}
  0x25   :  { %116 = dma.hbm_to_vmem [thread:$0]  %s5615_s10, 512, %s111_s3, [#allocation14], %s4731_s18, %s4731_s18, %s4732_s19  }
  0x26   :  { %s4583_s15 = scalar_lea.vmem %s34_s27, 32  ;;  %p4588_p2 = scmp.lt.s32.totalorder %s34_s27, %s34_s27 }
  0x27   :  { %p4584_p1 = scmp.ne.s32.totalorder %s34_s27, %s4583_s15  ;;  %p4589_p3 = scmp.lt.s32.totalorder %s4583_s15, %s4583_s15 }
  0x29   :  { %p4590_p4 = por %p4589_p3, %p4588_p2 }
  0x2b   :  { %p4591_p5 = pnand %p4590_p4, %p4584_p1 }
  0x2d   :  { %4594 = shalt.err (!%p4591_p5)
}
  0x2e   :  { %s4734_s0 = smov [#allocation2]   ;;  %s4735_s16 = smov [#allocation6]  }
  0x2f   :  { %36 = dma.vmem_to_smem %s34_s27, 32, %s4734_s0, [#allocation5]  }
  0x30   :  { %s44_s17 = sshll.u32 %s4735_s16, 4  ;;  %s4736_s20 = smov [#allocation9]   ;;  %s45_s17 = int_to_ptr.vmem [resolvable:$true] %s44_s17 }
  0x31   :  { %s70_s21 = sshll.u32 %s4736_s20, 4  ;;  %s4603_s22 = scalar_lea.vmem %s45_s17, 512  ;;  %s71_s21 = int_to_ptr.vmem [resolvable:$true] %s70_s21 }
  0x32   :  { %p4604_p6 = scmp.ne.s32.totalorder %s45_s17, %s4603_s22  ;;  %p4608_p7 = scmp.lt.s32.totalorder %s45_s17, %s45_s17 }
  0x33   :  { %p4609_p8 = scmp.lt.s32.totalorder %s4603_s22, %s4603_s22 }
  0x35   :  { %p4610_p9 = por %p4609_p8, %p4608_p7 }
  0x37   :  { %p4611_p10 = pnand %p4610_p9, %p4604_p6 }
  0x39   :  { %4614 = shalt.err (!%p4611_p10)
}
  0x3a   :  { %50 = dma.hbm_to_vmem [thread:$0]  %s5607_s2, 512, %s45_s17, [#allocation3], %s4731_s18, %s4731_s18, %s4732_s19  }
  0x3b   :  { %s4623_s24 = scalar_lea.vmem %s71_s21, 512  ;;  %p4628_p12 = scmp.lt.s32.totalorder %s71_s21, %s71_s21 }
  0x3c   :  { %p4624_p11 = scmp.ne.s32.totalorder %s71_s21, %s4623_s24  ;;  %p4629_p13 = scmp.lt.s32.totalorder %s4623_s24, %s4623_s24 }
  0x3e   :  { %p4630_p0 = por %p4629_p13, %p4628_p12 }
  0x40   :  { %p4631_p1 = pnand %p4630_p0, %p4624_p11 }
  0x42   :  { %4634 = shalt.err (!%p4631_p1)
}
  0x43   :  { %76 = dma.hbm_to_vmem [thread:$0]  %s5610_s5, 512, %s71_s21, [#allocation8], %s4731_s18, %s4731_s18, %s4732_s19  }
  0x44   :  { %s4737_s27 = smov [#allocation12]   ;;  %s4738_s3 = smov [#allocation15]  }
  0x45   :  { %s94_s28 = sshll.u32 %s4737_s27, 4  ;;  %s122_s29 = sshll.u32 %s4738_s3, 4  ;;  %s95_s28 = int_to_ptr.vmem [resolvable:$true] %s94_s28  ;;  %s123_s29 = int_to_ptr.vmem [resolvable:$true] %s122_s29 }
  0x46   :  { %s4643_s2 = scalar_lea.vmem %s95_s28, 512  ;;  %p4648_p3 = scmp.lt.s32.totalorder %s95_s28, %s95_s28 }
  0x47   :  { %p4644_p2 = scmp.ne.s32.totalorder %s95_s28, %s4643_s2  ;;  %p4649_p4 = scmp.lt.s32.totalorder %s4643_s2, %s4643_s2 }
  0x49   :  { %p4650_p5 = por %p4649_p4, %p4648_p3 }
  0x4b   :  { %p4651_p6 = pnand %p4650_p5, %p4644_p2 }
  0x4d   :  { %4654 = shalt.err (!%p4651_p6)
}
  0x4e   :  { %100 = dma.hbm_to_vmem [thread:$0]  %s5612_s7, 512, %s95_s28, [#allocation11], %s4731_s18, %s4731_s18, %s4732_s19  }
  0x4f   :  { %s4663_s5 = scalar_lea.vmem %s123_s29, 512  ;;  %p4668_p8 = scmp.lt.s32.totalorder %s123_s29, %s123_s29 }
  0x50   :  { %p4664_p7 = scmp.ne.s32.totalorder %s123_s29, %s4663_s5  ;;  %p4669_p9 = scmp.lt.s32.totalorder %s4663_s5, %s4663_s5 }
  0x52   :  { %p4670_p10 = por %p4669_p9, %p4668_p8 }
  0x54   :  { %p4671_p11 = pnand %p4670_p10, %p4664_p7 }
  0x56   :  { %4674 = shalt.err (!%p4671_p11)
}
  0x57   :  { %128 = dma.hbm_to_vmem [thread:$0]  %s5616_s11, 512, %s123_s29, [#allocation14], %s4731_s18, %s4731_s18, %s4732_s19  }
  0x58   :  { %4715 = dma.done.wait [#allocation5], 32  }
  0x59   :  { %4716 = vsyncadd [#allocation5], 4294967264 }
  0x5a   :  { %4717 = dma.done.wait [#allocation3], 512  }
  0x5b   :  { %4718 = vsyncadd [#allocation3], 4294966784 }
  0x5c   :  { %4719 = dma.done.wait [#allocation8], 1024  }
  0x5d   :  { %4720 = vsyncadd [#allocation8], 4294966272 }
  0x5e   :  { %4721 = dma.done.wait [#allocation11], 1024  }
  0x5f   :  { %4722 = vsyncadd [#allocation11], 4294966272 }
  0x60   :  { %4723 = dma.done.wait [#allocation14], 1024  }
  0x61   :  { %4724 = vsyncadd [#allocation14], 4294966272 }
  0x62   :  { %155 = sfence }
  0x63   :  { %v156_v0 = vld [vmem:[%s5606_s1] sm:$0xff]  ;;  %v4871_v1 = vld [vmem:[#allocation7 + $0x18] sm:$0xff]  ;;  %v4739_v2 = vmov 0   ;;  %v4740_v3 = vmov 0.0   ;;  %v4875_v4 = vld [vmem:[#allocation7 + $0x10] sm:$0xff]  ;;  %vm173_vm0 = vcmask 1045504   ;;  %v157_v11 = vlaneseq }
  0x64   :  { %4407 = vset.pattern.permute.xlu0 %v4739_v2  ;;  %3981 = vmatprep.subr.mxu1 %v4740_v3  ;;  %v168_v5 = vld [vmem:[#allocation6 + $0x18] sm:$0x3f]  ;;  %v4879_v6 = vld [vmem:[#allocation7 + $0x8] sm:$0xff]  ;;  %vm4741_vm1 = vmmov 0   ;;  %v167_v7 = vld [vmem:[#allocation6 + $0x10] sm:$0xff]  ;;  %vm169_vm2 = vcmask 244736  }
  0x65   :  { %160 = vperm.xlu0 %4407, %v156_v0   ;;  %3982 = vmatpush3.msra.mxu1 %v4871_v1  ;;  %v4886_v8 = vld [vmem:[#allocation7] sm:$0xff]  ;;  %v166_v9 = vld [vmem:[#allocation6 + $0x8] sm:$0xff]  ;;  %v4909_v12 = vand.u32 127, %v157_v11  ;;  %s4742_s17 = smov 64   ;;  %vm252_vm4 = vcmask 261120   ;;  %s1093_s20 = sld [smem:[#allocation2]] }
  0x66   :  { %3983 = vmatprep.subr.mxu1 %v4740_v3  ;;  %3989 = vmatprep.mubr.msk.f32.mxu1 %vm4741_vm1, %v4740_v3  ;;  %v165_v10 = vld [vmem:[#allocation6] sm:$0xff]  ;;  %vm1276_vm5 = vcmask 1040384   ;;  %vm1272_vm7 = vcmask 203776   ;;  %vm1528_vm8 = vcmask 196608  }
  0x67   :  { %3984 = vmatpush3.msra.mxu1 %v4875_v4  ;;  %3970 = vmatprep.subr.mxu0 %v4740_v3  ;;  %v4926_v15 = vld [vmem:[%s5609_s4] sm:$0x1]  ;;  %s4743_s4 = smov 96  }
  0x68   :  { %3985 = vmatprep.subr.mxu1 %v4740_v3  ;;  %3971 = vmatpush3.msk.msra.mxu0 %vm173_vm0, %v168_v5 }
  0x69   :  { %3986 = vmatpush3.msra.mxu1 %v4879_v6  ;;  %3972 = vmatprep.subr.mxu0 %v4740_v3 }
  0x6a   :  { %3987 = vmatprep.subr.mxu1 %v4740_v3  ;;  %3973 = vmatpush3.msra.mxu0 %v167_v7 }
  0x6b   :  { %3988 = vmatpush3.msra.mxu1 %v4886_v8  ;;  %3974 = vmatprep.subr.mxu0 %v4740_v3 }
  0x6c   :  { %3990 = vmatmul.mubr.f32.vlgmr.msra.gmra.mxu1 %v4740_v3  ;;  %3975 = vmatpush3.msra.mxu0 %v166_v9 }
  0x6d   :  { %3976 = vmatprep.subr.mxu0 %v4740_v3  ;;  %3978 = vmatprep.mubr.msk.f32.mxu0 %vm4741_vm1, %v4740_v3 }
  0x6e   :  { %3977 = vmatpush3.msra.mxu0 %v165_v10  ;;  %4003 = vmatprep.subr.mxu1 %v4740_v3 }
  0x6f   :  { %3992 = vmatprep.subr.mxu0 %v4740_v3  ;;  %4004 = vmatpush3.msra.mxu1 %v4871_v1 }
  0x70   :  { %4005 = vmatprep.subr.mxu1 %v4740_v3  ;;  %4011 = vmatprep.mubr.msk.f32.mxu1 %vm4741_vm1, %v4740_v3 }
  0x71   :  { %4006 = vmatpush3.msra.mxu1 %v4875_v4 }
  0x72   :  { %4007 = vmatprep.subr.mxu1 %v4740_v3 }
  0x73   :  { %4008 = vmatpush3.msra.mxu1 %v4879_v6 }
  0x74   :  { %4009 = vmatprep.subr.mxu1 %v4740_v3 }
  0x75   :  { %4010 = vmatpush3.msra.mxu1 %v4886_v8 }
  0x76   :  { %4025 = vmatprep.subr.mxu1 %v4740_v3 }
  0xe0   :  { %v161_v13 = vpop.permute.xlu0 %160 }
  0xe1   :  { %vm162_vm3 = vcmp.eq.s32.totalorder %v4909_v12, %v161_v13 }
  0xe2   :  { %v3703_v14 = vsel %vm162_vm3, 1.0, %v4740_v3 }
  0xe3   :  { %3979 = vmatmul.mubr.msk.f32.vlgmr.msra.gmra.mxu0 %vm169_vm2, %v3703_v14 }
  0xe4   :  { %3993 = vmatpush3.msra.mxu0 %v4871_v1  ;;  %4000 = vmatprep.mubr.msk.f32.mxu0 %vm4741_vm1, %v4740_v3 }
  0xe5   :  { %3994 = vmatprep.subr.mxu0 %v4740_v3 }
  0xe6   :  { %3995 = vmatpush3.msra.mxu0 %v4875_v4 }
  0xe7   :  { %3996 = vmatprep.subr.mxu0 %v4740_v3 }
  0xe8   :  { %3997 = vmatpush3.msra.mxu0 %v4879_v6 }
  0xe9   :  { %3998 = vmatprep.subr.mxu0 %v4740_v3 }
  0xea   :  { %3999 = vmatpush3.msra.mxu0 %v4886_v8 }
  0xeb   :  { %4014 = vmatprep.subr.mxu0 %v4740_v3 }
 0x12c   :  { %v322_v16 = vpop.f32.mrf.mxu1 }
 0x12d   :  { %v323_v17 = vadd.f32 %v322_v16, %v4926_v15 }
 0x12e   :  { %v3991_v18 = vpop.f32.mrf.mxu1 }
 0x12f   :  { %334 = vrot.lane.b32.xlu0 %v323_v17, %s4742_s17 }
 0x1a1   :  { %v335_v25 = vpop.permute.xlu0 %334 }
 0x1a3   :  { %v4930_v19 = vpop.f32.mrf.mxu0 }
 0x1a4   :  { %v326_v20 = vadd.f32 %v323_v17, %v4930_v19 }
 0x1a5   :  { %v3980_v21 = vpop.f32.mrf.mxu0 }
 0x1a6   :  { %v3706_v22 = vmul.f32 -1.442695, %v326_v20 }
 0x1a8   :  { %4408 = vpow2.f32 %v3706_v22 }
 0x1b5   :  { %v4409_v23 = vpop.eup %4408 }
 0x1b6   :  { %v330_v24 = vadd.f32 1.0, %v4409_v23 }
 0x1b8   :  { %4410 = vrcp.f32 %v330_v24 }
 0x1c5   :  { %v4411_v26 = vpop.eup %4410 }
 0x1c6   :  { %v337_v27 = vmul.f32 %v4411_v26, %v335_v25  ;;  %v344_v31 = vsub.f32 1.0, %v4411_v26  ;;  %v350_v33 = vmul.f32 0.0, %v4411_v26 }
 0x1c8   :  { %339 = vrot.lane.b32.xlu1 %v337_v27, %s4742_s17 }
 0x23a   :  { %v340_v28 = vpop.permute.xlu1 %339 }
 0x23b   :  { %v342_v29 = vadd.f32 %v340_v28, %v4930_v19 }
 0x23d   :  { %4412 = vtanh.f32 %v342_v29 }
 0x24a   :  { %v4413_v30 = vpop.eup %4412 }
 0x24b   :  { %346 = vrot.lane.b32.xlu1 %v4413_v30, %s4743_s4 }
 0x2bd   :  { %v347_v32 = vpop.permute.xlu1 %346 }
 0x2be   :  { %v349_v34 = vmul.f32 %v347_v32, %v344_v31 }
 0x2c0   :  { %v351_v35 = vadd.f32 %v350_v33, %v349_v34 }
 0x2c2   :  { %353 = vrot.lane.b32.xlu0 %v351_v35, %s4743_s4  ;;  %v453_v51 = vrot.slane %v351_v35, 7 }
 0x334   :  { %v354_v36 = vpop.permute.xlu0 %353 }
 0x335   :  { %4001 = vmatmul.mubr.msk.f32.vlgmr.msra.gmra.mxu0 %vm252_vm4, %v354_v36 }
 0x336   :  { %4015 = vmatpush3.msra.mxu0 %v4871_v1  ;;  %4022 = vmatprep.mubr.msk.f32.mxu0 %vm4741_vm1, %v4740_v3 }
 0x337   :  { %4016 = vmatprep.subr.mxu0 %v4740_v3 }
 0x338   :  { %4017 = vmatpush3.msra.mxu0 %v4875_v4 }
 0x339   :  { %4018 = vmatprep.subr.mxu0 %v4740_v3 }
 0x33a   :  { %4019 = vmatpush3.msra.mxu0 %v4879_v6 }
 0x33b   :  { %4020 = vmatprep.subr.mxu0 %v4740_v3 }
 0x33c   :  { %4021 = vmatpush3.msra.mxu0 %v4886_v8 }
 0x33d   :  { %4036 = vmatprep.subr.mxu0 %v4740_v3 }
 0x3f5   :  { %v423_v37 = vpop.f32.mrf.mxu0 }
 0x3f6   :  { %v424_v38 = vadd.f32 %v423_v37, %v4926_v15 }
 0x3f7   :  { %v4002_v39 = vpop.f32.mrf.mxu0 }
 0x3f8   :  { %v428_v40 = vrot.slane %v424_v38, 7 }
 0x3fa   :  { %437 = vrot.lane.b32.xlu1 %v428_v40, %s4742_s17  ;;  %v430_v41 = vadd.f32 %v428_v40, %v4930_v19 }
 0x3fc   :  { %v3708_v42 = vmul.f32 -1.442695, %v430_v41 }
 0x3fe   :  { %4414 = vpow2.f32 %v3708_v42 }
 0x40b   :  { %v4415_v43 = vpop.eup %4414 }
 0x40c   :  { %v434_v44 = vadd.f32 1.0, %v4415_v43 }
 0x40e   :  { %4416 = vrcp.f32 %v434_v44 }
 0x41b   :  { %v4417_v45 = vpop.eup %4416 }
 0x41c   :  { %v447_v52 = vsub.f32 1.0, %v4417_v45  ;;  %v455_v55 = vmul.f32 %v4417_v45, %v453_v51 }
 0x46c   :  { %v438_v46 = vpop.permute.xlu1 %437 }
 0x46d   :  { %v440_v47 = vmul.f32 %v4417_v45, %v438_v46 }
 0x46f   :  { %442 = vrot.lane.b32.xlu0 %v440_v47, %s4742_s17 }
 0x4e1   :  { %v443_v48 = vpop.permute.xlu0 %442 }
 0x4e2   :  { %v445_v49 = vadd.f32 %v443_v48, %v4930_v19 }
 0x4e4   :  { %4418 = vtanh.f32 %v445_v49 }
 0x4f1   :  { %v4419_v50 = vpop.eup %4418 }
 0x4f2   :  { %449 = vrot.lane.b32.xlu1 %v4419_v50, %s4743_s4 }
 0x564   :  { %v450_v53 = vpop.permute.xlu1 %449 }
 0x565   :  { %v452_v54 = vmul.f32 %v450_v53, %v447_v52 }
 0x567   :  { %v456_v56 = vadd.f32 %v455_v55, %v452_v54 }
 0x569   :  { %v458_v57 = vrot.slane %v456_v56, 1  ;;  %v559_v17 = vrot.slane %v456_v56, 7 }
 0x56b   :  { %459 = vrot.lane.b32.xlu0 %v458_v57, %s4743_s4 }
 0x5dd   :  { %v460_v58 = vpop.permute.xlu0 %459 }
 0x5de   :  { %4012 = vmatmul.mubr.msk.f32.vlgmr.msra.gmra.mxu1 %vm252_vm4, %v460_v58 }
 0x5df   :  { %4026 = vmatpush3.msra.mxu1 %v4871_v1  ;;  %4033 = vmatprep.mubr.msk.f32.mxu1 %vm4741_vm1, %v4740_v3 }
 0x5e0   :  { %4027 = vmatprep.subr.mxu1 %v4740_v3 }
 0x5e1   :  { %4028 = vmatpush3.msra.mxu1 %v4875_v4 }
 0x5e2   :  { %4029 = vmatprep.subr.mxu1 %v4740_v3 }
 0x5e3   :  { %4030 = vmatpush3.msra.mxu1 %v4879_v6 }
 0x5e4   :  { %4031 = vmatprep.subr.mxu1 %v4740_v3 }
 0x5e5   :  { %4032 = vmatpush3.msra.mxu1 %v4886_v8 }
 0x5e6   :  { %4047 = vmatprep.subr.mxu1 %v4740_v3 }
 0x69e   :  { %v529_v59 = vpop.f32.mrf.mxu1 }
 0x69f   :  { %v530_v60 = vadd.f32 %v529_v59, %v4926_v15 }
 0x6a0   :  { %v4013_v61 = vpop.f32.mrf.mxu1 }
 0x6a1   :  { %v534_v62 = vrot.slane %v530_v60, 6 }
 0x6a3   :  { %543 = vrot.lane.b32.xlu1 %v534_v62, %s4742_s17  ;;  %v536_v63 = vadd.f32 %v534_v62, %v4930_v19 }
 0x6a5   :  { %v3710_v0 = vmul.f32 -1.442695, %v536_v63 }
 0x6a7   :  { %4420 = vpow2.f32 %v3710_v0 }
 0x6b4   :  { %v4421_v5 = vpop.eup %4420 }
 0x6b5   :  { %v540_v7 = vadd.f32 1.0, %v4421_v5 }
 0x6b7   :  { %4422 = vrcp.f32 %v540_v7 }
 0x6c4   :  { %v4423_v9 = vpop.eup %4422 }
 0x6c5   :  { %v553_v18 = vsub.f32 1.0, %v4423_v9  ;;  %v561_v21 = vmul.f32 %v4423_v9, %v559_v17 }
 0x715   :  { %v544_v10 = vpop.permute.xlu1 %543 }
 0x716   :  { %v546_v11 = vmul.f32 %v4423_v9, %v544_v10 }
 0x718   :  { %548 = vrot.lane.b32.xlu0 %v546_v11, %s4742_s17 }
 0x78a   :  { %v549_v13 = vpop.permute.xlu0 %548 }
 0x78b   :  { %v551_v14 = vadd.f32 %v549_v13, %v4930_v19 }
 0x78d   :  { %4424 = vtanh.f32 %v551_v14 }
 0x79a   :  { %v4425_v16 = vpop.eup %4424 }
 0x79b   :  { %555 = vrot.lane.b32.xlu1 %v4425_v16, %s4743_s4 }
 0x80d   :  { %v556_v20 = vpop.permute.xlu1 %555 }
 0x80e   :  { %v558_v22 = vmul.f32 %v556_v20, %v553_v18 }
 0x810   :  { %v562_v23 = vadd.f32 %v561_v21, %v558_v22 }
 0x812   :  { %v564_v24 = vrot.slane %v562_v23, 2  ;;  %v665_v40 = vrot.slane %v562_v23, 7 }
 0x814   :  { %565 = vrot.lane.b32.xlu0 %v564_v24, %s4743_s4 }
 0x886   :  { %v566_v25 = vpop.permute.xlu0 %565 }
 0x887   :  { %4023 = vmatmul.mubr.msk.f32.vlgmr.msra.gmra.mxu0 %vm252_vm4, %v566_v25 }
 0x888   :  { %4037 = vmatpush3.msra.mxu0 %v4871_v1  ;;  %4044 = vmatprep.mubr.msk.f32.mxu0 %vm4741_vm1, %v4740_v3 }
 0x889   :  { %4038 = vmatprep.subr.mxu0 %v4740_v3 }
 0x88a   :  { %4039 = vmatpush3.msra.mxu0 %v4875_v4 }
 0x88b   :  { %4040 = vmatprep.subr.mxu0 %v4740_v3 }
 0x88c   :  { %4041 = vmatpush3.msra.mxu0 %v4879_v6 }
 0x88d   :  { %4042 = vmatprep.subr.mxu0 %v4740_v3 }
 0x88e   :  { %4043 = vmatpush3.msra.mxu0 %v4886_v8 }
 0x88f   :  { %4058 = vmatprep.subr.mxu0 %v4740_v3 }
 0x947   :  { %v635_v26 = vpop.f32.mrf.mxu0 }
 0x948   :  { %v636_v27 = vadd.f32 %v635_v26, %v4926_v15 }
 0x949   :  { %v4024_v28 = vpop.f32.mrf.mxu0 }
 0x94a   :  { %v640_v29 = vrot.slane %v636_v27, 5 }
 0x94c   :  { %649 = vrot.lane.b32.xlu1 %v640_v29, %s4742_s17  ;;  %v642_v30 = vadd.f32 %v640_v29, %v4930_v19 }
 0x94e   :  { %v3712_v31 = vmul.f32 -1.442695, %v642_v30 }
 0x950   :  { %4426 = vpow2.f32 %v3712_v31 }
 0x95d   :  { %v4427_v32 = vpop.eup %4426 }
 0x95e   :  { %v646_v33 = vadd.f32 1.0, %v4427_v32 }
 0x960   :  { %4428 = vrcp.f32 %v646_v33 }
 0x96d   :  { %v4429_v34 = vpop.eup %4428 }
 0x96e   :  { %v659_v41 = vsub.f32 1.0, %v4429_v34  ;;  %v667_v43 = vmul.f32 %v4429_v34, %v665_v40 }
 0x9be   :  { %v650_v35 = vpop.permute.xlu1 %649 }
 0x9bf   :  { %v652_v36 = vmul.f32 %v4429_v34, %v650_v35 }
 0x9c1   :  { %654 = vrot.lane.b32.xlu0 %v652_v36, %s4742_s17 }
 0xa33   :  { %v655_v37 = vpop.permute.xlu0 %654 }
 0xa34   :  { %v657_v38 = vadd.f32 %v655_v37, %v4930_v19 }
 0xa36   :  { %4430 = vtanh.f32 %v657_v38 }
 0xa43   :  { %v4431_v39 = vpop.eup %4430 }
 0xa44   :  { %661 = vrot.lane.b32.xlu1 %v4431_v39, %s4743_s4 }
 0xab6   :  { %v662_v42 = vpop.permute.xlu1 %661 }
 0xab7   :  { %v664_v44 = vmul.f32 %v662_v42, %v659_v41 }
 0xab9   :  { %v668_v45 = vadd.f32 %v667_v43, %v664_v44 }
 0xabb   :  { %v670_v46 = vrot.slane %v668_v45, 3  ;;  %v771_v62 = vrot.slane %v668_v45, 7 }
 0xabd   :  { %671 = vrot.lane.b32.xlu0 %v670_v46, %s4743_s4 }
 0xb2f   :  { %v672_v47 = vpop.permute.xlu0 %671 }
 0xb30   :  { %4034 = vmatmul.mubr.msk.f32.vlgmr.msra.gmra.mxu1 %vm252_vm4, %v672_v47 }
 0xb31   :  { %4048 = vmatpush3.msra.mxu1 %v4871_v1  ;;  %4055 = vmatprep.mubr.msk.f32.mxu1 %vm4741_vm1, %v4740_v3 }
 0xb32   :  { %4049 = vmatprep.subr.mxu1 %v4740_v3 }
 0xb33   :  { %4050 = vmatpush3.msra.mxu1 %v4875_v4 }
 0xb34   :  { %4051 = vmatprep.subr.mxu1 %v4740_v3 }
 0xb35   :  { %4052 = vmatpush3.msra.mxu1 %v4879_v6 }
 0xb36   :  { %4053 = vmatprep.subr.mxu1 %v4740_v3 }
 0xb37   :  { %4054 = vmatpush3.msra.mxu1 %v4886_v8 }
 0xb38   :  { %4069 = vmatprep.subr.mxu1 %v4740_v3 }
 0xbf0   :  { %v741_v48 = vpop.f32.mrf.mxu1 }
 0xbf1   :  { %v742_v49 = vadd.f32 %v741_v48, %v4926_v15 }
 0xbf2   :  { %v4035_v50 = vpop.f32.mrf.mxu1 }
 0xbf3   :  { %v746_v51 = vrot.slane %v742_v49, 4 }
 0xbf5   :  { %755 = vrot.lane.b32.xlu1 %v746_v51, %s4742_s17  ;;  %v748_v52 = vadd.f32 %v746_v51, %v4930_v19 }
 0xbf7   :  { %v3714_v53 = vmul.f32 -1.442695, %v748_v52 }
 0xbf9   :  { %4432 = vpow2.f32 %v3714_v53 }
 0xc06   :  { %v4433_v54 = vpop.eup %4432 }
 0xc07   :  { %v752_v55 = vadd.f32 1.0, %v4433_v54 }
 0xc09   :  { %4434 = vrcp.f32 %v752_v55 }
 0xc16   :  { %v4435_v56 = vpop.eup %4434 }
 0xc17   :  { %v765_v63 = vsub.f32 1.0, %v4435_v56  ;;  %v773_v5 = vmul.f32 %v4435_v56, %v771_v62 }
 0xc67   :  { %v756_v57 = vpop.permute.xlu1 %755 }
 0xc68   :  { %v758_v58 = vmul.f32 %v4435_v56, %v756_v57 }
 0xc6a   :  { %760 = vrot.lane.b32.xlu0 %v758_v58, %s4742_s17 }
 0xcdc   :  { %v761_v59 = vpop.permute.xlu0 %760 }
 0xcdd   :  { %v763_v60 = vadd.f32 %v761_v59, %v4930_v19 }
 0xcdf   :  { %4436 = vtanh.f32 %v763_v60 }
 0xcec   :  { %v4437_v61 = vpop.eup %4436 }
 0xced   :  { %767 = vrot.lane.b32.xlu1 %v4437_v61, %s4743_s4 }
 0xd5f   :  { %v768_v0 = vpop.permute.xlu1 %767 }
 0xd60   :  { %v770_v7 = vmul.f32 %v768_v0, %v765_v63 }
 0xd62   :  { %v774_v9 = vadd.f32 %v773_v5, %v770_v7 }
 0xd64   :  { %v776_v10 = vrot.slane %v774_v9, 4  ;;  %v877_v25 = vrot.slane %v774_v9, 7 }
 0xd66   :  { %777 = vrot.lane.b32.xlu0 %v776_v10, %s4743_s4  ;;  %v1179_v10 = vld [vmem:[#allocation15 + $0x18] sm:$0xff] }
 0xdd8   :  { %v778_v11 = vpop.permute.xlu0 %777 }
 0xdd9   :  { %4045 = vmatmul.mubr.msk.f32.vlgmr.msra.gmra.mxu0 %vm252_vm4, %v778_v11  ;;  %v1097_v11 = vld [vmem:[#allocation10 + $0x10] sm:$0xff] }
 0xdda   :  { %4059 = vmatpush3.msra.mxu0 %v4871_v1  ;;  %4066 = vmatprep.mubr.msk.f32.mxu0 %vm4741_vm1, %v4740_v3 }
 0xddb   :  { %4060 = vmatprep.subr.mxu0 %v4740_v3 }
 0xddc   :  { %4061 = vmatpush3.msra.mxu0 %v4875_v4 }
 0xddd   :  { %4062 = vmatprep.subr.mxu0 %v4740_v3 }
 0xdde   :  { %4063 = vmatpush3.msra.mxu0 %v4879_v6 }
 0xddf   :  { %4064 = vmatprep.subr.mxu0 %v4740_v3 }
 0xde0   :  { %4065 = vmatpush3.msra.mxu0 %v4886_v8 }
 0xde1   :  { %4080 = vmatprep.subr.mxu0 %v4740_v3 }
 0xe99   :  { %v847_v13 = vpop.f32.mrf.mxu0 }
 0xe9a   :  { %v848_v1 = vadd.f32 %v847_v13, %v4926_v15  ;;  %v1178_v13 = vld [vmem:[#allocation15 + $0x10] sm:$0xff] }
 0xe9b   :  { %v4046_v14 = vpop.f32.mrf.mxu0 }
 0xe9c   :  { %v852_v16 = vrot.slane %v848_v1, 3  ;;  %v1096_v1 = vld [vmem:[#allocation10 + $0x8] sm:$0xff] }
 0xe9d   :  { %v1177_v14 = vld [vmem:[#allocation15 + $0x8] sm:$0xff] }
 0xe9e   :  { %861 = vrot.lane.b32.xlu1 %v852_v16, %s4742_s17  ;;  %v854_v17 = vadd.f32 %v852_v16, %v4930_v19  ;;  %v1176_v16 = vld [vmem:[#allocation15] sm:$0xff] }
 0xea0   :  { %v3716_v4 = vmul.f32 -1.442695, %v854_v17 }
 0xea2   :  { %4438 = vpow2.f32 %v3716_v4 }
 0xeaf   :  { %v4439_v18 = vpop.eup %4438 }
 0xeb0   :  { %v858_v20 = vadd.f32 1.0, %v4439_v18 }
 0xeb2   :  { %4440 = vrcp.f32 %v858_v20 }
 0xebf   :  { %v4441_v6 = vpop.eup %4440 }
 0xec0   :  { %v871_v26 = vsub.f32 1.0, %v4441_v6  ;;  %v879_v28 = vmul.f32 %v4441_v6, %v877_v25 }
 0xf10   :  { %v862_v21 = vpop.permute.xlu1 %861 }
 0xf11   :  { %v864_v22 = vmul.f32 %v4441_v6, %v862_v21 }
 0xf13   :  { %866 = vrot.lane.b32.xlu0 %v864_v22, %s4742_s17 }
 0xf85   :  { %v867_v8 = vpop.permute.xlu0 %866 }
 0xf86   :  { %v869_v23 = vadd.f32 %v867_v8, %v4930_v19 }
 0xf88   :  { %4442 = vtanh.f32 %v869_v23  ;;  %v5060_v23 = vld [vmem:[#allocation9 + $0x18] sm:$0x1] }
 0xf95   :  { %v4443_v24 = vpop.eup %4442 }
 0xf96   :  { %873 = vrot.lane.b32.xlu1 %v4443_v24, %s4743_s4  ;;  %v5062_v24 = vld [vmem:[#allocation12 + $0x18] sm:$0xff] }
0x1008   :  { %v874_v27 = vpop.permute.xlu1 %873 }
0x1009   :  { %v876_v29 = vmul.f32 %v874_v27, %v871_v26  ;;  %v5066_v26 = vld [vmem:[#allocation9 + $0x10] sm:$0xff] }
0x100a   :  { %v5068_v27 = vld [vmem:[#allocation12 + $0x10] sm:$0xff] }
0x100b   :  { %v880_v30 = vadd.f32 %v879_v28, %v876_v29  ;;  %v1268_v28 = vstv %s1093_s20  ;;  %v5075_v29 = vld [vmem:[#allocation9 + $0x8] sm:$0xff] }
0x100c   :  { %vm1269_vm6 = vcmp.eq.s32.totalorder %v4909_v12, %v1268_v28 }
0x100d   :  { %v882_v31 = vrot.slane %v880_v30, 5  ;;  %v983_v47 = vrot.slane %v880_v30, 7  ;;  %v5077_v30 = vld [vmem:[#allocation12 + $0x8] sm:$0xff] }
0x100f   :  { %883 = vrot.lane.b32.xlu0 %v882_v31, %s4743_s4  ;;  %v5084_v31 = vld [vmem:[#allocation9] sm:$0xff] }
0x1081   :  { %v884_v32 = vpop.permute.xlu0 %883 }
0x1082   :  { %4056 = vmatmul.mubr.msk.f32.vlgmr.msra.gmra.mxu1 %vm252_vm4, %v884_v32  ;;  %v5088_v32 = vld [vmem:[#allocation12] sm:$0xff] }
0x1083   :  { %4077 = vmatprep.mubr.msk.f32.mxu1 %vm4741_vm1, %v4740_v3 }
0x1142   :  { %v953_v33 = vpop.f32.mrf.mxu1 }
0x1143   :  { %v954_v34 = vadd.f32 %v953_v33, %v4926_v15  ;;  %v3725_v33 = vsel %vm1269_vm6, 1.0, %v4740_v3 }
0x1144   :  { %v4057_v35 = vpop.f32.mrf.mxu1 }
0x1145   :  { %v958_v36 = vrot.slane %v954_v34, 2 }
0x1147   :  { %967 = vrot.lane.b32.xlu1 %v958_v36, %s4742_s17  ;;  %v960_v37 = vadd.f32 %v958_v36, %v4930_v19 }
0x1149   :  { %v3718_v38 = vmul.f32 -1.442695, %v960_v37 }
0x114b   :  { %4444 = vpow2.f32 %v3718_v38  ;;  %v5121_v38 = vld [vmem:[%s5614_s9] sm:$0x1] }
0x1158   :  { %v4445_v39 = vpop.eup %4444 }
0x1159   :  { %v964_v40 = vadd.f32 1.0, %v4445_v39 }
0x115b   :  { %4446 = vrcp.f32 %v964_v40 }
0x1168   :  { %v4447_v41 = vpop.eup %4446 }
0x1169   :  { %v977_v48 = vsub.f32 1.0, %v4447_v41  ;;  %v985_v50 = vmul.f32 %v4447_v41, %v983_v47 }
0x11b9   :  { %v968_v42 = vpop.permute.xlu1 %967 }
0x11ba   :  { %v970_v43 = vmul.f32 %v4447_v41, %v968_v42 }
0x11bc   :  { %972 = vrot.lane.b32.xlu0 %v970_v43, %s4742_s17 }
0x122e   :  { %v973_v44 = vpop.permute.xlu0 %972 }
0x122f   :  { %v975_v45 = vadd.f32 %v973_v44, %v4930_v19  ;;  %v1099_v44 = vld [vmem:[%s5613_s8] sm:$0x1]  ;;  %s4744_s8 = smov 32  }
0x1231   :  { %4448 = vtanh.f32 %v975_v45 }
0x123e   :  { %v4449_v46 = vpop.eup %4448 }
0x123f   :  { %979 = vrot.lane.b32.xlu1 %v4449_v46, %s4743_s4 }
0x12b1   :  { %v980_v49 = vpop.permute.xlu1 %979 }
0x12b2   :  { %v982_v51 = vmul.f32 %v980_v49, %v977_v48 }
0x12b4   :  { %v986_v52 = vadd.f32 %v985_v50, %v982_v51 }
0x12b6   :  { %v988_v53 = vrot.slane %v986_v52, 6  ;;  %v1089_v4 = vrot.slane %v986_v52, 7 }
0x12b8   :  { %989 = vrot.lane.b32.xlu0 %v988_v53, %s4743_s4 }
0x132a   :  { %v990_v54 = vpop.permute.xlu0 %989 }
0x132b   :  { %4067 = vmatmul.mubr.msk.f32.vlgmr.msra.gmra.mxu0 %vm252_vm4, %v990_v54 }
0x132c   :  { %4088 = vmatprep.mubr.msk.f32.mxu0 %vm4741_vm1, %v4740_v3  ;;  %4081 = vmatpush3.msra.mxu0 %v1179_v10 }
0x132d   :  { %4082 = vmatprep.subr.mxu0 %v4740_v3 }
0x132e   :  { %4083 = vmatpush3.msra.mxu0 %v1178_v13 }
0x132f   :  { %4084 = vmatprep.subr.mxu0 %v4740_v3 }
0x1330   :  { %4085 = vmatpush3.msra.mxu0 %v1177_v14 }
0x1331   :  { %4086 = vmatprep.subr.mxu0 %v4740_v3 }
0x1332   :  { %4087 = vmatpush3.msra.mxu0 %v1176_v16 }
0x1333   :  { %4102 = vmatprep.subr.mxu0 %v4740_v3 }
0x13eb   :  { %v1059_v55 = vpop.f32.mrf.mxu0 }
0x13ec   :  { %v1060_v56 = vadd.f32 %v1059_v55, %v4926_v15  ;;  %v1098_v15 = vld [vmem:[#allocation10 + $0x18] sm:$0xff] }
0x13ed   :  { %v4068_v57 = vpop.f32.mrf.mxu0  ;;  %4070 = vmatpush3.msra.mxu1 %v1098_v15 }
0x13ee   :  { %v1064_v58 = vrot.slane %v1060_v56, 1  ;;  %4071 = vmatprep.subr.mxu1 %v4740_v3  ;;  %v5132_v56 = vld [vmem:[#allocation13 + $0x18] sm:$0xff]  ;;  %v5134_v57 = vld [vmem:[#allocation13 + $0x10] sm:$0xff] }
0x13ef   :  { %4072 = vmatpush3.msra.mxu1 %v1097_v11 }
0x13f0   :  { %1073 = vrot.lane.b32.xlu1 %v1064_v58, %s4742_s17  ;;  %v1066_v59 = vadd.f32 %v1064_v58, %v4930_v19  ;;  %4073 = vmatprep.subr.mxu1 %v4740_v3  ;;  %v5138_v58 = vld [vmem:[#allocation13 + $0x8] sm:$0xff] }
0x13f1   :  { %4074 = vmatpush3.msra.mxu1 %v1096_v1 }
0x13f2   :  { %v3720_v60 = vmul.f32 -1.442695, %v1066_v59  ;;  %4075 = vmatprep.subr.mxu1 %v4740_v3  ;;  %v5142_v59 = vld [vmem:[#allocation13] sm:$0xff] }
0x13f4   :  { %4450 = vpow2.f32 %v3720_v60 }
0x1401   :  { %v4451_v61 = vpop.eup %4450 }
0x1402   :  { %v1070_v62 = vadd.f32 1.0, %v4451_v61 }
0x1404   :  { %4452 = vrcp.f32 %v1070_v62 }
0x1411   :  { %v4453_v63 = vpop.eup %4452 }
0x1412   :  { %v1083_v18 = vsub.f32 1.0, %v4453_v63  ;;  %v1091_v6 = vmul.f32 %v4453_v63, %v1089_v4 }
0x1462   :  { %v1074_v0 = vpop.permute.xlu1 %1073 }
0x1463   :  { %v1076_v5 = vmul.f32 %v4453_v63, %v1074_v0 }
0x1465   :  { %1078 = vrot.lane.b32.xlu0 %v1076_v5, %s4742_s17 }
0x14d7   :  { %v1079_v7 = vpop.permute.xlu0 %1078 }
0x14d8   :  { %v1081_v9 = vadd.f32 %v1079_v7, %v4930_v19  ;;  %v1095_v19 = vld [vmem:[#allocation10] sm:$0xff] }
0x14d9   :  { %4076 = vmatpush3.msra.mxu1 %v1095_v19 }
0x14da   :  { %4454 = vtanh.f32 %v1081_v9  ;;  %4091 = vmatprep.subr.mxu1 %v4740_v3  ;;  %v1180_v9 = vld [vmem:[%s5617_s12] sm:$0x1]  ;;  %s3721_s12 = sld [smem:[#allocation2 + $0x80]] }
0x14e7   :  { %v4455_v17 = vpop.eup %4454 }
0x14e8   :  { %1085 = vrot.lane.b32.xlu1 %v4455_v17, %s4743_s4 }
0x155a   :  { %v1086_v20 = vpop.permute.xlu1 %1085 }
0x155b   :  { %v1088_v21 = vmul.f32 %v1086_v20, %v1083_v18 }
0x155d   :  { %v5054_v22 = vadd.f32 %v1091_v6, %v1088_v21 }
0x155f   :  { %v1101_v8 = vrot.slane %v5054_v22, 7 }
0x1561   :  { %1102 = vrot.lane.b32.xlu0 %v1101_v8, %s4743_s4 }
0x15d3   :  { %v1103_v25 = vpop.permute.xlu0 %1102 }
0x15d4   :  { %4078 = vmatmul.mubr.msk.f32.vlgmr.msra.gmra.mxu1 %vm252_vm4, %v1103_v25  ;;  %4089 = vmatmul.mubr.msk.f32.vlgmr.msra.gmra.mxu0 %vm252_vm4, %v1103_v25 }
0x15d5   :  { %4092 = vmatpush3.msk.msra.mxu1 %vm1276_vm5, %v5060_v23  ;;  %4103 = vmatpush3.msra.mxu0 %v5062_v24 }
0x15d6   :  { %4093 = vmatprep.subr.mxu1 %v4740_v3  ;;  %4104 = vmatprep.subr.mxu0 %v4740_v3 }
0x15d7   :  { %4094 = vmatpush3.msra.mxu1 %v5066_v26  ;;  %4105 = vmatpush3.msra.mxu0 %v5068_v27 }
0x15d8   :  { %4095 = vmatprep.subr.mxu1 %v4740_v3  ;;  %4106 = vmatprep.subr.mxu0 %v4740_v3 }
0x15d9   :  { %4096 = vmatpush3.msra.mxu1 %v5075_v29  ;;  %4107 = vmatpush3.msra.mxu0 %v5077_v30 }
0x15da   :  { %4097 = vmatprep.subr.mxu1 %v4740_v3  ;;  %4108 = vmatprep.subr.mxu0 %v4740_v3 }
0x15db   :  { %4098 = vmatpush3.msra.mxu1 %v5084_v31  ;;  %4099 = vmatprep.mubr.msk.f32.mxu1 %vm4741_vm1, %v4740_v3 }
0x15dc   :  { %4109 = vmatpush3.msra.mxu0 %v5088_v32  ;;  %4110 = vmatprep.mubr.msk.f32.mxu0 %vm4741_vm1, %v4740_v3 }
0x15dd   :  { %4100 = vmatmul.mubr.msk.f32.vlgmr.msra.gmra.mxu1 %vm1272_vm7, %v3725_v33  ;;  %4111 = vmatmul.mubr.msk.f32.vlgmr.msra.gmra.mxu0 %vm252_vm4, %v1103_v25 }
0x15de   :  { %4113 = vmatprep.subr.mxu1 %v4740_v3  ;;  %4121 = vmatprep.mubr.msk.f32.mxu1 %vm4741_vm1, %v4740_v3 }
0x15df   :  { %4124 = vmatprep.subr.mxu0 %v4740_v3  ;;  %4132 = vmatprep.mubr.msk.f32.mxu0 %vm4741_vm1, %v4740_v3 }
0x15e0   :  { %4125 = vmatpush3.msk.msra.mxu0 %vm1276_vm5, %v5060_v23  ;;  %4114 = vmatpush3.msra.mxu1 %v5132_v56 }
0x15e1   :  { %4126 = vmatprep.subr.mxu0 %v4740_v3  ;;  %4115 = vmatprep.subr.mxu1 %v4740_v3 }
0x15e2   :  { %4127 = vmatpush3.msra.mxu0 %v5066_v26  ;;  %4116 = vmatpush3.msra.mxu1 %v5134_v57 }
0x15e3   :  { %4128 = vmatprep.subr.mxu0 %v4740_v3  ;;  %4117 = vmatprep.subr.mxu1 %v4740_v3 }
0x15e4   :  { %4129 = vmatpush3.msra.mxu0 %v5075_v29  ;;  %4118 = vmatpush3.msra.mxu1 %v5138_v58 }
0x15e5   :  { %4130 = vmatprep.subr.mxu0 %v4740_v3  ;;  %4119 = vmatprep.subr.mxu1 %v4740_v3 }
0x15e6   :  { %4131 = vmatpush3.msra.mxu0 %v5084_v31  ;;  %4120 = vmatpush3.msra.mxu1 %v5142_v59 }
0x15e7   :  { %4146 = vmatprep.subr.mxu0 %v4740_v3  ;;  %4135 = vmatprep.subr.mxu1 %v4740_v3 }
0x1694   :  { %v1172_v34 = vpop.f32.mrf.mxu1  ;;  %v5116_v35 = vpop.f32.mrf.mxu0 }
0x1695   :  { %v5128_v45 = vadd.f32 %v1172_v34, %v1099_v44  ;;  %v5183_v11 = vadd.f32 %v5116_v35, %v1180_v9 }
0x1696   :  { %v4079_v36 = vpop.f32.mrf.mxu1  ;;  %v4090_v37 = vpop.f32.mrf.mxu0 }
0x169d   :  { %v1346_v39 = vpop.f32.mrf.mxu1  ;;  %v1417_v40 = vpop.f32.mrf.mxu0 }
0x169e   :  { %v1418_v41 = vadd.f32 %v1417_v40, %v5121_v38  ;;  %v1350_v46 = vadd.f32 %v1346_v39, %v5128_v45 }
0x169f   :  { %v4112_v42 = vpop.f32.mrf.mxu0  ;;  %v4101_v43 = vpop.f32.mrf.mxu1 }
0x16a0   :  { %1429 = vrot.lane.b32.xlu1 %v1418_v41, %s4742_s17  ;;  %v1421_v47 = vadd.f32 %v1418_v41, %v1350_v46 }
0x16a2   :  { %v3729_v48 = vmul.f32 -1.442695, %v1421_v47 }
0x16a4   :  { %4456 = vpow2.f32 %v3729_v48 }
0x16b1   :  { %v4457_v49 = vpop.eup %4456 }
0x16b2   :  { %v1425_v50 = vadd.f32 1.0, %v4457_v49 }
0x16b4   :  { %4458 = vrcp.f32 %v1425_v50 }
0x16c1   :  { %v4459_v51 = vpop.eup %4458 }
0x16c2   :  { %v1439_v61 = vsub.f32 1.0, %v4459_v51  ;;  %v1446_v63 = vmul.f32 %v4459_v51, %v1101_v8 }
0x1712   :  { %v1430_v52 = vpop.permute.xlu1 %1429 }
0x1713   :  { %v1432_v53 = vmul.f32 %v4459_v51, %v1430_v52 }
0x1715   :  { %1434 = vrot.lane.b32.xlu0 %v1432_v53, %s4742_s17 }
0x1787   :  { %v1435_v54 = vpop.permute.xlu0 %1434 }
0x1788   :  { %v1437_v55 = vadd.f32 %v1435_v54, %v1350_v46 }
0x178a   :  { %4460 = vtanh.f32 %v1437_v55 }
0x1797   :  { %v4461_v60 = vpop.eup %4460 }
0x1798   :  { %1441 = vrot.lane.b32.xlu1 %v4461_v60, %s4743_s4 }
0x179c   :  { %1452 = vrot.lane.b32.xlu1 %v1346_v39, %s4744_s8 }
0x180a   :  { %v1442_v62 = vpop.permute.xlu1 %1441 }
0x180b   :  { %v1444_v0 = vmul.f32 %v1442_v62, %v1439_v61 }
0x180d   :  { %v5152_v5 = vadd.f32 %v1446_v63, %v1444_v0 }
0x180e   :  { %v1453_v15 = vpop.permute.xlu1 %1452 }
0x180f   :  { %1449 = vrot.lane.b32.xlu0 %v5152_v5, %s4743_s4 }
0x1881   :  { %v1450_v7 = vpop.permute.xlu0 %1449 }
0x1882   :  { %4122 = vmatmul.mubr.msk.f32.vlgmr.msra.gmra.mxu1 %vm252_vm4, %v1450_v7 }
0x1883   :  { %4136 = vmatpush3.msra.mxu1 %v5062_v24  ;;  %4143 = vmatprep.mubr.msk.f32.mxu1 %vm4741_vm1, %v4740_v3 }
0x1884   :  { %4137 = vmatprep.subr.mxu1 %v4740_v3 }
0x1885   :  { %4138 = vmatpush3.msra.mxu1 %v5068_v27 }
0x1886   :  { %4139 = vmatprep.subr.mxu1 %v4740_v3 }
0x1887   :  { %4140 = vmatpush3.msra.mxu1 %v5077_v30 }
0x1888   :  { %4141 = vmatprep.subr.mxu1 %v4740_v3 }
0x1889   :  { %4142 = vmatpush3.msra.mxu1 %v5088_v32 }
0x188a   :  { %4144 = vmatmul.mubr.msk.f32.vlgmr.msra.gmra.mxu1 %vm252_vm4, %v1450_v7  ;;  %4157 = vmatprep.subr.mxu1 %v4740_v3 }
0x188b   :  { %4158 = vmatpush3.msk.msra.mxu1 %vm1276_vm5, %v5060_v23  ;;  %4165 = vmatprep.mubr.msk.f32.mxu1 %vm4741_vm1, %v4740_v3 }
0x188c   :  { %4159 = vmatprep.subr.mxu1 %v4740_v3 }
0x188d   :  { %4160 = vmatpush3.msra.mxu1 %v5066_v26 }
0x188e   :  { %4161 = vmatprep.subr.mxu1 %v4740_v3 }
0x188f   :  { %4162 = vmatpush3.msra.mxu1 %v5075_v29 }
0x1890   :  { %4163 = vmatprep.subr.mxu1 %v4740_v3 }
0x1891   :  { %4164 = vmatpush3.msra.mxu1 %v5084_v31 }
0x1892   :  { %4179 = vmatprep.subr.mxu1 %v4740_v3 }
0x1942   :  { %v1523_v10 = vpop.f32.mrf.mxu1 }
0x1943   :  { %v1524_v13 = vadd.f32 %v1523_v10, %v1453_v15 }
0x1944   :  { %v4123_v1 = vpop.f32.mrf.mxu1 }
0x1945   :  { %v1527_v14 = vadd.f32 %v1524_v13, %v5183_v11 }
0x1947   :  { %1529 = vst.msk [vmem:[#allocation16] sm:$0x1] %vm1528_vm8, %v1527_v14  ;;  %v1530_v19 = vsel %vm1528_vm8, %v1527_v14, -inf }
0x1948   :  { %1531 = vmax.xlane.f32.xlu0 %v1530_v19 }
0x194a   :  { %v1683_v16 = vpop.f32.mrf.mxu1 }
0x194b   :  { %v1684_v17 = vadd.f32 %v1683_v16, %v5121_v38 }
0x194c   :  { %v4145_v4 = vpop.f32.mrf.mxu1 }
0x194d   :  { %1695 = vrot.lane.b32.xlu1 %v1684_v17, %s4742_s17 }
0x19bf   :  { %v1696_v35 = vpop.permute.xlu1 %1695 }
0x19d1   :  { %v1532_v18 = vpop.xlane.xlu0 %1531 }
0x19d2   :  { %vm1533_vm9 = vcmp.eq.f32.partialorder %v1527_v14, %v1532_v18 }
0x19d3   :  { %v5191_v20 = vsel %vm1533_vm9, 1.0, %v4740_v3 }
0x19d4   :  { %4133 = vmatmul.mubr.msk.f32.vlgmr.msra.gmra.mxu0 %vm1272_vm7, %v5191_v20 }
0x19d5   :  { %4147 = vmatpush3.msra.mxu0 %v5132_v56  ;;  %4154 = vmatprep.mubr.msk.f32.mxu0 %vm4741_vm1, %v4740_v3 }
0x19d6   :  { %4148 = vmatprep.subr.mxu0 %v4740_v3 }
0x19d7   :  { %4149 = vmatpush3.msra.mxu0 %v5134_v57 }
0x19d8   :  { %4150 = vmatprep.subr.mxu0 %v4740_v3 }
0x19d9   :  { %4151 = vmatpush3.msra.mxu0 %v5138_v58 }
0x19da   :  { %4152 = vmatprep.subr.mxu0 %v4740_v3 }
0x19db   :  { %4153 = vmatpush3.msra.mxu0 %v5142_v59 }
0x19dc   :  { %4168 = vmatprep.subr.mxu0 %v4740_v3 }
0x1a94   :  { %v1612_v6 = vpop.f32.mrf.mxu0 }
0x1a95   :  { %v1616_v21 = vadd.f32 %v1612_v6, %v5128_v45 }
0x1a96   :  { %v4134_v22 = vpop.f32.mrf.mxu0 }
0x1a97   :  { %v1687_v8 = vadd.f32 %v1684_v17, %v1616_v21 }
0x1a99   :  { %v3735_v25 = vmul.f32 -1.442695, %v1687_v8 }
0x1a9b   :  { %4462 = vpow2.f32 %v3735_v25 }
0x1aa8   :  { %v4463_v28 = vpop.eup %4462 }
0x1aa9   :  { %v1691_v33 = vadd.f32 1.0, %v4463_v28 }
0x1aab   :  { %4464 = vrcp.f32 %v1691_v33 }
0x1ab8   :  { %v4465_v34 = vpop.eup %4464 }
0x1ab9   :  { %v1698_v36 = vmul.f32 %v4465_v34, %v1696_v35  ;;  %v1705_v41 = vsub.f32 1.0, %v4465_v34  ;;  %v1711_v43 = vmul.f32 %v4465_v34, %v5152_v5 }
0x1abb   :  { %1700 = vrot.lane.b32.xlu1 %v1698_v36, %s4742_s17 }
0x1b2d   :  { %v1701_v37 = vpop.permute.xlu1 %1700 }
0x1b2e   :  { %v1703_v39 = vadd.f32 %v1701_v37, %v1616_v21 }
0x1b30   :  { %4466 = vtanh.f32 %v1703_v39 }
0x1b3d   :  { %v4467_v40 = vpop.eup %4466 }
0x1b3e   :  { %1707 = vrot.lane.b32.xlu1 %v4467_v40, %s4743_s4 }
0x1bb0   :  { %v1708_v42 = vpop.permute.xlu1 %1707 }
0x1bb1   :  { %v1710_v44 = vmul.f32 %v1708_v42, %v1705_v41 }
0x1bb3   :  { %v5209_v46 = vadd.f32 %v1711_v43, %v1710_v44 }
0x1bb5   :  { %1714 = vrot.lane.b32.xlu1 %v5209_v46, %s4743_s4 }
0x1bb9   :  { %1717 = vrot.lane.b32.xlu1 %v1612_v6, %s4744_s8 }
0x1c27   :  { %v1715_v47 = vpop.permute.xlu1 %1714 }
0x1c28   :  { %4155 = vmatmul.mubr.msk.f32.vlgmr.msra.gmra.mxu0 %vm252_vm4, %v1715_v47 }
0x1c29   :  { %4169 = vmatpush3.msra.mxu0 %v5062_v24  ;;  %4176 = vmatprep.mubr.msk.f32.mxu0 %vm4741_vm1, %v4740_v3 }
0x1c2a   :  { %4170 = vmatprep.subr.mxu0 %v4740_v3 }
0x1c2b   :  { %4171 = vmatpush3.msra.mxu0 %v5068_v27  ;;  %v1718_v48 = vpop.permute.xlu1 %1717 }
0x1c2c   :  { %4172 = vmatprep.subr.mxu0 %v4740_v3 }
0x1c2d   :  { %4173 = vmatpush3.msra.mxu0 %v5077_v30 }
0x1c2e   :  { %4174 = vmatprep.subr.mxu0 %v4740_v3 }
0x1c2f   :  { %4175 = vmatpush3.msra.mxu0 %v5088_v32 }
0x1c30   :  { %4177 = vmatmul.mubr.msk.f32.vlgmr.msra.gmra.mxu0 %vm252_vm4, %v1715_v47  ;;  %4190 = vmatprep.subr.mxu0 %v4740_v3 }
0x1c31   :  { %4191 = vmatpush3.msk.msra.mxu0 %vm1276_vm5, %v5060_v23  ;;  %4198 = vmatprep.mubr.msk.f32.mxu0 %vm4741_vm1, %v4740_v3 }
0x1c32   :  { %4192 = vmatprep.subr.mxu0 %v4740_v3 }
0x1c33   :  { %4193 = vmatpush3.msra.mxu0 %v5066_v26 }
0x1c34   :  { %4194 = vmatprep.subr.mxu0 %v4740_v3 }
0x1c35   :  { %4195 = vmatpush3.msra.mxu0 %v5075_v29 }
0x1c36   :  { %4196 = vmatprep.subr.mxu0 %v4740_v3 }
0x1c37   :  { %4197 = vmatpush3.msra.mxu0 %v5084_v31 }
0x1c38   :  { %4212 = vmatprep.subr.mxu0 %v4740_v3 }
0x1ce8   :  { %v1788_v49 = vpop.f32.mrf.mxu0 }
0x1ce9   :  { %v1789_v50 = vadd.f32 %v1788_v49, %v1718_v48 }
0x1cea   :  { %v4156_v51 = vpop.f32.mrf.mxu0 }
0x1ceb   :  { %v1792_v52 = vadd.f32 %v1789_v50, %v5183_v11 }
0x1ced   :  { %1793 = vst.msk [vmem:[#allocation16 + $0x1] sm:$0x1] %vm1528_vm8, %v1792_v52  ;;  %v1794_v53 = vsel %vm1528_vm8, %v1792_v52, -inf }
0x1cee   :  { %1795 = vmax.xlane.f32.xlu1 %v1794_v53 }
0x1cf0   :  { %v1950_v54 = vpop.f32.mrf.mxu0 }
0x1cf1   :  { %v1951_v55 = vadd.f32 %v1950_v54, %v5121_v38 }
0x1cf2   :  { %v4178_v60 = vpop.f32.mrf.mxu0 }
0x1cf3   :  { %1962 = vrot.lane.b32.xlu0 %v1951_v55, %s4742_s17 }
0x1d65   :  { %v1963_v1 = vpop.permute.xlu0 %1962 }
0x1d77   :  { %v1796_v61 = vpop.xlane.xlu1 %1795 }
0x1d78   :  { %vm1797_vm10 = vcmp.eq.f32.partialorder %v1792_v52, %v1796_v61 }
0x1d79   :  { %v5243_v62 = vsel %vm1797_vm10, 1.0, %v4740_v3 }
0x1d7a   :  { %4166 = vmatmul.mubr.msk.f32.vlgmr.msra.gmra.mxu1 %vm1272_vm7, %v5243_v62 }
0x1d7b   :  { %4180 = vmatpush3.msra.mxu1 %v5132_v56  ;;  %4187 = vmatprep.mubr.msk.f32.mxu1 %vm4741_vm1, %v4740_v3 }
0x1d7c   :  { %4181 = vmatprep.subr.mxu1 %v4740_v3 }
0x1d7d   :  { %4182 = vmatpush3.msra.mxu1 %v5134_v57 }
0x1d7e   :  { %4183 = vmatprep.subr.mxu1 %v4740_v3 }
0x1d7f   :  { %4184 = vmatpush3.msra.mxu1 %v5138_v58 }
0x1d80   :  { %4185 = vmatprep.subr.mxu1 %v4740_v3 }
0x1d81   :  { %4186 = vmatpush3.msra.mxu1 %v5142_v59 }
0x1d82   :  { %4201 = vmatprep.subr.mxu1 %v4740_v3 }
0x1e3a   :  { %v1879_v63 = vpop.f32.mrf.mxu1 }
0x1e3b   :  { %v1883_v0 = vadd.f32 %v1879_v63, %v5128_v45 }
0x1e3c   :  { %v4167_v5 = vpop.f32.mrf.mxu1 }
0x1e3d   :  { %v1954_v7 = vadd.f32 %v1951_v55, %v1883_v0 }
0x1e3f   :  { %v3741_v9 = vmul.f32 -1.442695, %v1954_v7 }
0x1e41   :  { %4468 = vpow2.f32 %v3741_v9 }
0x1e4e   :  { %v4469_v15 = vpop.eup %4468 }
0x1e4f   :  { %v1958_v10 = vadd.f32 1.0, %v4469_v15 }
0x1e51   :  { %4470 = vrcp.f32 %v1958_v10 }
0x1e5e   :  { %v4471_v13 = vpop.eup %4470 }
0x1e5f   :  { %v1965_v14 = vmul.f32 %v4471_v13, %v1963_v1  ;;  %v1972_v4 = vsub.f32 1.0, %v4471_v13  ;;  %v1978_v6 = vmul.f32 %v4471_v13, %v5209_v46 }
0x1e61   :  { %1967 = vrot.lane.b32.xlu0 %v1965_v14, %s4742_s17 }
0x1ed3   :  { %v1968_v19 = vpop.permute.xlu0 %1967 }
0x1ed4   :  { %v1970_v16 = vadd.f32 %v1968_v19, %v1883_v0 }
0x1ed6   :  { %4472 = vtanh.f32 %v1970_v16 }
0x1ee3   :  { %v4473_v17 = vpop.eup %4472 }
0x1ee4   :  { %1974 = vrot.lane.b32.xlu1 %v4473_v17, %s4743_s4 }
0x1f56   :  { %v1975_v18 = vpop.permute.xlu1 %1974 }
0x1f57   :  { %v1977_v21 = vmul.f32 %v1975_v18, %v1972_v4 }
0x1f59   :  { %v5261_v22 = vadd.f32 %v1978_v6, %v1977_v21 }
0x1f5b   :  { %1981 = vrot.lane.b32.xlu0 %v5261_v22, %s4743_s4 }
0x1f5f   :  { %1984 = vrot.lane.b32.xlu0 %v1879_v63, %s4744_s8 }
0x1fcd   :  { %v1982_v8 = vpop.permute.xlu0 %1981 }
0x1fce   :  { %4188 = vmatmul.mubr.msk.f32.vlgmr.msra.gmra.mxu1 %vm252_vm4, %v1982_v8 }
0x1fcf   :  { %4202 = vmatpush3.msra.mxu1 %v5062_v24  ;;  %4209 = vmatprep.mubr.msk.f32.mxu1 %vm4741_vm1, %v4740_v3 }
0x1fd0   :  { %4203 = vmatprep.subr.mxu1 %v4740_v3 }
0x1fd1   :  { %4204 = vmatpush3.msra.mxu1 %v5068_v27  ;;  %v1985_v25 = vpop.permute.xlu0 %1984 }
0x1fd2   :  { %4205 = vmatprep.subr.mxu1 %v4740_v3 }
0x1fd3   :  { %4206 = vmatpush3.msra.mxu1 %v5077_v30 }
0x1fd4   :  { %4207 = vmatprep.subr.mxu1 %v4740_v3 }
0x1fd5   :  { %4208 = vmatpush3.msra.mxu1 %v5088_v32 }
0x1fd6   :  { %4210 = vmatmul.mubr.msk.f32.vlgmr.msra.gmra.mxu1 %vm252_vm4, %v1982_v8  ;;  %4223 = vmatprep.subr.mxu1 %v4740_v3 }
0x1fd7   :  { %4224 = vmatpush3.msk.msra.mxu1 %vm1276_vm5, %v5060_v23  ;;  %4231 = vmatprep.mubr.msk.f32.mxu1 %vm4741_vm1, %v4740_v3 }
0x1fd8   :  { %4225 = vmatprep.subr.mxu1 %v4740_v3 }
0x1fd9   :  { %4226 = vmatpush3.msra.mxu1 %v5066_v26 }
0x1fda   :  { %4227 = vmatprep.subr.mxu1 %v4740_v3 }
0x1fdb   :  { %4228 = vmatpush3.msra.mxu1 %v5075_v29 }
0x1fdc   :  { %4229 = vmatprep.subr.mxu1 %v4740_v3 }
0x1fdd   :  { %4230 = vmatpush3.msra.mxu1 %v5084_v31 }
0x1fde   :  { %4245 = vmatprep.subr.mxu1 %v4740_v3 }
0x208e   :  { %v2055_v28 = vpop.f32.mrf.mxu1 }
0x208f   :  { %v2056_v33 = vadd.f32 %v2055_v28, %v1985_v25 }
0x2090   :  { %v4189_v34 = vpop.f32.mrf.mxu1 }
0x2091   :  { %v2059_v35 = vadd.f32 %v2056_v33, %v5183_v11 }
0x2093   :  { %2060 = vst.msk [vmem:[#allocation16 + $0x2] sm:$0x1] %vm1528_vm8, %v2059_v35  ;;  %v2061_v36 = vsel %vm1528_vm8, %v2059_v35, -inf }
0x2094   :  { %2062 = vmax.xlane.f32.xlu0 %v2061_v36 }
0x2096   :  { %v2217_v37 = vpop.f32.mrf.mxu1 }
0x2097   :  { %v2218_v39 = vadd.f32 %v2217_v37, %v5121_v38 }
0x2098   :  { %v4211_v40 = vpop.f32.mrf.mxu1 }
0x2099   :  { %2229 = vrot.lane.b32.xlu1 %v2218_v39, %s4742_s17 }
0x210b   :  { %v2230_v52 = vpop.permute.xlu1 %2229 }
0x211d   :  { %v2063_v41 = vpop.xlane.xlu0 %2062 }
0x211e   :  { %vm2064_vm11 = vcmp.eq.f32.partialorder %v2059_v35, %v2063_v41 }
0x211f   :  { %v5295_v42 = vsel %vm2064_vm11, 1.0, %v4740_v3 }
0x2120   :  { %4199 = vmatmul.mubr.msk.f32.vlgmr.msra.gmra.mxu0 %vm1272_vm7, %v5295_v42 }
0x2121   :  { %4213 = vmatpush3.msra.mxu0 %v5132_v56  ;;  %4220 = vmatprep.mubr.msk.f32.mxu0 %vm4741_vm1, %v4740_v3 }
0x2122   :  { %4214 = vmatprep.subr.mxu0 %v4740_v3 }
0x2123   :  { %4215 = vmatpush3.msra.mxu0 %v5134_v57 }
0x2124   :  { %4216 = vmatprep.subr.mxu0 %v4740_v3 }
0x2125   :  { %4217 = vmatpush3.msra.mxu0 %v5138_v58 }
0x2126   :  { %4218 = vmatprep.subr.mxu0 %v4740_v3 }
0x2127   :  { %4219 = vmatpush3.msra.mxu0 %v5142_v59 }
0x2128   :  { %4234 = vmatprep.subr.mxu0 %v4740_v3 }
0x21e0   :  { %v2146_v43 = vpop.f32.mrf.mxu0 }
0x21e1   :  { %v2150_v44 = vadd.f32 %v2146_v43, %v5128_v45 }
0x21e2   :  { %v4200_v46 = vpop.f32.mrf.mxu0 }
0x21e3   :  { %v2221_v47 = vadd.f32 %v2218_v39, %v2150_v44 }
0x21e5   :  { %v3747_v48 = vmul.f32 -1.442695, %v2221_v47 }
0x21e7   :  { %4474 = vpow2.f32 %v3747_v48 }
0x21f4   :  { %v4475_v49 = vpop.eup %4474 }
0x21f5   :  { %v2225_v50 = vadd.f32 1.0, %v4475_v49 }
0x21f7   :  { %4476 = vrcp.f32 %v2225_v50 }
0x2204   :  { %v4477_v51 = vpop.eup %4476 }
0x2205   :  { %v2232_v53 = vmul.f32 %v4477_v51, %v2230_v52  ;;  %v2239_v61 = vsub.f32 1.0, %v4477_v51  ;;  %v2245_v0 = vmul.f32 %v4477_v51, %v5261_v22 }
0x2207   :  { %2234 = vrot.lane.b32.xlu1 %v2232_v53, %s4742_s17 }
0x2279   :  { %v2235_v54 = vpop.permute.xlu1 %2234 }
0x227a   :  { %v2237_v55 = vadd.f32 %v2235_v54, %v2150_v44 }
0x227c   :  { %4478 = vtanh.f32 %v2237_v55 }
0x2289   :  { %v4479_v60 = vpop.eup %4478 }
0x228a   :  { %2241 = vrot.lane.b32.xlu1 %v4479_v60, %s4743_s4 }
0x22fc   :  { %v2242_v63 = vpop.permute.xlu1 %2241 }
0x22fd   :  { %v2244_v5 = vmul.f32 %v2242_v63, %v2239_v61 }
0x22ff   :  { %v5313_v7 = vadd.f32 %v2245_v0, %v2244_v5 }
0x2301   :  { %2248 = vrot.lane.b32.xlu1 %v5313_v7, %s4743_s4 }
0x2305   :  { %2251 = vrot.lane.b32.xlu1 %v2146_v43, %s4744_s8 }
0x2373   :  { %v2249_v9 = vpop.permute.xlu1 %2248 }
0x2374   :  { %4221 = vmatmul.mubr.msk.f32.vlgmr.msra.gmra.mxu0 %vm252_vm4, %v2249_v9 }
0x2375   :  { %4235 = vmatpush3.msra.mxu0 %v5062_v24  ;;  %4242 = vmatprep.mubr.msk.f32.mxu0 %vm4741_vm1, %v4740_v3 }
0x2376   :  { %4236 = vmatprep.subr.mxu0 %v4740_v3 }
0x2377   :  { %4237 = vmatpush3.msra.mxu0 %v5068_v27  ;;  %v2252_v15 = vpop.permute.xlu1 %2251 }
0x2378   :  { %4238 = vmatprep.subr.mxu0 %v4740_v3 }
0x2379   :  { %4239 = vmatpush3.msra.mxu0 %v5077_v30 }
0x237a   :  { %4240 = vmatprep.subr.mxu0 %v4740_v3 }
0x237b   :  { %4241 = vmatpush3.msra.mxu0 %v5088_v32 }
0x237c   :  { %4243 = vmatmul.mubr.msk.f32.vlgmr.msra.gmra.mxu0 %vm252_vm4, %v2249_v9  ;;  %4256 = vmatprep.subr.mxu0 %v4740_v3 }
0x237d   :  { %4257 = vmatpush3.msk.msra.mxu0 %vm1276_vm5, %v5060_v23  ;;  %4264 = vmatprep.mubr.msk.f32.mxu0 %vm4741_vm1, %v4740_v3 }
0x237e   :  { %4258 = vmatprep.subr.mxu0 %v4740_v3 }
0x237f   :  { %4259 = vmatpush3.msra.mxu0 %v5066_v26 }
0x2380   :  { %4260 = vmatprep.subr.mxu0 %v4740_v3 }
0x2381   :  { %4261 = vmatpush3.msra.mxu0 %v5075_v29 }
0x2382   :  { %4262 = vmatprep.subr.mxu0 %v4740_v3 }
0x2383   :  { %4263 = vmatpush3.msra.mxu0 %v5084_v31 }
0x2384   :  { %4278 = vmatprep.subr.mxu0 %v4740_v3 }
0x2434   :  { %v2322_v10 = vpop.f32.mrf.mxu0 }
0x2435   :  { %v2323_v13 = vadd.f32 %v2322_v10, %v2252_v15 }
0x2436   :  { %v4222_v1 = vpop.f32.mrf.mxu0 }
0x2437   :  { %v2326_v14 = vadd.f32 %v2323_v13, %v5183_v11 }
0x2439   :  { %2327 = vst.msk [vmem:[#allocation16 + $0x3] sm:$0x1] %vm1528_vm8, %v2326_v14  ;;  %v2328_v19 = vsel %vm1528_vm8, %v2326_v14, -inf }
0x243a   :  { %2329 = vmax.xlane.f32.xlu1 %v2328_v19 }
0x243c   :  { %v2484_v16 = vpop.f32.mrf.mxu0 }
0x243d   :  { %v2485_v17 = vadd.f32 %v2484_v16, %v5121_v38 }
0x243e   :  { %v4244_v4 = vpop.f32.mrf.mxu0 }
0x243f   :  { %2496 = vrot.lane.b32.xlu0 %v2485_v17, %s4742_s17 }
0x24b1   :  { %v2497_v36 = vpop.permute.xlu0 %2496 }
0x24c3   :  { %v2330_v18 = vpop.xlane.xlu1 %2329 }
0x24c4   :  { %vm2331_vm12 = vcmp.eq.f32.partialorder %v2326_v14, %v2330_v18 }
0x24c5   :  { %v5347_v6 = vsel %vm2331_vm12, 1.0, %v4740_v3 }
0x24c6   :  { %4232 = vmatmul.mubr.msk.f32.vlgmr.msra.gmra.mxu1 %vm1272_vm7, %v5347_v6 }
0x24c7   :  { %4246 = vmatpush3.msra.mxu1 %v5132_v56  ;;  %4253 = vmatprep.mubr.msk.f32.mxu1 %vm4741_vm1, %v4740_v3 }
0x24c8   :  { %4247 = vmatprep.subr.mxu1 %v4740_v3 }
0x24c9   :  { %4248 = vmatpush3.msra.mxu1 %v5134_v57 }
0x24ca   :  { %4249 = vmatprep.subr.mxu1 %v4740_v3 }
0x24cb   :  { %4250 = vmatpush3.msra.mxu1 %v5138_v58 }
0x24cc   :  { %4251 = vmatprep.subr.mxu1 %v4740_v3 }
0x24cd   :  { %4252 = vmatpush3.msra.mxu1 %v5142_v59 }
0x24ce   :  { %4267 = vmatprep.subr.mxu1 %v4740_v3 }
0x2586   :  { %v2413_v21 = vpop.f32.mrf.mxu1 }
0x2587   :  { %v2417_v22 = vadd.f32 %v2413_v21, %v5128_v45  ;;  %2518 = vrot.lane.b32.xlu1 %v2413_v21, %s4744_s8 }
0x2588   :  { %v4233_v8 = vpop.f32.mrf.mxu1 }
0x2589   :  { %v2488_v25 = vadd.f32 %v2485_v17, %v2417_v22 }
0x258b   :  { %v3753_v28 = vmul.f32 -1.442695, %v2488_v25 }
0x258d   :  { %4480 = vpow2.f32 %v3753_v28 }
0x259a   :  { %v4481_v33 = vpop.eup %4480 }
0x259b   :  { %v2492_v34 = vadd.f32 1.0, %v4481_v33 }
0x259d   :  { %4482 = vrcp.f32 %v2492_v34 }
0x25aa   :  { %v4483_v35 = vpop.eup %4482 }
0x25ab   :  { %v2499_v37 = vmul.f32 %v4483_v35, %v2497_v36  ;;  %v2506_v43 = vsub.f32 1.0, %v4483_v35  ;;  %v2512_v46 = vmul.f32 %v4483_v35, %v5313_v7 }
0x25ad   :  { %2501 = vrot.lane.b32.xlu0 %v2499_v37, %s4742_s17 }
0x25f9   :  { %v2519_v50 = vpop.permute.xlu1 %2518 }
0x261f   :  { %v2502_v39 = vpop.permute.xlu0 %2501 }
0x2620   :  { %v2504_v40 = vadd.f32 %v2502_v39, %v2417_v22 }
0x2622   :  { %4484 = vtanh.f32 %v2504_v40 }
0x262f   :  { %v4485_v41 = vpop.eup %4484 }
0x2630   :  { %2508 = vrot.lane.b32.xlu0 %v4485_v41, %s4743_s4 }
0x26a2   :  { %v2509_v44 = vpop.permute.xlu0 %2508 }
0x26a3   :  { %v2511_v47 = vmul.f32 %v2509_v44, %v2506_v43 }
0x26a5   :  { %v5366_v48 = vadd.f32 %v2512_v46, %v2511_v47 }
0x26a7   :  { %2515 = vrot.lane.b32.xlu0 %v5366_v48, %s4743_s4 }
0x2719   :  { %v2516_v49 = vpop.permute.xlu0 %2515 }
0x271a   :  { %4254 = vmatmul.mubr.msk.f32.vlgmr.msra.gmra.mxu1 %vm252_vm4, %v2516_v49 }
0x271b   :  { %4268 = vmatpush3.msra.mxu1 %v5062_v24  ;;  %4275 = vmatprep.mubr.msk.f32.mxu1 %vm4741_vm1, %v4740_v3 }
0x271c   :  { %4269 = vmatprep.subr.mxu1 %v4740_v3 }
0x271d   :  { %4270 = vmatpush3.msra.mxu1 %v5068_v27 }
0x271e   :  { %4271 = vmatprep.subr.mxu1 %v4740_v3 }
0x271f   :  { %4272 = vmatpush3.msra.mxu1 %v5077_v30 }
0x2720   :  { %4273 = vmatprep.subr.mxu1 %v4740_v3 }
0x2721   :  { %4274 = vmatpush3.msra.mxu1 %v5088_v32 }
0x2722   :  { %4276 = vmatmul.mubr.msk.f32.vlgmr.msra.gmra.mxu1 %vm252_vm4, %v2516_v49  ;;  %4289 = vmatprep.subr.mxu1 %v4740_v3 }
0x2723   :  { %4290 = vmatpush3.msk.msra.mxu1 %vm1276_vm5, %v5060_v23  ;;  %4297 = vmatprep.mubr.msk.f32.mxu1 %vm4741_vm1, %v4740_v3 }
0x2724   :  { %4291 = vmatprep.subr.mxu1 %v4740_v3 }
0x2725   :  { %4292 = vmatpush3.msra.mxu1 %v5066_v26 }
0x2726   :  { %4293 = vmatprep.subr.mxu1 %v4740_v3 }
0x2727   :  { %4294 = vmatpush3.msra.mxu1 %v5075_v29 }
0x2728   :  { %4295 = vmatprep.subr.mxu1 %v4740_v3 }
0x2729   :  { %4296 = vmatpush3.msra.mxu1 %v5084_v31 }
0x272a   :  { %4311 = vmatprep.subr.mxu1 %v4740_v3 }
0x27da   :  { %v2589_v51 = vpop.f32.mrf.mxu1 }
0x27db   :  { %v2590_v52 = vadd.f32 %v2589_v51, %v2519_v50 }
0x27dc   :  { %v4255_v53 = vpop.f32.mrf.mxu1 }
0x27dd   :  { %v2593_v54 = vadd.f32 %v2590_v52, %v5183_v11 }
0x27df   :  { %2594 = vst.msk [vmem:[#allocation16 + $0x4] sm:$0x1] %vm1528_vm8, %v2593_v54  ;;  %v2595_v55 = vsel %vm1528_vm8, %v2593_v54, -inf }
0x27e0   :  { %2596 = vmax.xlane.f32.xlu0 %v2595_v55 }
0x27e2   :  { %v2751_v60 = vpop.f32.mrf.mxu1 }
0x27e3   :  { %v2752_v61 = vadd.f32 %v2751_v60, %v5121_v38 }
0x27e4   :  { %v4277_v63 = vpop.f32.mrf.mxu1 }
0x27e5   :  { %2763 = vrot.lane.b32.xlu1 %v2752_v61, %s4742_s17 }
0x2857   :  { %v2764_v16 = vpop.permute.xlu1 %2763 }
0x2869   :  { %v2597_v0 = vpop.xlane.xlu0 %2596 }
0x286a   :  { %vm2598_vm13 = vcmp.eq.f32.partialorder %v2593_v54, %v2597_v0 }
0x286b   :  { %v5399_v5 = vsel %vm2598_vm13, 1.0, %v4740_v3 }
0x286c   :  { %4265 = vmatmul.mubr.msk.f32.vlgmr.msra.gmra.mxu0 %vm1272_vm7, %v5399_v5 }
0x286d   :  { %4279 = vmatpush3.msra.mxu0 %v5132_v56  ;;  %4286 = vmatprep.mubr.msk.f32.mxu0 %vm4741_vm1, %v4740_v3 }
0x286e   :  { %4280 = vmatprep.subr.mxu0 %v4740_v3 }
0x286f   :  { %4281 = vmatpush3.msra.mxu0 %v5134_v57 }
0x2870   :  { %4282 = vmatprep.subr.mxu0 %v4740_v3 }
0x2871   :  { %4283 = vmatpush3.msra.mxu0 %v5138_v58 }
0x2872   :  { %4284 = vmatprep.subr.mxu0 %v4740_v3 }
0x2873   :  { %4285 = vmatpush3.msra.mxu0 %v5142_v59 }
0x2874   :  { %4300 = vmatprep.subr.mxu0 %v4740_v3 }
0x292c   :  { %v2680_v7 = vpop.f32.mrf.mxu0 }
0x292d   :  { %v2684_v9 = vadd.f32 %v2680_v7, %v5128_v45  ;;  %2785 = vrot.lane.b32.xlu0 %v2680_v7, %s4744_s8 }
0x292e   :  { %v4266_v15 = vpop.f32.mrf.mxu0 }
0x292f   :  { %v2755_v10 = vadd.f32 %v2752_v61, %v2684_v9  ;;  %v5481_v15 = vld [vmem:[#allocation12 + $0x10] sm:$0xff] }
0x2931   :  { %v3759_v13 = vmul.f32 -1.442695, %v2755_v10  ;;  %v5485_v10 = vld [vmem:[#allocation12 + $0x8] sm:$0xff] }
0x2933   :  { %4486 = vpow2.f32 %v3759_v13  ;;  %v4513_v13 = vld [vmem:[#allocation9 + $0x18] sm:$0x1] }
0x2940   :  { %v4487_v1 = vpop.eup %4486 }
0x2941   :  { %v2759_v14 = vadd.f32 1.0, %v4487_v1  ;;  %v4514_v1 = vld [vmem:[#allocation9 + $0x10] sm:$0xff] }
0x2943   :  { %4488 = vrcp.f32 %v2759_v14  ;;  %v4515_v14 = vld [vmem:[#allocation9 + $0x8] sm:$0xff] }
0x2950   :  { %v4489_v19 = vpop.eup %4488 }
0x2951   :  { %v2766_v17 = vmul.f32 %v4489_v19, %v2764_v16  ;;  %v2773_v22 = vsub.f32 1.0, %v4489_v19  ;;  %v2779_v25 = vmul.f32 %v4489_v19, %v5366_v48 }
0x2953   :  { %2768 = vrot.lane.b32.xlu1 %v2766_v17, %s4742_s17 }
0x29c5   :  { %v2769_v4 = vpop.permute.xlu1 %2768 }
0x29c6   :  { %v2771_v18 = vadd.f32 %v2769_v4, %v2684_v9  ;;  %v5475_v9 = vld [vmem:[#allocation12 + $0x18] sm:$0xff] }
0x29c8   :  { %4490 = vtanh.f32 %v2771_v18 }
0x29d5   :  { %v4491_v21 = vpop.eup %4490 }
0x29d6   :  { %2775 = vrot.lane.b32.xlu1 %v4491_v21, %s4743_s4 }
0x2a48   :  { %v2776_v8 = vpop.permute.xlu1 %2775 }
0x2a49   :  { %v2778_v28 = vmul.f32 %v2776_v8, %v2773_v22 }
0x2a4b   :  { %v5418_v33 = vadd.f32 %v2779_v25, %v2778_v28 }
0x2a4d   :  { %2782 = vrot.lane.b32.xlu1 %v5418_v33, %s4743_s4 }
0x2abf   :  { %v2783_v34 = vpop.permute.xlu1 %2782 }
0x2ac0   :  { %4287 = vmatmul.mubr.msk.f32.vlgmr.msra.gmra.mxu0 %vm252_vm4, %v2783_v34 }
0x2ac1   :  { %4301 = vmatpush3.msra.mxu0 %v5062_v24  ;;  %4308 = vmatprep.mubr.msk.f32.mxu0 %vm4741_vm1, %v4740_v3  ;;  %v2786_v24 = vpop.permute.xlu0 %2785 }
0x2ac2   :  { %4302 = vmatprep.subr.mxu0 %v4740_v3 }
0x2ac3   :  { %4303 = vmatpush3.msra.mxu0 %v5068_v27 }
0x2ac4   :  { %4304 = vmatprep.subr.mxu0 %v4740_v3 }
0x2ac5   :  { %4305 = vmatpush3.msra.mxu0 %v5077_v30 }
0x2ac6   :  { %4306 = vmatprep.subr.mxu0 %v4740_v3 }
0x2ac7   :  { %4307 = vmatpush3.msra.mxu0 %v5088_v32 }
0x2ac8   :  { %4309 = vmatmul.mubr.msk.f32.vlgmr.msra.gmra.mxu0 %vm252_vm4, %v2783_v34  ;;  %4322 = vmatprep.subr.mxu0 %v4740_v3 }
0x2ac9   :  { %4323 = vmatpush3.msk.msra.mxu0 %vm1276_vm5, %v5060_v23  ;;  %4330 = vmatprep.mubr.msk.f32.mxu0 %vm4741_vm1, %v4740_v3 }
0x2aca   :  { %4324 = vmatprep.subr.mxu0 %v4740_v3 }
0x2acb   :  { %4325 = vmatpush3.msra.mxu0 %v5066_v26 }
0x2acc   :  { %4326 = vmatprep.subr.mxu0 %v4740_v3 }
0x2acd   :  { %4327 = vmatpush3.msra.mxu0 %v5075_v29 }
0x2ace   :  { %4328 = vmatprep.subr.mxu0 %v4740_v3 }
0x2acf   :  { %4329 = vmatpush3.msra.mxu0 %v5084_v31 }
0x2ad0   :  { %4344 = vmatprep.subr.mxu0 %v4740_v3 }
0x2b80   :  { %v2856_v27 = vpop.f32.mrf.mxu0 }
0x2b81   :  { %v2857_v23 = vadd.f32 %v2856_v27, %v2786_v24 }
0x2b82   :  { %v4288_v30 = vpop.f32.mrf.mxu0 }
0x2b83   :  { %v2860_v35 = vadd.f32 %v2857_v23, %v5183_v11 }
0x2b85   :  { %2861 = vst.msk [vmem:[#allocation16 + $0x5] sm:$0x1] %vm1528_vm8, %v2860_v35  ;;  %v2862_v26 = vsel %vm1528_vm8, %v2860_v35, -inf }
0x2b86   :  { %2863 = vmax.xlane.f32.xlu1 %v2862_v26 }
0x2b88   :  { %v3018_v36 = vpop.f32.mrf.mxu0 }
0x2b89   :  { %v3019_v29 = vadd.f32 %v3018_v36, %v5121_v38 }
0x2b8a   :  { %v4310_v37 = vpop.f32.mrf.mxu0 }
0x2b8b   :  { %3030 = vrot.lane.b32.xlu0 %v3019_v29, %s4742_s17 }
0x2bfd   :  { %v3031_v50 = vpop.permute.xlu0 %3030 }
0x2c0f   :  { %v2864_v31 = vpop.xlane.xlu1 %2863 }
0x2c10   :  { %vm2865_vm14 = vcmp.eq.f32.partialorder %v2860_v35, %v2864_v31 }
0x2c11   :  { %v5451_v39 = vsel %vm2865_vm14, 1.0, %v4740_v3 }
0x2c12   :  { %4298 = vmatmul.mubr.msk.f32.vlgmr.msra.gmra.mxu1 %vm1272_vm7, %v5451_v39 }
0x2c13   :  { %4312 = vmatpush3.msra.mxu1 %v5132_v56  ;;  %4319 = vmatprep.mubr.msk.f32.mxu1 %vm4741_vm1, %v4740_v3 }
0x2c14   :  { %4313 = vmatprep.subr.mxu1 %v4740_v3 }
0x2c15   :  { %4314 = vmatpush3.msra.mxu1 %v5134_v57 }
0x2c16   :  { %4315 = vmatprep.subr.mxu1 %v4740_v3 }
0x2c17   :  { %4316 = vmatpush3.msra.mxu1 %v5138_v58 }
0x2c18   :  { %4317 = vmatprep.subr.mxu1 %v4740_v3 }
0x2c19   :  { %4318 = vmatpush3.msra.mxu1 %v5142_v59 }
0x2c1a   :  { %4333 = vmatprep.subr.mxu1 %v4740_v3 }
0x2cd2   :  { %v2947_v40 = vpop.f32.mrf.mxu1 }
0x2cd3   :  { %v2951_v41 = vadd.f32 %v2947_v40, %v5128_v45  ;;  %3052 = vrot.lane.b32.xlu1 %v2947_v40, %s4744_s8 }
0x2cd4   :  { %v4299_v43 = vpop.f32.mrf.mxu1 }
0x2cd5   :  { %v3022_v44 = vadd.f32 %v3019_v29, %v2951_v41 }
0x2cd7   :  { %v3765_v46 = vmul.f32 -1.442695, %v3022_v44  ;;  %v4517_v44 = vld [vmem:[#allocation12] sm:$0xff] }
0x2cd9   :  { %4492 = vpow2.f32 %v3765_v46  ;;  %v1264_v46 = vstv %s3721_s12 }
0x2cda   :  { %vm1265_vm0 = vcmp.eq.s32.totalorder %v4909_v12, %v1264_v46  ;;  %v4518_v12 = vld [vmem:[%s5614_s9] sm:$0x1]  ;;  %s4746_s9 = smov [#allocation17]  }
0x2cdb   :  { %s3686_s28 = sshll.u32 %s4746_s9, 4  ;;  %s3687_s28 = int_to_ptr.vmem [resolvable:$true] %s3686_s28 }
0x2cdc   :  { %s4675_s3 = scalar_lea.vmem %s3687_s28, 16  ;;  %s4679_s29 = scalar_lea.vmem %s3687_s28, 32 }
0x2cdd   :  { %p4676_p12 = scmp.ne.s32.totalorder %s3687_s28, %s4675_s3  ;;  %p4680_p13 = scmp.lt.s32.totalorder %s3687_s28, %s3687_s28 }
0x2cde   :  { %p4681_p0 = scmp.lt.s32.totalorder %s4679_s29, %s4675_s3 }
0x2ce0   :  { %p4682_p1 = por %p4681_p0, %p4680_p13 }
0x2ce2   :  { %p4683_p2 = pnand %p4682_p1, %p4676_p12 }
0x2ce6   :  { %v4493_v47 = vpop.eup %4492 }
0x2ce7   :  { %v3026_v48 = vadd.f32 1.0, %v4493_v47 }
0x2ce9   :  { %4494 = vrcp.f32 %v3026_v48 }
0x2cf6   :  { %v4495_v49 = vpop.eup %4494 }
0x2cf7   :  { %v3033_v51 = vmul.f32 %v4495_v49, %v3031_v50  ;;  %v3040_v55 = vsub.f32 1.0, %v4495_v49  ;;  %v3046_v61 = vmul.f32 %v4495_v49, %v5418_v33  ;;  %v5540_v50 = vsel %vm1265_vm0, 1.0, %v4740_v3 }
0x2cf9   :  { %3035 = vrot.lane.b32.xlu0 %v3033_v51, %s4742_s17 }
0x2d45   :  { %v3053_v19 = vpop.permute.xlu1 %3052 }
0x2d6b   :  { %v3036_v52 = vpop.permute.xlu0 %3035 }
0x2d6c   :  { %v3038_v53 = vadd.f32 %v3036_v52, %v2951_v41 }
0x2d6e   :  { %4496 = vtanh.f32 %v3038_v53 }
0x2d7b   :  { %v4497_v54 = vpop.eup %4496 }
0x2d7c   :  { %3042 = vrot.lane.b32.xlu0 %v4497_v54, %s4743_s4  ;;  %v1536_v54 = vmul.f32 %v5191_v20, %v5540_v50  ;;  %v2334_v20 = vmul.f32 %v5347_v6, %v5540_v50 }
0x2dee   :  { %v3043_v60 = vpop.permute.xlu0 %3042 }
0x2def   :  { %v3045_v63 = vmul.f32 %v3043_v60, %v3040_v55 }
0x2df1   :  { %v5470_v0 = vadd.f32 %v3046_v61, %v3045_v63  ;;  %v1537_v61 = vsel %vm1528_vm8, %v1536_v54, 0.0  ;;  %v2067_v63 = vmul.f32 %v5295_v42, %v5540_v50  ;;  %v2868_v42 = vmul.f32 %v5451_v39, %v5540_v50 }
0x2df3   :  { %3049 = vrot.lane.b32.xlu0 %v5470_v0, %s4743_s4 }
0x2e65   :  { %v3050_v7 = vpop.permute.xlu0 %3049 }
0x2e66   :  { %4320 = vmatmul.mubr.msk.f32.vlgmr.msra.gmra.mxu1 %vm252_vm4, %v3050_v7 }
0x2e67   :  { %4334 = vmatpush3.msra.mxu1 %v5475_v9  ;;  %4341 = vmatprep.mubr.msk.f32.mxu1 %vm4741_vm1, %v4740_v3 }
0x2e68   :  { %4335 = vmatprep.subr.mxu1 %v4740_v3 }
0x2e69   :  { %4336 = vmatpush3.msra.mxu1 %v5481_v15 }
0x2e6a   :  { %4337 = vmatprep.subr.mxu1 %v4740_v3 }
0x2e6b   :  { %4338 = vmatpush3.msra.mxu1 %v5485_v10 }
0x2e6c   :  { %4339 = vmatprep.subr.mxu1 %v4740_v3 }
0x2e6d   :  { %4340 = vmatpush3.msra.mxu1 %v5088_v32  ;;  %v4516_v32 = vld [vmem:[#allocation9] sm:$0xff] }
0x2e6e   :  { %4342 = vmatmul.mubr.msk.f32.vlgmr.msra.gmra.mxu1 %vm252_vm4, %v3050_v7  ;;  %4355 = vmatprep.subr.mxu1 %v4740_v3  ;;  %v2068_v7 = vsel %vm1528_vm8, %v2067_v63, 0.0 }
0x2e6f   :  { %4356 = vmatpush3.msk.msra.mxu1 %vm1276_vm5, %v4513_v13  ;;  %4363 = vmatprep.mubr.msk.f32.mxu1 %vm4741_vm1, %v4740_v3 }
0x2e70   :  { %4357 = vmatprep.subr.mxu1 %v4740_v3 }
0x2e71   :  { %4358 = vmatpush3.msra.mxu1 %v4514_v1  ;;  %v2869_v1 = vsel %vm1528_vm8, %v2868_v42, 0.0 }
0x2e72   :  { %4359 = vmatprep.subr.mxu1 %v4740_v3 }
0x2e73   :  { %4360 = vmatpush3.msra.mxu1 %v4515_v14 }
0x2e74   :  { %4361 = vmatprep.subr.mxu1 %v4740_v3 }
0x2e75   :  { %4362 = vmatpush3.msra.mxu1 %v4516_v32 }
0x2e76   :  { %4377 = vmatprep.subr.mxu1 %v4740_v3 }
0x2f26   :  { %v3123_v16 = vpop.f32.mrf.mxu1 }
0x2f27   :  { %v3124_v17 = vadd.f32 %v3123_v16, %v3053_v19  ;;  %v4519_v19 = vld [vmem:[#allocation13 + $0x18] sm:$0xff]  ;;  %v4520_v16 = vld [vmem:[#allocation13 + $0x10] sm:$0xff] }
0x2f28   :  { %v4321_v4 = vpop.f32.mrf.mxu1 }
0x2f29   :  { %v3127_v18 = vadd.f32 %v3124_v17, %v5183_v11  ;;  %v4521_v17 = vld [vmem:[#allocation13 + $0x8] sm:$0xff]  ;;  %v4522_v4 = vld [vmem:[#allocation13] sm:$0xff] }
0x2f2b   :  { %3128 = vst.msk [vmem:[#allocation16 + $0x6] sm:$0x1] %vm1528_vm8, %v3127_v18  ;;  %v3129_v21 = vsel %vm1528_vm8, %v3127_v18, -inf }
0x2f2c   :  { %3130 = vmax.xlane.f32.xlu0 %v3129_v21 }
0x2f2e   :  { %v3285_v22 = vpop.f32.mrf.mxu1 }
0x2f2f   :  { %v3286_v8 = vadd.f32 %v3285_v22, %v5121_v38 }
0x2f30   :  { %v4343_v25 = vpop.f32.mrf.mxu1 }
0x2f31   :  { %3297 = vrot.lane.b32.xlu1 %v3286_v8, %s4742_s17 }
0x2fb5   :  { %v3131_v28 = vpop.xlane.xlu0 %3130 }
0x2fb6   :  { %vm3132_vm15 = vcmp.eq.f32.partialorder %v3127_v18, %v3131_v28 }
0x2fb7   :  { %v5505_v33 = vsel %vm3132_vm15, 1.0, %v4740_v3 }
0x2fb8   :  { %4331 = vmatmul.mubr.msk.f32.vlgmr.msra.gmra.mxu0 %vm1272_vm7, %v5505_v33  ;;  %v3135_v13 = vmul.f32 %v5505_v33, %v5540_v50 }
0x2fb9   :  { %4345 = vmatpush3.msra.mxu0 %v5132_v56  ;;  %4352 = vmatprep.mubr.msk.f32.mxu0 %vm4741_vm1, %v4740_v3 }
0x2fba   :  { %4346 = vmatprep.subr.mxu0 %v4740_v3  ;;  %v3136_v6 = vsel %vm1528_vm8, %v3135_v13, 0.0 }
0x2fbb   :  { %4347 = vmatpush3.msra.mxu0 %v5134_v57 }
0x2fbc   :  { %4348 = vmatprep.subr.mxu0 %v4740_v3 }
0x2fbd   :  { %4349 = vmatpush3.msra.mxu0 %v5138_v58  ;;  %v3298_v58 = vpop.permute.xlu1 %3297 }
0x2fbe   :  { %4350 = vmatprep.subr.mxu0 %v4740_v3 }
0x2fbf   :  { %4351 = vmatpush3.msra.mxu0 %v5142_v59 }
0x2fc0   :  { %4366 = vmatprep.subr.mxu0 %v4740_v3 }
0x3078   :  { %v3214_v38 = vpop.f32.mrf.mxu0 }
0x3079   :  { %v3218_v56 = vadd.f32 %v3214_v38, %v5128_v45  ;;  %3319 = vrot.lane.b32.xlu0 %v3214_v38, %s4744_s8 }
0x307a   :  { %v4332_v34 = vpop.f32.mrf.mxu0 }
0x307b   :  { %v3289_v24 = vadd.f32 %v3286_v8, %v3218_v56 }
0x307d   :  { %v3771_v27 = vmul.f32 -1.442695, %v3289_v24 }
0x307f   :  { %4498 = vpow2.f32 %v3771_v27 }
0x308c   :  { %v4499_v57 = vpop.eup %4498 }
0x308d   :  { %v3293_v23 = vadd.f32 1.0, %v4499_v57 }
0x308f   :  { %4500 = vrcp.f32 %v3293_v23 }
0x309c   :  { %v4501_v30 = vpop.eup %4500 }
0x309d   :  { %v3300_v35 = vmul.f32 %v4501_v30, %v3298_v58  ;;  %v3307_v29 = vsub.f32 1.0, %v4501_v30  ;;  %v3313_v31 = vmul.f32 %v4501_v30, %v5470_v0 }
0x309f   :  { %3302 = vrot.lane.b32.xlu1 %v3300_v35, %s4742_s17  ;;  %v1800_v35 = vmul.f32 %v5243_v62, %v5540_v50 }
0x30eb   :  { %v3320_v47 = vpop.permute.xlu0 %3319 }
0x3111   :  { %v3303_v59 = vpop.permute.xlu1 %3302 }
0x3112   :  { %v3305_v26 = vadd.f32 %v3303_v59, %v3218_v56  ;;  %v1801_v59 = vsel %vm1528_vm8, %v1800_v35, 0.0 }
0x3114   :  { %4502 = vtanh.f32 %v3305_v26 }
0x3121   :  { %v4503_v36 = vpop.eup %4502 }
0x3122   :  { %3309 = vrot.lane.b32.xlu1 %v4503_v36, %s4743_s4 }
0x3194   :  { %v3310_v37 = vpop.permute.xlu1 %3309 }
0x3195   :  { %v3312_v40 = vmul.f32 %v3310_v37, %v3307_v29 }
0x3197   :  { %v5524_v41 = vadd.f32 %v3313_v31, %v3312_v40 }
0x3199   :  { %3316 = vrot.lane.b32.xlu1 %v5524_v41, %s4743_s4 }
0x320b   :  { %v3317_v43 = vpop.permute.xlu1 %3316 }
0x320c   :  { %4353 = vmatmul.mubr.msk.f32.vlgmr.msra.gmra.mxu0 %vm252_vm4, %v3317_v43 }
0x320d   :  { %4367 = vmatpush3.msra.mxu0 %v5475_v9  ;;  %4374 = vmatprep.mubr.msk.f32.mxu0 %vm4741_vm1, %v4740_v3  ;;  %v2335_v9 = vsel %vm1528_vm8, %v2334_v20, 0.0 }
0x320e   :  { %4368 = vmatprep.subr.mxu0 %v4740_v3 }
0x320f   :  { %4369 = vmatpush3.msra.mxu0 %v5481_v15  ;;  %v2601_v15 = vmul.f32 %v5399_v5, %v5540_v50 }
0x3210   :  { %4370 = vmatprep.subr.mxu0 %v4740_v3 }
0x3211   :  { %4371 = vmatpush3.msra.mxu0 %v5485_v10  ;;  %v2602_v10 = vsel %vm1528_vm8, %v2601_v15, 0.0 }
0x3212   :  { %4372 = vmatprep.subr.mxu0 %v4740_v3 }
0x3213   :  { %4373 = vmatpush3.msra.mxu0 %v4517_v44 }
0x3214   :  { %4375 = vmatmul.mubr.msk.f32.vlgmr.msra.gmra.mxu0 %vm252_vm4, %v3317_v43 }
0x32cc   :  { %v3390_v48 = vpop.f32.mrf.mxu0 }
0x32cd   :  { %v3391_v49 = vadd.f32 %v3390_v48, %v3320_v47 }
0x32ce   :  { %v4354_v51 = vpop.f32.mrf.mxu0 }
0x32cf   :  { %v3394_v52 = vadd.f32 %v3391_v49, %v5183_v11  ;;  %v4745_v49 = vmov 1  }
0x32d1   :  { %3395 = vst.msk [vmem:[#allocation16 + $0x7] sm:$0x1] %vm1528_vm8, %v3394_v52  ;;  %v3396_v53 = vsel %vm1528_vm8, %v3394_v52, -inf }
0x32d2   :  { %3397 = vmax.xlane.f32.xlu1 %v3396_v53 }
0x32d4   :  { %v3552_v55 = vpop.f32.mrf.mxu0 }
0x32d5   :  { %v3553_v60 = vadd.f32 %v4518_v12, %v3552_v55 }
0x32d6   :  { %v4376_v0 = vpop.f32.mrf.mxu0  ;;  %1538 = vadd.xlane.f32.xlu1 %v1537_v61 }
0x32d7   :  { %3564 = vrot.lane.b32.xlu0 %v3553_v60, %s4742_s17 }
0x32da   :  { %2069 = vadd.xlane.f32.xlu1 %v2068_v7 }
0x32de   :  { %2336 = vadd.xlane.f32.xlu1 %v2335_v9 }
0x32e2   :  { %2603 = vadd.xlane.f32.xlu1 %v2602_v10 }
0x32e6   :  { %2870 = vadd.xlane.f32.xlu1 %v2869_v1 }
0x32ea   :  { %3137 = vadd.xlane.f32.xlu1 %v3136_v6 }
0x3349   :  { %v3565_v56 = vpop.permute.xlu0 %3564 }
0x335b   :  { %v3398_v14 = vpop.xlane.xlu1 %3397 }
0x335c   :  { %vm3399_vm2 = vcmp.eq.f32.partialorder %v3394_v52, %v3398_v14 }
0x335d   :  { %v3773_v5 = vsel %vm3399_vm2, 1.0, %v4740_v3 }
0x335e   :  { %v3402_v32 = vmul.f32 %v3773_v5, %v5540_v50  ;;  %4364 = vmatmul.mubr.msk.f32.vlgmr.msra.gmra.mxu1 %vm1272_vm7, %v3773_v5 }
0x335f   :  { %4378 = vmatpush3.msra.mxu1 %v4519_v19  ;;  %4385 = vmatprep.mubr.msk.f32.mxu1 %vm4741_vm1, %v4740_v3  ;;  %v1539_v36 = vpop.xlane.xlu1 %1538 }
0x3360   :  { %v3403_v39 = vsel %vm1528_vm8, %v3402_v32, 0.0  ;;  %4379 = vmatprep.subr.mxu1 %v4740_v3  ;;  %vm1540_vm1 = vcmp.gt.f32.partialorder %v1539_v36, 0.5 }
0x3361   :  { %3404 = vadd.xlane.f32.xlu1 %v3403_v39  ;;  %4380 = vmatpush3.msra.mxu1 %v4520_v16  ;;  %v1541_v40 = vsel %vm1540_vm1, 1, %v4739_v2 }
0x3362   :  { %4381 = vmatprep.subr.mxu1 %v4740_v3  ;;  %v1542_v43 = vsel %vm1540_vm1, %v1541_v40, 0 }
0x3363   :  { %4382 = vmatpush3.msra.mxu1 %v4521_v17  ;;  %v2070_v29 = vpop.xlane.xlu1 %2069  ;;  %vm1806_vm6 = vcmp.eq.s32.totalorder %v1542_v43, 0 }
0x3364   :  { %4383 = vmatprep.subr.mxu1 %v4740_v3  ;;  %vm2071_vm3 = vcmp.gt.f32.partialorder %v2070_v29, 0.5  ;;  %v1807_v50 = vsel %vm1806_vm6, 2, %v4745_v49 }
0x3365   :  { %4384 = vmatpush3.msra.mxu1 %v4522_v4  ;;  %v2072_v46 = vsel %vm2071_vm3, 1, %v4739_v2 }
0x3367   :  { %v2337_v37 = vpop.xlane.xlu1 %2336 }
0x3368   :  { %vm2338_vm7 = vcmp.gt.f32.partialorder %v2337_v37, 0.5 }
0x3369   :  { %v2339_v51 = vsel %vm2338_vm7, 1, %v4739_v2 }
0x336b   :  { %v2604_v31 = vpop.xlane.xlu1 %2603 }
0x341e   :  { %v3481_v18 = vpop.f32.mrf.mxu1 }
0x341f   :  { %v3485_v21 = vadd.f32 %v3481_v18, %v5128_v45  ;;  %3586 = vrot.lane.b32.xlu1 %v3481_v18, %s4744_s8 }
0x3420   :  { %v4365_v22 = vpop.f32.mrf.mxu1 }
0x3421   :  { %v3556_v8 = vadd.f32 %v3553_v60, %v3485_v21 }
0x3423   :  { %v3777_v25 = vmul.f32 -1.442695, %v3556_v8 }
0x3425   :  { %4504 = vpow2.f32 %v3777_v25 }
0x3432   :  { %v4505_v28 = vpop.eup %4504 }
0x3433   :  { %v3560_v33 = vadd.f32 1.0, %v4505_v28 }
0x3435   :  { %4506 = vrcp.f32 %v3560_v33 }
0x3442   :  { %v4507_v38 = vpop.eup %4506 }
0x3443   :  { %v3567_v34 = vmul.f32 %v4507_v38, %v3565_v56  ;;  %v3574_v45 = vsub.f32 1.0, %v4507_v38  ;;  %v3580_v23 = vmul.f32 %v4507_v38, %v5524_v41  ;;  %v2871_v41 = vpop.xlane.xlu1 %2870 }
0x3444   :  { %vm2872_vm12 = vcmp.gt.f32.partialorder %v2871_v41, 0.5 }
0x3445   :  { %3569 = vrot.lane.b32.xlu0 %v3567_v34, %s4742_s17  ;;  %v2873_v61 = vsel %vm2872_vm12, 1, %v4739_v2 }
0x3447   :  { %v3138_v47 = vpop.xlane.xlu1 %3137 }
0x3448   :  { %vm3139_vm15 = vcmp.gt.f32.partialorder %v3138_v47, 0.5 }
0x3449   :  { %v3140_v7 = vsel %vm3139_vm15, 1, %v4739_v2 }
0x344b   :  { %v3405_v55 = vpop.xlane.xlu1 %3404 }
0x344c   :  { %vm3406_vm1 = vcmp.gt.f32.partialorder %v3405_v55, 0.5 }
0x344d   :  { %v3407_v15 = vsel %vm3406_vm1, 1, %v4739_v2 }
0x34b7   :  { %v3570_v3 = vpop.permute.xlu0 %3569 }
0x34b8   :  { %v3572_v24 = vadd.f32 %v3570_v3, %v3485_v21 }
0x34ba   :  { %4508 = vtanh.f32 %v3572_v24 }
0x34c7   :  { %v4509_v27 = vpop.eup %4508 }
0x34c8   :  { %3576 = vrot.lane.b32.xlu0 %v4509_v27, %s4743_s4 }
0x353a   :  { %v3577_v57 = vpop.permute.xlu0 %3576 }
0x353b   :  { %v3579_v30 = vmul.f32 %v3577_v57, %v3574_v45 }
0x353d   :  { %v3581_v58 = vadd.f32 %v3580_v23, %v3579_v30 }
0x353f   :  { %3583 = vrot.lane.b32.xlu0 %v3581_v58, %s4743_s4 }
0x355e   :  { %1802 = vadd.xlane.f32.xlu0 %v1801_v59 }
0x35b1   :  { %v3584_v26 = vpop.permute.xlu0 %3583 }
0x35b2   :  { %4386 = vmatmul.mubr.msk.f32.vlgmr.msra.gmra.mxu1 %vm252_vm4, %v3584_v26  ;;  %vm2605_vm4 = vcmp.gt.f32.partialorder %v2604_v31, 0.5 }
0x35b3   :  { %v2606_v54 = vsel %vm2605_vm4, 1, %v4739_v2 }
0x35e7   :  { %v1803_v44 = vpop.xlane.xlu0 %1802 }
0x35e8   :  { %vm1804_vm5 = vcmp.gt.f32.partialorder %v1803_v44, 0.5 }
0x35e9   :  { %v1805_v62 = vsel %vm1804_vm5, 1, %v4739_v2 }
0x35ea   :  { %vm1808_vm9 = vcmp.gt.s32.totalorder %v1542_v43, %v1805_v62 }
0x35eb   :  { %v1809_v48 = vsel %vm1808_vm9, %v1542_v43, %v1805_v62 }
0x35ec   :  { %vm2073_vm10 = vcmp.eq.s32.totalorder %v1809_v48, 0  ;;  %vm2075_vm11 = vcmp.gt.s32.totalorder %v1809_v48, %v2072_v46 }
0x35ed   :  { %v2074_v52 = vsel %vm2073_vm10, 3, %v1807_v50  ;;  %v2076_v53 = vsel %vm2075_vm11, %v1809_v48, %v2072_v46  ;;  %vm3666_vm11 = vcmask 0  }
0x35ee   :  { %vm2340_vm13 = vcmp.eq.s32.totalorder %v2076_v53, 0  ;;  %vm2342_vm14 = vcmp.gt.s32.totalorder %v2076_v53, %v2339_v51 }
0x35ef   :  { %v2341_v12 = vsel %vm2340_vm13, 4, %v2074_v52  ;;  %v2343_v60 = vsel %vm2342_vm14, %v2076_v53, %v2339_v51 }
0x35f0   :  { %vm2609_vm0 = vcmp.gt.s32.totalorder %v2343_v60, %v2606_v54  ;;  %vm2607_vm2 = vcmp.eq.s32.totalorder %v2343_v60, 0 }
0x35f1   :  { %v2608_v63 = vsel %vm2607_vm2, 5, %v2341_v12  ;;  %v2610_v0 = vsel %vm2609_vm0, %v2343_v60, %v2606_v54 }
0x35f2   :  { %vm2874_vm3 = vcmp.eq.s32.totalorder %v2610_v0, 0  ;;  %vm2876_vm5 = vcmp.gt.s32.totalorder %v2610_v0, %v2873_v61 }
0x35f3   :  { %v2875_v20 = vsel %vm2874_vm3, 6, %v2608_v63  ;;  %v2877_v9 = vsel %vm2876_vm5, %v2610_v0, %v2873_v61 }
0x35f4   :  { %vm3141_vm6 = vcmp.eq.s32.totalorder %v2877_v9, 0  ;;  %vm3143_vm7 = vcmp.gt.s32.totalorder %v2877_v9, %v3140_v7 }
0x35f5   :  { %v3142_v10 = vsel %vm3141_vm6, 7, %v2875_v20  ;;  %v3144_v42 = vsel %vm3143_vm7, %v2877_v9, %v3140_v7 }
0x35f6   :  { %vm3408_vm9 = vcmp.eq.s32.totalorder %v3144_v42, 0  ;;  %vm3410_vm4 = vcmp.gt.s32.totalorder %v3144_v42, %v3407_v15 }
0x35f7   :  { %v3409_v13 = vsel %vm3408_vm9, 8, %v3142_v10  ;;  %v3411_v1 = vsel %vm3410_vm4, %v3144_v42, %v3407_v15 }
0x35f8   :  { %vm3663_vm10 = vcmp.eq.s32.totalorder %v3411_v1, 0 }
0x35f9   :  { %v3664_v6 = vsel %vm3663_vm10, 9, %v3409_v13 }
0x35fa   :  { %v3779_v14 = vadd.s32 4294967295, %v3664_v6 }
0x35fc   :  { %3667 = vst.msk [vmem:[#allocation17] sm:$0x1] %vm3666_vm11, %v3779_v14 }
0x35fd   :  { %4686 = shalt.err (!%p4683_p2)
}
0x35fe   :  { %3689 = dma.vmem_to_hbm [thread:$0]  %s3687_s28, 16, %s5619_s14, [#allocation18]   ;;  %v3587_v2 = vpop.permute.xlu1 %3586 }
0x35ff   :  { %s4747_s6 = smov [#allocation16]  }
0x3600   :  { %s3673_s5 = sshll.u32 %s4747_s6, 4  ;;  %s3674_s5 = int_to_ptr.vmem [resolvable:$true] %s3673_s5 }
0x3601   :  { %s4695_s15 = scalar_lea.vmem %s3674_s5, 256  ;;  %p4700_p4 = scmp.lt.s32.totalorder %s3674_s5, %s3674_s5 }
0x3602   :  { %p4696_p3 = scmp.ne.s32.totalorder %s3674_s5, %s4695_s15  ;;  %p4701_p5 = scmp.lt.s32.totalorder %s4695_s15, %s4695_s15 }
0x3604   :  { %p4702_p6 = por %p4701_p5, %p4700_p4 }
0x3606   :  { %p4703_p7 = pnand %p4702_p6, %p4696_p3 }
0x3672   :  { %v3657_v5 = vpop.f32.mrf.mxu1 }
0x3673   :  { %v3658_v32 = vadd.f32 %v3657_v5, %v3587_v2 }
0x3674   :  { %v4387_v19 = vpop.f32.mrf.mxu1 }
0x3675   :  { %v3661_v39 = vadd.f32 %v3658_v32, %v5183_v11 }
0x3677   :  { %3662 = vst.msk [vmem:[#allocation16 + $0x8] sm:$0x1] %vm1528_vm8, %v3661_v39 }
0x3678   :  { %4706 = shalt.err (!%p4703_p7)
}
0x3679   :  { %3679 = dma.vmem_to_hbm [thread:$0]  %s3674_s5, 256, %s5618_s13, [#allocation4], %s4731_s18, %s4731_s18, %s4732_s19  }
0x367a   :  { %4725 = dma.done.wait [#allocation4], 256  }
0x367b   :  { %4726 = vsyncadd [#allocation4], 4294967040 }
0x367c   :  { %4727 = dma.done.wait [#allocation18], 16  }
0x367d   :  { %4728 = vsyncadd [#allocation18], 4294967280 }
0x367e   :  { %3696 = vsyncpa [#allocation3], 1 }
0x367f   :  { %3697 = vsyncpa [#allocation8], 1 }
0x3680   :  { %3698 = vsyncpa [#allocation11], 1 }
0x3681   :  { %3699 = vsyncpa [#allocation14], 1 }
0x3682   :  { %3700 = vsyncpa [#allocation4], 1 }
0x3683   :  { %3701 = vsyncpa [#allocation18], 1 }
0x3684   :  { %3702 = vsyncpa [#allocation5], 1 }

</bundles_post_ra>
